<compile_context>
chip_gen: v7x
topology: tpu7x:2x2x1
jax: 0.10.0
libtpu: 0.0.40
codegen_flags: <defaults>
</compile_context>

<pallas_src>
import math
import functools

import jax
import jax.numpy as jnp
from jax import lax
from jax.experimental import pallas as pl
from jax.experimental.pallas import tpu as pltpu

EPS = 1e-5  # nn.GroupNorm default eps


def _self_attention_kernel(n_head, head_dim, cdt,
                           x_ref, p_ref, gamma_ref, beta_ref,
                           wqkv_ref, wout_ref, bout_ref, o_ref):
    """One grid step processes a (Bt, C, S) block of images.

    x_ref     : (Bt, C, S)          input, channels-in-sublane / spatial-in-lane
    p_ref     : (C, C)        f32   group-averaging matrix (symmetric)
    gamma_ref : (C, 1)        f32   GroupNorm weight
    beta_ref  : (C, 1)        f32   GroupNorm bias
    wqkv_ref  : (3C, C)       cdt   qkv conv weight, rows reordered [q|k|v]
                                    head-major, 1/sqrt(C) folded into q rows
    wout_ref  : (C, C)        cdt   output conv weight
    bout_ref  : (C, 1)        f32   output conv bias
    o_ref     : (Bt, C, S)          output
    """
    Bt, C, S = x_ref.shape

    wqkv = wqkv_ref[...]          # (3C, C)
    wout = wout_ref[...]          # (C, C)
    gamma = gamma_ref[...]        # (C, 1)
    beta = beta_ref[...]          # (C, 1)
    bias = bout_ref[...]          # (C, 1)
    pmat = p_ref[...]             # (C, C)

    # Static unrolled loop over the Bt images of this block (Bt is small).
    for bi in range(Bt):
        xb = x_ref[bi].astype(jnp.float32)                        # (C, S)

        # ---- GroupNorm: per-channel moments -> group moments via P matmul ----
        m1 = jnp.mean(xb, axis=1, keepdims=True)                  # (C, 1)
        m2 = jnp.mean(xb * xb, axis=1, keepdims=True)             # (C, 1)
        stats = jnp.concatenate([m1, m2], axis=1)                 # (C, 2)
        gstats = jnp.dot(pmat, stats, preferred_element_type=jnp.float32)
        gmean = gstats[:, 0:1]
        # clamp E[x^2] - E[x]^2 so rsqrt never sees a tiny negative value
        var = jnp.maximum(gstats[:, 1:2] - gmean * gmean, 0.0)
        scale = lax.rsqrt(var + EPS) * gamma                      # (C, 1)
        shift = beta - gmean * scale
        xn = (xb * scale + shift).astype(cdt)                     # (C, S)

        # ---- qkv projection (1x1 conv == matmul), bf16 operands, f32 accum ----
        qkv = jnp.dot(wqkv, xn,
                      preferred_element_type=jnp.float32).astype(cdt)  # (3C, S)
        q = qkv[:C].reshape(n_head, head_dim, S)                  # (h, d, S)
        k = qkv[C:2 * C].reshape(n_head, head_dim, S)             # (h, d, S)
        v = qkv[2 * C:].reshape(n_head, head_dim, S)              # (h, d, S)

        # ---- plain softmax attention (full (h,S,S) score tile; S is small) ----
        s = jnp.einsum('hds,hdt->hst', q, k,
                       preferred_element_type=jnp.float32)        # (h, S, S)
        s = s - jnp.max(s, axis=-1, keepdims=True)
        p = jnp.exp(s)                                            # f32 exp
        denom = jnp.sum(p, axis=-1, keepdims=True)                # (h, S, 1)
        p = (p * pl.reciprocal(denom, approx=True)).astype(cdt)   # (h, S, S)

        # o[h, d, s] = sum_t v[h, d, t] * p[h, s, t]  (natural output order)
        o_h = jnp.einsum('hdt,hst->hds', v, p,
                         preferred_element_type=jnp.float32)      # (h, d, S)

        # ---- output 1x1 conv: fold heads into channels, one matmul ----
        o_c = o_h.reshape(C, S).astype(cdt)                       # (C, S)
        y = jnp.dot(wout, o_c, preferred_element_type=jnp.float32)
        o_ref[bi] = (y + bias + xb).astype(o_ref.dtype)


def _pick_block_batch(B, max_bt=8):
    """Images per grid step: amortize per-step overhead but keep >=2 grid
    steps when possible so both v7x TensorCores get work."""
    divisors = [d for d in range(1, min(B, max_bt) + 1) if B % d == 0]
    multi = [d for d in divisors if B // d >= 2]
    return max(multi) if multi else max(divisors)


def self_attention_pallas(x_nchw, params, n_head, norm_groups,
                          compute_dtype=jnp.bfloat16):
    """Forward of SelfAttention(C, n_head, norm_groups) on an NCHW tensor."""
    B, C, H, W = x_nchw.shape
    assert C % n_head == 0 and C % norm_groups == 0
    S = H * W
    hd = C // n_head
    gs = C // norm_groups
    # TODO(synk): add a blocked (flash) softmax fallback if S ever exceeds a
    # few thousand; UNet_v2 only applies attention at 8x8 (S=64).

    # Group-averaging matrix: P[c, c'] = 1/gs if c and c' share a group.
    gidx = jnp.arange(C) // gs
    P = (gidx[:, None] == gidx[None, :]).astype(jnp.float32) / gs

    gamma = params["gamma"].reshape(C, 1).astype(jnp.float32)
    beta = params["beta"].reshape(C, 1).astype(jnp.float32)
    bout = params["b_out"].reshape(C, 1).astype(jnp.float32)

    # Reorder the qkv conv weight rows so the matmul emits contiguous
    # [q | k | v] slabs with head-major channels (torch interleaves q/k/v per
    # head), and fold the 1/sqrt(C) attention scale into the q rows.
    w_qkv = params["w_qkv"].astype(jnp.float32)               # (3C, C)
    w_r = (w_qkv.reshape(n_head, 3, hd, C)
                .transpose(1, 0, 2, 3)
                .reshape(3 * C, C))
    w_r = w_r.at[:C].multiply(1.0 / math.sqrt(C))
    wqkv = w_r.astype(compute_dtype)                          # (3C, C)
    wout = params["w_out"].astype(compute_dtype)              # (C, C)

    # NCHW -> (B, C, S) is a free reshape: no HBM transpose on either side.
    x_cs = x_nchw.reshape(B, C, S)

    Bt = _pick_block_batch(B)
    kernel = functools.partial(_self_attention_kernel, n_head, hd,
                               compute_dtype)
    y_cs = pl.pallas_call(
        kernel,
        out_shape=jax.ShapeDtypeStruct((B, C, S), x_nchw.dtype),
        grid=(B // Bt,),
        in_specs=[
            pl.BlockSpec((Bt, C, S), lambda i: (i, 0, 0)),        # x
            pl.BlockSpec((C, C), lambda i: (0, 0)),               # P
            pl.BlockSpec((C, 1), lambda i: (0, 0)),               # gamma
            pl.BlockSpec((C, 1), lambda i: (0, 0)),               # beta
            pl.BlockSpec((3 * C, C), lambda i: (0, 0)),           # Wqkv
            pl.BlockSpec((C, C), lambda i: (0, 0)),               # Wout
            pl.BlockSpec((C, 1), lambda i: (0, 0)),               # b_out
        ],
        out_specs=pl.BlockSpec((Bt, C, S), lambda i: (i, 0, 0)),
        compiler_params=pltpu.CompilerParams(
            dimension_semantics=("parallel",),
            vmem_limit_bytes=32 * 1024 * 1024),
    )(x_cs, P, gamma, beta, wqkv, wout, bout)

    return y_cs.reshape(B, C, H, W)


def self_attention_reference(x, params, n_head, norm_groups):
    """Pure-JAX (f32) replica of the PyTorch forward (NCHW)."""
    B, C, H, W = x.shape
    hd = C // n_head
    xg = x.reshape(B, norm_groups, C // norm_groups, H, W)
    mean = jnp.mean(xg, axis=(2, 3, 4), keepdims=True)
    var = jnp.var(xg, axis=(2, 3, 4), keepdims=True)
    xn = (xg - mean) / jnp.sqrt(var + EPS)
    xn = xn.reshape(B, C, H, W)
    xn = xn * params["gamma"][None, :, None, None] + params["beta"][None, :, None, None]
    qkv = jnp.einsum('oc,bchw->bohw', params["w_qkv"], xn)
    qkv = qkv.reshape(B, n_head, hd * 3, H, W)
    q, k, v = qkv[:, :, :hd], qkv[:, :, hd:2 * hd], qkv[:, :, 2 * hd:]
    attn = jnp.einsum('bnchw,bncyx->bnhwyx', q, k) / math.sqrt(C)
    attn = attn.reshape(B, n_head, H, W, H * W)
    attn = jax.nn.softmax(attn, axis=-1)
    attn = attn.reshape(B, n_head, H, W, H, W)
    out = jnp.einsum('bnhwyx,bncyx->bnchw', attn, v)
    out = out.reshape(B, C, H, W)
    out = (jnp.einsum('oc,bchw->bohw', params["w_out"], out)
           + params["b_out"][None, :, None, None])
    return out + x


if __name__ == "__main__":
    def run_case(B, C, H, W, n_head, norm_groups):
        key = jax.random.PRNGKey(0)
        kx, k1, k2, k3, k4, k5 = jax.random.split(key, 6)
        x = jax.random.normal(kx, (B, C, H, W), jnp.float32)
        params = {
            "gamma": 1.0 + 0.1 * jax.random.normal(k1, (C,), jnp.float32),
            "beta": 0.1 * jax.random.normal(k2, (C,), jnp.float32),
            "w_qkv": 0.1 * jax.random.normal(k3, (3 * C, C), jnp.float32),
            "w_out": 0.1 * jax.random.normal(k4, (C, C), jnp.float32),
            "b_out": 0.1 * jax.random.normal(k5, (C,), jnp.float32),
        }
        y = jax.block_until_ready(
            self_attention_pallas(x, params, n_head, norm_groups))
        y_ref = self_attention_reference(x, params, n_head, norm_groups)
        max_err = float(jnp.max(jnp.abs(y - y_ref)))
        assert jnp.allclose(y, y_ref, atol=2e-2, rtol=2e-2), \
            f"max abs err {max_err}"

    # Multi-head case; S=256 gives full 128-lane tiles in the (C, S) layout.
    run_case(B=2, C=32, H=16, W=16, n_head=2, norm_groups=8)
    # UNet_v2's actual usage pattern: n_head=1, attention at 8x8 resolution.
    run_case(B=2, C=32, H=8, W=8, n_head=1, norm_groups=16)
    # Larger batch: exercises Bt=2 images per grid step (grid of 2 steps).
    run_case(B=4, C=32, H=8, W=8, n_head=1, norm_groups=16)
    print("KERNEL_OK")
</pallas_src>

<mosaic_0001>
module attributes {stable_mosaic.version = 11 : i64} {
  func.func @_self_attention_kernel(%arg0: i32, %arg1: memref<1x32x256xf32, #tpu.memory_space<vmem>>, %arg2: memref<32x32xf32, #tpu.memory_space<vmem>>, %arg3: memref<32x1xf32, #tpu.memory_space<vmem>>, %arg4: memref<32x1xf32, #tpu.memory_space<vmem>>, %arg5: memref<96x32xbf16, #tpu.memory_space<vmem>>, %arg6: memref<32x32xbf16, #tpu.memory_space<vmem>>, %arg7: memref<32x1xf32, #tpu.memory_space<vmem>>, %arg8: memref<1x32x256xf32, #tpu.memory_space<vmem>>) attributes {dimension_semantics = [#tpu.dimension_semantics<parallel>], iteration_bounds = array<i64: 2>, scalar_prefetch = 0 : i64, scratch_operands = 0 : i64, tpu.core_type = #tpu.core_type<tc>, window_params = [{transform_indices = @transform_0, window_bounds = array<i64: 1, 32, 256>}, {pipeline_mode = #tpu.pipeline_mode<synchronous>, transform_indices = @transform_1, window_bounds = array<i64: 32, 32>}, {pipeline_mode = #tpu.pipeline_mode<synchronous>, transform_indices = @transform_2, window_bounds = array<i64: 32, 1>}, {pipeline_mode = #tpu.pipeline_mode<synchronous>, transform_indices = @transform_3, window_bounds = array<i64: 32, 1>}, {pipeline_mode = #tpu.pipeline_mode<synchronous>, transform_indices = @transform_4, window_bounds = array<i64: 96, 32>}, {pipeline_mode = #tpu.pipeline_mode<synchronous>, transform_indices = @transform_5, window_bounds = array<i64: 32, 32>}, {pipeline_mode = #tpu.pipeline_mode<synchronous>, transform_indices = @transform_6, window_bounds = array<i64: 32, 1>}, {transform_indices = @transform_7, window_bounds = array<i64: 1, 32, 256>}]} {
    %c0 = arith.constant 0 : index
    %c0_0 = arith.constant 0 : index
    %0 = vector.load %arg5[%c0, %c0_0] : memref<96x32xbf16, #tpu.memory_space<vmem>>, vector<96x32xbf16>
    %c0_1 = arith.constant 0 : index
    %c0_2 = arith.constant 0 : index
    %1 = vector.load %arg6[%c0_1, %c0_2] : memref<32x32xbf16, #tpu.memory_space<vmem>>, vector<32x32xbf16>
    %c0_3 = arith.constant 0 : index
    %c0_4 = arith.constant 0 : index
    %2 = vector.load %arg3[%c0_3, %c0_4] : memref<32x1xf32, #tpu.memory_space<vmem>>, vector<32x1xf32>
    %c0_5 = arith.constant 0 : index
    %c0_6 = arith.constant 0 : index
    %3 = vector.load %arg4[%c0_5, %c0_6] : memref<32x1xf32, #tpu.memory_space<vmem>>, vector<32x1xf32>
    %c0_7 = arith.constant 0 : index
    %c0_8 = arith.constant 0 : index
    %4 = vector.load %arg7[%c0_7, %c0_8] : memref<32x1xf32, #tpu.memory_space<vmem>>, vector<32x1xf32>
    %c0_9 = arith.constant 0 : index
    %c0_10 = arith.constant 0 : index
    %5 = vector.load %arg2[%c0_9, %c0_10] : memref<32x32xf32, #tpu.memory_space<vmem>>, vector<32x32xf32>
    %c0_11 = arith.constant 0 : index
    %c0_12 = arith.constant 0 : index
    %c0_13 = arith.constant 0 : index
    %6 = vector.load %arg1[%c0_11, %c0_12, %c0_13] : memref<1x32x256xf32, #tpu.memory_space<vmem>>, vector<1x32x256xf32>
    %7 = vector.shape_cast %6 : vector<1x32x256xf32> to vector<32x256xf32>
    %cst = arith.constant dense<0.000000e+00> : vector<32xf32>
    %8 = vector.multi_reduction <add>, %7, %cst [1] : vector<32x256xf32> to vector<32xf32>
    %9 = vector.shape_cast %8 : vector<32xf32> to vector<32x1xf32>
    %cst_14 = arith.constant 2.560000e+02 : f32
    %10 = vector.broadcast %cst_14 : f32 to vector<32x1xf32>
    %11 = arith.divf %9, %10 : vector<32x1xf32>
    %12 = arith.mulf %7, %7 : vector<32x256xf32>
    %cst_15 = arith.constant dense<0.000000e+00> : vector<32xf32>
    %13 = vector.multi_reduction <add>, %12, %cst_15 [1] : vector<32x256xf32> to vector<32xf32>
    %14 = vector.shape_cast %13 : vector<32xf32> to vector<32x1xf32>
    %cst_16 = arith.constant 2.560000e+02 : f32
    %15 = vector.broadcast %cst_16 : f32 to vector<32x1xf32>
    %16 = arith.divf %14, %15 : vector<32x1xf32>
    %17 = tpu.concatenate %11, %16 in 1 : vector<32x1xf32>, vector<32x1xf32> -> vector<32x2xf32>
    %cst_17 = arith.constant dense<0.000000e+00> : vector<32x2xf32>
    %18 = tpu.matmul %5, %17, %cst_17 {dimension_numbers = #tpu.dot_dimension_numbers<[1], [0], [0], [1], [0, 0, 1, 1], [], []>} : vector<32x32xf32>, vector<32x2xf32>, vector<32x2xf32> -> vector<32x2xf32>
    %19 = vector.extract_strided_slice %18 {offsets = [0, 0], sizes = [32, 1], strides = [1, 1]} : vector<32x2xf32> to vector<32x1xf32>
    %20 = vector.extract_strided_slice %18 {offsets = [0, 1], sizes = [32, 1], strides = [1, 1]} : vector<32x2xf32> to vector<32x1xf32>
    %21 = arith.mulf %19, %19 : vector<32x1xf32>
    %22 = arith.subf %20, %21 : vector<32x1xf32>
    %cst_18 = arith.constant 0.000000e+00 : f32
    %23 = vector.broadcast %cst_18 : f32 to vector<32x1xf32>
    %24 = arith.maximumf %22, %23 : vector<32x1xf32>
    %cst_19 = arith.constant 9.99999974E-6 : f32
    %25 = vector.broadcast %cst_19 : f32 to vector<32x1xf32>
    %26 = arith.addf %24, %25 : vector<32x1xf32>
    %27 = math.rsqrt %26 : vector<32x1xf32>
    %28 = arith.mulf %27, %2 : vector<32x1xf32>
    %29 = arith.mulf %19, %28 : vector<32x1xf32>
    %30 = arith.subf %3, %29 : vector<32x1xf32>
    %31 = vector.broadcast %28 : vector<32x1xf32> to vector<32x256xf32>
    %32 = arith.mulf %7, %31 : vector<32x256xf32>
    %33 = vector.broadcast %30 : vector<32x1xf32> to vector<32x256xf32>
    %34 = arith.addf %32, %33 : vector<32x256xf32>
    %35 = arith.truncf %34 : vector<32x256xf32> to vector<32x256xbf16>
    %cst_20 = arith.constant dense<0.000000e+00> : vector<96x256xf32>
    %36 = tpu.matmul %0, %35, %cst_20 {dimension_numbers = #tpu.dot_dimension_numbers<[1], [0], [0], [1], [0, 0, 1, 1], [], []>} : vector<96x32xbf16>, vector<32x256xbf16>, vector<96x256xf32> -> vector<96x256xf32>
    %37 = arith.truncf %36 : vector<96x256xf32> to vector<96x256xbf16>
    %38 = vector.extract_strided_slice %37 {offsets = [0, 0], sizes = [32, 256], strides = [1, 1]} : vector<96x256xbf16> to vector<32x256xbf16>
    %39 = vector.shape_cast %38 : vector<32x256xbf16> to vector<2x16x256xbf16>
    %40 = vector.extract_strided_slice %37 {offsets = [32, 0], sizes = [32, 256], strides = [1, 1]} : vector<96x256xbf16> to vector<32x256xbf16>
    %41 = vector.shape_cast %40 : vector<32x256xbf16> to vector<2x16x256xbf16>
    %42 = vector.extract_strided_slice %37 {offsets = [64, 0], sizes = [32, 256], strides = [1, 1]} : vector<96x256xbf16> to vector<32x256xbf16>
    %43 = vector.shape_cast %42 : vector<32x256xbf16> to vector<2x16x256xbf16>
    "tpu.trace_start"() <{level = 10 : i32, message = "hds,hdt->hst"}> : () -> ()
    %cst_21 = arith.constant dense<0.000000e+00> : vector<2x256x256xf32>
    %44 = tpu.matmul %39, %41, %cst_21 {dimension_numbers = #tpu.dot_dimension_numbers<[1], [1], [2], [2], [0, 0, 0, 2, 1, 2], [0], [0]>} : vector<2x16x256xbf16>, vector<2x16x256xbf16>, vector<2x256x256xf32> -> vector<2x256x256xf32>
    "tpu.trace_stop"() : () -> ()
    %cst_22 = arith.constant dense<0xFF800000> : vector<2x256xf32>
    %45 = vector.multi_reduction <maximumf>, %44, %cst_22 [2] : vector<2x256x256xf32> to vector<2x256xf32>
    %46 = vector.shape_cast %45 : vector<2x256xf32> to vector<2x256x1xf32>
    %47 = vector.broadcast %46 : vector<2x256x1xf32> to vector<2x256x256xf32>
    %48 = arith.subf %44, %47 : vector<2x256x256xf32>
    %49 = math.exp %48 : vector<2x256x256xf32>
    %cst_23 = arith.constant dense<0.000000e+00> : vector<2x256xf32>
    %50 = vector.multi_reduction <add>, %49, %cst_23 [2] : vector<2x256x256xf32> to vector<2x256xf32>
    %51 = vector.shape_cast %50 : vector<2x256xf32> to vector<2x256x1xf32>
    %52 = tpu.reciprocal %51 {approx = true} : vector<2x256x1xf32> -> vector<2x256x1xf32>
    %53 = vector.broadcast %52 : vector<2x256x1xf32> to vector<2x256x256xf32>
    %54 = arith.mulf %49, %53 : vector<2x256x256xf32>
    %55 = arith.truncf %54 : vector<2x256x256xf32> to vector<2x256x256xbf16>
    "tpu.trace_start"() <{level = 10 : i32, message = "hdt,hst->hds"}> : () -> ()
    %cst_24 = arith.constant dense<0.000000e+00> : vector<2x16x256xf32>
    %56 = tpu.matmul %43, %55, %cst_24 {dimension_numbers = #tpu.dot_dimension_numbers<[2], [2], [1], [1], [0, 0, 0, 1, 1, 1], [0], [0]>} : vector<2x16x256xbf16>, vector<2x256x256xbf16>, vector<2x16x256xf32> -> vector<2x16x256xf32>
    "tpu.trace_stop"() : () -> ()
    %57 = vector.shape_cast %56 : vector<2x16x256xf32> to vector<32x256xf32>
    %58 = arith.truncf %57 : vector<32x256xf32> to vector<32x256xbf16>
    %cst_25 = arith.constant dense<0.000000e+00> : vector<32x256xf32>
    %59 = tpu.matmul %1, %58, %cst_25 {dimension_numbers = #tpu.dot_dimension_numbers<[1], [0], [0], [1], [0, 0, 1, 1], [], []>} : vector<32x32xbf16>, vector<32x256xbf16>, vector<32x256xf32> -> vector<32x256xf32>
    %60 = vector.broadcast %4 : vector<32x1xf32> to vector<32x256xf32>
    %61 = arith.addf %59, %60 : vector<32x256xf32>
    %62 = arith.addf %61, %7 : vector<32x256xf32>
    %c0_26 = arith.constant 0 : index
    %c0_27 = arith.constant 0 : index
    %c0_28 = arith.constant 0 : index
    %63 = vector.load %arg8[%c0_26, %c0_27, %c0_28] : memref<1x32x256xf32, #tpu.memory_space<vmem>>, vector<1x32x256xf32>
    %64 = vector.shape_cast %63 : vector<1x32x256xf32> to vector<32x256xf32>
    %65 = vector.shape_cast %62 : vector<32x256xf32> to vector<1x32x256xf32>
    tpu.vector_store %arg8[%c0_26, %c0_27, %c0_28], %65 {strides = array<i32>} : memref<1x32x256xf32, #tpu.memory_space<vmem>>, vector<1x32x256xf32>,
    return
  }
  func.func @transform_0(%arg0: i32) -> (i32, i32, i32) {
    %c0_i32 = arith.constant 0 : i32
    %c0_i32_0 = arith.constant 0 : i32
    %c0_i32_1 = arith.constant 0 : i32
    return %arg0, %c0_i32, %c0_i32_0 : i32, i32, i32
  }
  func.func @transform_1(%arg0: i32) -> (i32, i32) {
    %c0_i32 = arith.constant 0 : i32
    %c0_i32_0 = arith.constant 0 : i32
    %c0_i32_1 = arith.constant 0 : i32
    return %c0_i32, %c0_i32_0 : i32, i32
  }
  func.func @transform_2(%arg0: i32) -> (i32, i32) {
    %c0_i32 = arith.constant 0 : i32
    %c0_i32_0 = arith.constant 0 : i32
    %c0_i32_1 = arith.constant 0 : i32
    return %c0_i32, %c0_i32_0 : i32, i32
  }
  func.func @transform_3(%arg0: i32) -> (i32, i32) {
    %c0_i32 = arith.constant 0 : i32
    %c0_i32_0 = arith.constant 0 : i32
    %c0_i32_1 = arith.constant 0 : i32
    return %c0_i32, %c0_i32_0 : i32, i32
  }
  func.func @transform_4(%arg0: i32) -> (i32, i32) {
    %c0_i32 = arith.constant 0 : i32
    %c0_i32_0 = arith.constant 0 : i32
    %c0_i32_1 = arith.constant 0 : i32
    return %c0_i32, %c0_i32_0 : i32, i32
  }
  func.func @transform_5(%arg0: i32) -> (i32, i32) {
    %c0_i32 = arith.constant 0 : i32
    %c0_i32_0 = arith.constant 0 : i32
    %c0_i32_1 = arith.constant 0 : i32
    return %c0_i32, %c0_i32_0 : i32, i32
  }
  func.func @transform_6(%arg0: i32) -> (i32, i32) {
    %c0_i32 = arith.constant 0 : i32
    %c0_i32_0 = arith.constant 0 : i32
    %c0_i32_1 = arith.constant 0 : i32
    return %c0_i32, %c0_i32_0 : i32, i32
  }
  func.func @transform_7(%arg0: i32) -> (i32, i32, i32) {
    %c0_i32 = arith.constant 0 : i32
    %c0_i32_0 = arith.constant 0 : i32
    %c0_i32_1 = arith.constant 0 : i32
    return %arg0, %c0_i32, %c0_i32_0 : i32, i32, i32
  }
}

</mosaic_0001>

<bundles_post_ra>
// kernel: tpu_custom_call.1
= control target key start
LH: loop header
LB: loop body
LE: loop exit
PB: predicated region body
PF: predicated region fallthrough
CT: control target
= control target key end

     0   :  { %12 = vsyncpa [#allocation3], 0  ;;  %s4691_s0 = inlined_call_operand.vmem [shape: f32[2,32,256], index: 0, kind: input, shape index: {}]   ;;  %s4692_s1 = inlined_call_operand.vmem [shape: f32[32,32], index: 1, kind: input, shape index: {}]   ;;  %s4693_s2 = inlined_call_operand.vmem [shape: f32[32,1], index: 2, kind: input, shape index: {}]   ;;  %s4694_s3 = inlined_call_operand.vmem [shape: f32[32,1], index: 3, kind: input, shape index: {}]   ;;  %s4695_s4 = inlined_call_operand.vmem [shape: bf16[96,32], index: 4, kind: input, shape index: {}]   ;;  %s4696_s5 = inlined_call_operand.vmem [shape: bf16[32,32], index: 5, kind: input, shape index: {}]   ;;  %s4697_s6 = inlined_call_operand.vmem [shape: f32[32,1], index: 6, kind: input, shape index: {}]   ;;  %s4698_s7 = inlined_call_operand.hbm [shape: f32[2,32,256], index: 7, kind: output, shape index: {}]  }
   0x1   :  { %14 = vsyncpa [#allocation3 + $0x1], 0  ;;  %s3261_s24 = smov 0   ;;  %s3263_s25 = smov 0  }
   0x2   :  { %s3265_s26 = smov 0   ;;  %s3267_s27 = smov 0  }
   0x3 LB: > { %s3282_s28 = sadd.s32 4294967295, %s3212_s27   ;;  %s2593_s29 = sadd.s32 4294967294, %s3212_s27   ;;  %s3212_s27 = sphi %s3267_s27, %s5195_s27   ;;  %s3208_s26 = sphi %s3265_s26, %s5194_s26   ;;  %s3204_s25 = sphi %s3263_s25, %s5193_s25   ;;  %s3200_s24 = sphi %s3261_s24, %s5192_s24  }
   0x4   : > { %s3286_s30 = sadd.s32 1, %s3212_s27   ;;  %s179_s8 = sadd.s32 1, %s3208_s26 }
   0x5   : > { %s176_s9 = ssub.s32 %s3212_s27, %s3286_s30  ;;  %p189_p0 = scmp.ne.s32.totalorder %s3208_s26, %s3204_s25 }
   0x6   : > { %p177_p1 = scmp.eq.s32.totalorder %s176_s9, 0  ;;  %p190_p2 = scmp.eq.s32.totalorder %s3282_s28, 1 }
   0x7   : > { %p195_p3 = scmp.ne.s32.totalorder %s3204_s25, %s3200_s24  ;;  %p196_p4 = scmp.eq.s32.totalorder %s2593_s29, 1 }
   0x8   : > { %s3297_s10 = scalar_select %p177_p1, %s3208_s26, %s179_s8  }
   0x9   : > { %p3299_p5 = por %p190_p2, %p189_p0  ;;  %p3303_p6 = por %p196_p4, %p195_p3 }
   0xa   : > { %p2596_p7 = scmp.ge.s32.totalorder %s3212_s27, 1  ;;  %p240_p8 = scmp.lt.s32.totalorder %s3212_s27, 3 }
   0xc   : > { %p241_p9 = pnand %p2596_p7, %p240_p8 }
   0xe   : > { %244 = sbr.rel (%p241_p9) target bundleno = 2258 (0x8d2), region = 48 }
  0x15   : > { %p272_p10 = scmp.lt.s32.totalorder %s3282_s28, 1  ;;  %v306_v24 = vld [vmem:[%s4692_s1] sm:$0xff]  ;;  %vm364_vm0 = vcmask 261120   ;;  %vm359_vm1 = vcmask 7168   ;;  %v307_v47 = vld [vmem:[%s4692_s1 + $0x8] sm:$0xff]  ;;  %v308_v48 = vld [vmem:[%s4692_s1 + $0x10] sm:$0xff] }
  0x16   : > { %2675 = vmatprep.mubr.msk.f32.mxu0 %vm364_vm0, %v306_v24  ;;  %v309_v49 = vld [vmem:[%s4692_s1 + $0x18] sm:$0xff]  ;;  %s3214_s9 = smov 1   ;;  %v294_v56 = vld [vmem:[%s4693_s2] sm:$0xff]  ;;  %v296_v58 = vld [vmem:[%s4693_s2 + $0x10] sm:$0xff]  ;;  %v3215_v62 = vmov 1   ;;  %s3217_s22 = smov 127  }
  0x17   : > { %s273_s13 = scalar_select %p272_p10, %s3282_s28, 1  ;;  %v295_v60 = vld [vmem:[%s4693_s2 + $0x8] sm:$0xff]  ;;  %v297_v61 = vld [vmem:[%s4693_s2 + $0x18] sm:$0xff]  ;;  %2738 = vset.pattern.permute.xlu0 %v3215_v62  ;;  %2739 = vset.pattern.permute.xlu1 %v3215_v62  ;;  %vm783_vm2 = vcmask 130048  }
  0x18   : > { %s269_s15 = sand.u32 1, %s3204_s25   ;;  %s2658_s19 = sshll.u32 %s3282_s28, 10 }
  0x19   : > { %s2657_s14 = sshll.u32 %s273_s13, 6  ;;  %s2597_s16 = sshll.u32 %s269_s15, 6 }
  0x1a   : > { %s3314_s17 = scalar_lea.vmem %s4691_s0, %s2657_s14  ;;  %s4623_s18 = scalar_lea.vmem [#allocation2], %s2597_s16 }
  0x1b   : > { %v3317_v0 = vld [vmem:[%s3314_s17 + $0x30] sm:$0xff]  ;;  %v3320_v1 = vld [vmem:[%s3314_s17 + $0x38] sm:$0xff]  ;;  %v3323_v2 = vld [vmem:[%s3314_s17] sm:$0xff]  ;;  %s2531_s20 = sshll.u32 %s4623_s18, 4  ;;  %s4640_s23 = scalar_lea.hbm %s4698_s7, %s2658_s19  ;;  %s4642_s20 = int_to_ptr.vmem [resolvable:$true] %s2531_s20 }
  0x1c   : > { %v327_v3 = vadd.f32 %v3320_v1, %v3317_v0  ;;  %v3328_v4 = vld [vmem:[%s3314_s17 + $0x8] sm:$0xff]  ;;  %v335_v5 = vmul.f32 %v3323_v2, %v3323_v2  ;;  %v3333_v6 = vld [vmem:[%s3314_s17 + $0x10] sm:$0xff]  ;;  %v3336_v7 = vld [vmem:[%s3314_s17 + $0x18] sm:$0xff]  ;;  %v341_v17 = vmul.f32 %v3317_v0, %v3317_v0  ;;  %v342_v18 = vmul.f32 %v3320_v1, %v3320_v1  ;;  %s4650_s28 = scalar_lea.sflag [#allocation3], %s269_s15  ;;  %s3150_s29 = scalar_lea.vmem %s4642_s20, 1024 }
  0x1d   : > { %v318_v8 = vadd.f32 %v3328_v4, %v3323_v2  ;;  %v336_v9 = vmul.f32 %v3328_v4, %v3328_v4  ;;  %v337_v10 = vmul.f32 %v3333_v6, %v3333_v6  ;;  %v338_v11 = vmul.f32 %v3336_v7, %v3336_v7  ;;  %v3349_v14 = vld [vmem:[%s3314_s17 + $0x20] sm:$0xff]  ;;  %v3352_v15 = vld [vmem:[%s3314_s17 + $0x28] sm:$0xff]  ;;  %p3151_p11 = scmp.ne.s32.totalorder %s4642_s20, %s3150_s29  ;;  %s3218_s8 = smov [#allocation2]  }
  0x1e   : > { %328 = vadd.xlane.f32.xlu1 %v327_v3  ;;  %v321_v13 = vadd.f32 %v3336_v7, %v3333_v6  ;;  %v324_v19 = vadd.f32 %v3352_v15, %v3349_v14  ;;  %v339_v20 = vmul.f32 %v3349_v14, %v3349_v14  ;;  %v340_v21 = vmul.f32 %v3352_v15, %v3352_v15 }
  0x1f   : > { %319 = vadd.xlane.f32.xlu0 %v318_v8  ;;  %v343_v12 = vadd.f32 %v336_v9, %v335_v5  ;;  %v346_v16 = vadd.f32 %v338_v11, %v337_v10  ;;  %v352_v22 = vadd.f32 %v342_v18, %v341_v17  ;;  %p3152_p12 = pnand %p3151_p11, %p3299_p5 }
  0x20   : > { %v349_v23 = vadd.f32 %v340_v21, %v339_v20  ;;  %v4699_v21 = vmov 0  }
  0x21   : > { %688 = vmatprep.mubr.bf16.mxu1 %v4699_v21  ;;  %p3153_p13 = pneg %p3152_p12 }
  0x22   : > { %344 = vadd.xlane.f32.xlu1 %v343_v12 }
  0x23   : > { %322 = vadd.xlane.f32.xlu0 %v321_v13 }
  0x26   : > { %347 = vadd.xlane.f32.xlu1 %v346_v16 }
  0x27   : > { %325 = vadd.xlane.f32.xlu0 %v324_v19 }
  0x2a   : > { %353 = vadd.xlane.f32.xlu1 %v352_v22 }
  0x2b   : > { %350 = vadd.xlane.f32.xlu0 %v349_v23 }
  0xab   : > { %v329_v25 = vpop.xlane.xlu1 %328 }
  0xac   : > { %v320_v26 = vpop.xlane.xlu0 %319  ;;  %v334_v39 = vmul.f32 0.00390625, %v329_v25 }
  0xad   : > { %v331_v31 = vmul.f32 0.00390625, %v320_v26 }
  0xaf   : > { %v345_v27 = vpop.xlane.xlu1 %344 }
  0xb0   : > { %v323_v28 = vpop.xlane.xlu0 %322  ;;  %v355_v29 = vmul.f32 0.00390625, %v345_v27 }
  0xb1   : > { %v332_v32 = vmul.f32 0.00390625, %v323_v28 }
  0xb2   : > { %v360_v35 = vsel %vm359_vm1, %v331_v31, %v355_v29 }
  0xb3   : > { %v348_v30 = vpop.xlane.xlu1 %347 }
  0xb4   : > { %v356_v33 = vmul.f32 0.00390625, %v348_v30  ;;  %v326_v34 = vpop.xlane.xlu0 %325 }
  0xb5   : > { %v333_v42 = vmul.f32 0.00390625, %v326_v34 }
  0xb6   : > { %v361_v36 = vsel %vm359_vm1, %v332_v32, %v356_v33 }
  0xb7   : > { %v354_v37 = vpop.xlane.xlu1 %353  ;;  %v2681_v38 = vpack.c.bf16 %v361_v36, %v360_v35  ;;  %v299_v36 = vld [vmem:[%s4694_s3 + $0x8] sm:$0xff] }
  0xb8   : > { %v358_v40 = vmul.f32 0.00390625, %v354_v37  ;;  %v351_v41 = vpop.xlane.xlu0 %350 }
  0xb9   : > { %v357_v43 = vmul.f32 0.00390625, %v351_v41  ;;  %2682 = vmatprep.subr.bf16.mxu0 %v2681_v38 }
  0xba   : > { %2684 = vmatpush3.bf16.msra.mxu0 %v2681_v38  ;;  %v363_v44 = vsel %vm359_vm1, %v334_v39, %v358_v40  ;;  %v298_v39 = vld [vmem:[%s4694_s3] sm:$0xff] }
  0xbb   : > { %v362_v45 = vsel %vm359_vm1, %v333_v42, %v357_v43 }
  0xbc   : > { %v2685_v46 = vpack.c.bf16 %v363_v44, %v362_v45  ;;  %v300_v44 = vld [vmem:[%s4694_s3 + $0x10] sm:$0xff] }
  0xbe   : > { %2686 = vmatprep.subr.bf16.mxu0 %v2685_v46 }
  0xbf   : > { %2688 = vmatpush3.bf16.msra.mxu0 %v2685_v46 }
  0xc2   : > { %2676 = vmatmul.mubr.msk.f32.vlgmr.msra.gmra.mrb[0].mxu0 %vm364_vm0, %v307_v47 }
  0xc3   : > { %2678 = vmatprep.mubr.msk.f32.mxu0 %vm364_vm0, %v308_v48  ;;  %v301_v48 = vld [vmem:[%s4694_s3 + $0x18] sm:$0xff] }
  0xc6   : > { %2679 = vmatmul.mubr.msk.f32.gmra.mrb[2].mxu0 %vm364_vm0, %v309_v49 }
  0xc7   : > { %678 = vmatprep.mubr.bf16.mxu0 %v4699_v21 }
 0x195   : > { %v3384_v50 = vpop.f32.mrb[0].mxu0 }
 0x196   : > { %v463_v51 = vmul.f32 %v3384_v50, %v3384_v50  ;;  %v3388_v52 = vpop.f32.mrb[1].mxu0 }
 0x197   : > { %v462_v53 = vmul.f32 %v3388_v52, %v3388_v52 }
 0x198   : > { %472 = vrot.lane.b32.xlu1 %v463_v51, %s3214_s9 }
 0x199   : > { %470 = vrot.lane.b32.xlu0 %v462_v53, %s3214_s9  ;;  %v3392_v54 = vpop.f32.mrb[2].mxu0 }
 0x19a   : > { %v3394_v55 = vpop.f32.mrb[3].mxu0  ;;  %v465_v59 = vmul.f32 %v3392_v54, %v3392_v54 }
 0x19b   : > { %v464_v57 = vmul.f32 %v3394_v55, %v3394_v55 }
 0x19d   : > { %474 = vrot.lane.b32.xlu1 %v464_v57, %s3214_s9  ;;  %502 = vrot.lane.b32.xlu0 %v294_v56, %s3214_s9 }
 0x1a1   : > { %476 = vrot.lane.b32.xlu1 %v465_v59, %s3214_s9  ;;  %506 = vrot.lane.b32.xlu0 %v296_v58, %s3214_s9 }
 0x1a5   : > { %504 = vrot.lane.b32.xlu1 %v295_v60, %s3214_s9 }
 0x1a9   : > { %508 = vrot.lane.b32.xlu1 %v297_v61, %s3214_s9  ;;  %s3154_s9 = sshll.u32 %s3218_s8, 4  ;;  %s3155_s9 = int_to_ptr.vmem [resolvable:$false] %s3154_s9 }
 0x1aa   : > { %s3156_s13 = scalar_lea.vmem %s3155_s9, 2048  ;;  %p3157_p0 = scmp.lt.s32.totalorder %s4642_s20, %s3155_s9 }
 0x1ab   : > { %p3158_p1 = scmp.lt.s32.totalorder %s3156_s13, %s3150_s29 }
 0x1ad   : > { %p3159_p2 = por %p3158_p1, %p3157_p0 }
 0x1af   : > { %p3160_p3 = pnand %p3159_p2, %p3153_p13 }
 0x20a   : > { %v473_v63 = vpop.permute.xlu1 %472 }
 0x20b   : > { %v483_v3 = vsub.f32 %v3384_v50, %v473_v63  ;;  %v471_v5 = vpop.permute.xlu0 %470 }
 0x20c   : > { %v482_v8 = vsub.f32 %v3388_v52, %v471_v5 }
 0x20d   : > { %v487_v9 = vmax.f32 %v483_v3, 0.0 }
 0x20e   : > { %v486_v10 = vmax.f32 %v482_v8, 0.0 }
 0x20f   : > { %v491_v11 = vadd.f32 1e-05, %v487_v9  ;;  %v475_v12 = vpop.permute.xlu1 %474  ;;  %v503_v24 = vpop.permute.xlu0 %502 }
 0x210   : > { %v490_v13 = vadd.f32 1e-05, %v486_v10  ;;  %v484_v16 = vsub.f32 %v3394_v55, %v475_v12 }
 0x211   : > { %2750 = vrsqrt.f32 %v491_v11 }
 0x212   : > { %2752 = vrsqrt.f32 %v490_v13  ;;  %v488_v17 = vmax.f32 %v484_v16, 0.0 }
 0x213   : > { %v477_v18 = vpop.permute.xlu1 %476  ;;  %v507_v30 = vpop.permute.xlu0 %506 }
 0x214   : > { %v492_v19 = vadd.f32 1e-05, %v488_v17  ;;  %v485_v20 = vsub.f32 %v3392_v54, %v477_v18 }
 0x216   : > { %2754 = vrsqrt.f32 %v492_v19  ;;  %v489_v22 = vmax.f32 %v485_v20, 0.0  ;;  %v2742_v20 = vld [vmem:[%s4695_s4] sm:$0xff]  }
 0x217   : > { %v505_v25 = vpop.permute.xlu1 %504 }
 0x218   : > { %v493_v23 = vadd.f32 1e-05, %v489_v22  ;;  %v2747_v22 = vld [vmem:[%s4695_s4 + $0x28] sm:$0xff]  }
 0x21a   : > { %2756 = vrsqrt.f32 %v493_v23 }
 0x21b   : > { %v2751_v26 = vpop.eup %2750  ;;  %v509_v33 = vpop.permute.xlu1 %508 }
 0x21c   : > { %v2753_v27 = vpop.eup %2752  ;;  %v515_v28 = vmul.f32 %v2751_v26, %v505_v25 }
 0x21d   : > { %v514_v29 = vmul.f32 %v2753_v27, %v503_v24 }
 0x21e   : > { %524 = vrot.lane.b32.xlu1 %v515_v28, %s3217_s22 }
 0x21f   : > { %522 = vrot.lane.b32.xlu0 %v514_v29, %s3217_s22 }
 0x220   : > { %v2755_v31 = vpop.eup %2754 }
 0x221   : > { %v516_v32 = vmul.f32 %v2755_v31, %v507_v30 }
 0x223   : > { %526 = vrot.lane.b32.xlu0 %v516_v32, %s3217_s22 }
 0x224   : > { %v2757_v34 = vpop.eup %2756 }
 0x225   : > { %v517_v35 = vmul.f32 %v2757_v34, %v509_v33 }
 0x227   : > { %543 = vperm.xlu0 %2738, %v514_v29   ;;  %528 = vrot.lane.b32.xlu1 %v517_v35, %s3217_s22 }
 0x22b   : > { %547 = vperm.xlu1 %2739, %v515_v28   ;;  %2740 = vset.pattern.permute.xlu0 %v4699_v21 }
 0x22f   : > { %555 = vperm.xlu1 %2739, %v517_v35  }
 0x233   : > { %551 = vperm.xlu1 %2739, %v516_v32  }
 0x237   : > { %2741 = vset.pattern.permute.xlu1 %v4699_v21 }
 0x290   : > { %v525_v37 = vpop.permute.xlu1 %524 }
 0x291   : > { %v535_v38 = vmul.f32 %v3384_v50, %v525_v37  ;;  %v523_v40 = vpop.permute.xlu0 %522 }
 0x292   : > { %v534_v41 = vmul.f32 %v523_v40, %v3388_v52 }
 0x293   : > { %v539_v42 = vsub.f32 %v299_v36, %v535_v38 }
 0x294   : > { %v538_v43 = vsub.f32 %v298_v39, %v534_v41 }
 0x295   : > { %v527_v45 = vpop.permute.xlu0 %526  ;;  %573 = vperm.xlu0 %2740, %v539_v42  }
 0x296   : > { %v536_v46 = vmul.f32 %v527_v45, %v3394_v55  ;;  %568 = vperm.xlu1 %2741, %v538_v43  }
 0x298   : > { %v540_v47 = vsub.f32 %v300_v44, %v536_v46 }
 0x299   : > { %v529_v49 = vpop.permute.xlu1 %528 }
 0x29a   : > { %v537_v50 = vmul.f32 %v3392_v54, %v529_v49  ;;  %578 = vperm.xlu0 %2740, %v540_v47  }
 0x29c   : > { %v541_v51 = vsub.f32 %v301_v48, %v537_v50 }
 0x29e   : > { %583 = vperm.xlu1 %2741, %v541_v51  }
 0x2a6   : > { %v544_v56 = vpop.permute.xlu0 %543 }
 0x2a7   : > { %v558_v59 = vmul.f32 %v544_v56, %v3323_v2  ;;  %v559_v60 = vmul.f32 %v544_v56, %v3328_v4 }
 0x2aa   : > { %v548_v52 = vpop.permute.xlu1 %547 }
 0x2ab   : > { %v560_v58 = vmul.f32 %v548_v52, %v3333_v6  ;;  %v561_v55 = vmul.f32 %v548_v52, %v3336_v7 }
 0x2ae   : > { %v556_v53 = vpop.permute.xlu1 %555 }
 0x2af   : > { %v564_v6 = vmul.f32 %v556_v53, %v3317_v0  ;;  %v565_v7 = vmul.f32 %v556_v53, %v3320_v1  ;;  %v2743_v0 = vld [vmem:[%s4695_s4 + $0x8] sm:$0xff]   ;;  %v2744_v1 = vld [vmem:[%s4695_s4 + $0x10] sm:$0xff]  }
 0x2b2   : > { %v552_v57 = vpop.permute.xlu1 %551 }
 0x2b3   : > { %v562_v2 = vmul.f32 %v552_v57, %v3349_v14  ;;  %v563_v4 = vmul.f32 %v552_v57, %v3352_v15  ;;  %v2745_v14 = vld [vmem:[%s4695_s4 + $0x18] sm:$0xff]   ;;  %v2746_v15 = vld [vmem:[%s4695_s4 + $0x20] sm:$0xff]  }
 0x314   : > { %v574_v61 = vpop.permute.xlu0 %573 }
 0x315   : > { %v588_v62 = vadd.f32 %v574_v61, %v560_v58  ;;  %v589_v63 = vadd.f32 %v574_v61, %v561_v55  ;;  %v569_v3 = vpop.permute.xlu1 %568 }
 0x316   : > { %v586_v54 = vadd.f32 %v569_v3, %v558_v59  ;;  %v587_v5 = vadd.f32 %v569_v3, %v559_v60 }
 0x318   : > { %v594_v8 = vpack.c.bf16 %v588_v62, %v586_v54  ;;  %v595_v9 = vpack.c.bf16 %v589_v63, %v587_v5 }
 0x319   : > { %v579_v10 = vpop.permute.xlu0 %578 }
 0x31a   : > { %646 = vmatprep.subr.bf16.mxu0 %v595_v9  ;;  %2689 = vmatprep.subr.bf16.mxu1 %v595_v9  ;;  %v590_v12 = vadd.f32 %v579_v10, %v562_v2  ;;  %v591_v13 = vadd.f32 %v579_v10, %v563_v4 }
 0x31b   : > { %647 = vmatpush1.bf16.msra.mxu0 %v594_v8  ;;  %2691 = vmatpush1.bf16.msra.mxu1 %v594_v8 }
 0x31d   : > { %v584_v11 = vpop.permute.xlu1 %583 }
 0x31e   : > { %v592_v16 = vadd.f32 %v584_v11, %v564_v6  ;;  %v593_v17 = vadd.f32 %v584_v11, %v565_v7 }
 0x320   : > { %v596_v18 = vpack.c.bf16 %v592_v16, %v590_v12  ;;  %v597_v19 = vpack.c.bf16 %v593_v17, %v591_v13 }
 0x322   : > { %648 = vmatprep.subr.bf16.mxu0 %v597_v19  ;;  %2690 = vmatprep.subr.bf16.mxu1 %v597_v19 }
 0x323   : > { %649 = vmatpush1.bf16.msra.mxu0 %v596_v18  ;;  %2692 = vmatpush1.bf16.msra.mxu1 %v596_v18 }
 0x326   : > { %2610 = vmatmul.mubr.msk.bf16.vlgmr.msra.gmra.mrb[4].mxu0 %vm364_vm0, %v2742_v20  ;;  %2611 = vmatmul.mubr.msk.bf16.vlgmr.msra.gmra.mrb[0].mxu1 %vm364_vm0, %v2743_v0 }
 0x327   : > { %698 = vmatprep.mubr.bf16.mxu1 %v4699_v21  ;;  %864 = vmatprep.mubr.bf16.mxu0 %v4699_v21 }
 0x32e   : > { %2612 = vmatmul.mubr.msk.bf16.gmra.mrb[4].mxu1 %vm364_vm0, %v2744_v1 }
 0x32f   : > { %708 = vmatprep.mubr.bf16.mxu1 %v4699_v21 }
 0x336   : > { %2613 = vmatmul.mubr.msk.bf16.gmra.mrb[8].mxu1 %vm364_vm0, %v2745_v14 }
 0x337   : > { %718 = vmatprep.mubr.bf16.mxu1 %v4699_v21 }
 0x33e   : > { %2614 = vmatmul.mubr.msk.bf16.gmra.mrb[12].mxu1 %vm364_vm0, %v2746_v15 }
 0x33f   : > { %728 = vmatprep.mubr.bf16.mxu1 %v4699_v21 }
 0x346   : > { %2615 = vmatmul.mubr.msk.bf16.gmra.mrb[16].mxu1 %vm364_vm0, %v2747_v22 }
 0x347   : > { %1137 = vmatprep.mubr.bf16.mxu1 %v4699_v21 }
 0x3f9   : > { %v680_v23 = vpop.f32.mrb[4].mxu0  ;;  %v690_v24 = vpop.f32.mrb[0].mxu1 }
 0x3fa   : > { %v682_v25 = vpop.f32.mrb[5].mxu0  ;;  %v692_v26 = vpop.f32.mrb[1].mxu1 }
 0x3fb   : > { %v684_v27 = vpop.f32.mrb[6].mxu0  ;;  %v694_v28 = vpop.f32.mrb[2].mxu1 }
 0x3fc   : > { %v739_v29 = vpack.c.bf16 %v684_v27, %v680_v23  ;;  %v741_v30 = vpack.c.bf16 %v694_v28, %v690_v24  ;;  %v686_v31 = vpop.f32.mrb[7].mxu0  ;;  %v696_v32 = vpop.f32.mrb[3].mxu1 }
 0x3fd   : > { %v740_v33 = vpack.c.bf16 %v686_v31, %v682_v25  ;;  %v742_v34 = vpack.c.bf16 %v696_v32, %v692_v26 }
 0x3fe   : > { %1025 = vxpose.xlu1.c.b16.start.end [1/1] (short) %v741_v30, 128  ;;  %751 = vxpose.xlu0.c.b16.start.end [1/1] (short) %v739_v29, 128 }
 0x401   : > { %v700_v35 = vpop.f32.mrb[4].mxu1 }
 0x402   : > { %v702_v36 = vpop.f32.mrb[5].mxu1 }
 0x403   : > { %v704_v37 = vpop.f32.mrb[6].mxu1 }
 0x404   : > { %v743_v38 = vpack.c.bf16 %v704_v37, %v700_v35  ;;  %v706_v39 = vpop.f32.mrb[7].mxu1 }
 0x405   : > { %v744_v40 = vpack.c.bf16 %v706_v39, %v702_v36 }
 0x407   : > { %832 = vmatprep.subr.bf16.mxu0 %v744_v40 }
 0x408   : > { %833 = vmatpush1.bf16.msra.mxu0 %v743_v38 }
 0x409   : > { %v710_v41 = vpop.f32.mrb[8].mxu1 }
 0x40a   : > { %v712_v42 = vpop.f32.mrb[9].mxu1 }
 0x40b   : > { %v714_v43 = vpop.f32.mrb[10].mxu1 }
 0x40c   : > { %v745_v44 = vpack.c.bf16 %v714_v43, %v710_v41  ;;  %v716_v45 = vpop.f32.mrb[11].mxu1 }
 0x40d   : > { %v746_v46 = vpack.c.bf16 %v716_v45, %v712_v42 }
 0x40f   : > { %1105 = vmatprep.subr.bf16.mxu1 %v746_v46 }
 0x410   : > { %1106 = vmatpush1.bf16.msra.mxu1 %v745_v44 }
 0x411   : > { %v3482_v52 = vpop.f32.mrb[12].mxu1 }
 0x412   : > { %4865 = vst [vmem:[#allocation5_spill] sm:$0xff] %v3482_v52  ;;  %v3484_v56 = vpop.f32.mrb[13].mxu1 }
 0x413   : > { %v3486_v57 = vpop.f32.mrb[14].mxu1 }
 0x414   : > { %4866 = vst [vmem:[#allocation6_spill] sm:$0xff] %v3486_v57  ;;  %v3492_v55 = vpop.f32.mrb[15].mxu1 }
 0x415   : > { %v748_v59 = vpack.c.bf16 %v3492_v55, %v3484_v56 }
 0x419   : > { %v3498_v61 = vpop.f32.mrb[16].mxu1 }
 0x41a   : > { %4867 = vst [vmem:[#allocation7_spill] sm:$0xff] %v3498_v61  ;;  %v3500_v63 = vpop.f32.mrb[17].mxu1 }
 0x41b   : > { %1041 = vxpose.xlu1.c.b16.start.end [1/1] (short) %v742_v34, 128  ;;  %767 = vxpose.xlu0.c.b16.start.end [1/1] (short) %v740_v33, 128  ;;  %v3502_v3 = vpop.f32.mrb[18].mxu1 }
 0x41c   : > { %4868 = vst [vmem:[#allocation8_spill] sm:$0xff] %v3502_v3  ;;  %v3508_v5 = vpop.f32.mrb[19].mxu1 }
 0x41d   : > { %v750_v8 = vpack.c.bf16 %v3508_v5, %v3500_v63 }
 0x464   : > { %v759_v47 = vpop.trf.xlu0  ;;  %v1033_v48 = vpop.trf.xlu1 }
 0x465   : > { %2616 = vmatmul.mubr.msk.bf16.vlgmr.msra.gmra.mrb[8].mxu0 %vm783_vm2, %v759_v47  ;;  %2632 = vmatmul.mubr.msk.bf16.vlgmr.msra.gmra.mrb[20].mxu1 %vm783_vm2, %v1033_v48 }
 0x466   : > { %874 = vmatprep.mubr.bf16.mxu0 %v4699_v21  ;;  %1147 = vmatprep.mubr.bf16.mxu1 %v4699_v21 }
 0x468   : > { %v760_v49 = vpop.trf.xlu0  ;;  %v1034_v50 = vpop.trf.xlu1 }
 0x46c   : > { %v761_v51 = vpop.trf.xlu0  ;;  %v1035_v53 = vpop.trf.xlu1 }
 0x46d   : > { %2617 = vmatmul.mubr.msk.bf16.gmra.mrb[12].mxu0 %vm783_vm2, %v760_v49  ;;  %2633 = vmatmul.mubr.msk.bf16.gmra.mrb[24].mxu1 %vm783_vm2, %v1034_v50 }
 0x46e   : > { %884 = vmatprep.mubr.bf16.mxu0 %v4699_v21  ;;  %1157 = vmatprep.mubr.bf16.mxu1 %v4699_v21 }
 0x470   : > { %v762_v60 = vpop.trf.xlu0  ;;  %v1036_v62 = vpop.trf.xlu1 }
 0x474   : > { %v763_v9 = vpop.trf.xlu0  ;;  %v1037_v10 = vpop.trf.xlu1 }
 0x475   : > { %2618 = vmatmul.mubr.msk.bf16.gmra.mrb[16].mxu0 %vm783_vm2, %v761_v51  ;;  %2634 = vmatmul.mubr.msk.bf16.gmra.mrb[28].mxu1 %vm783_vm2, %v1035_v53 }
 0x476   : > { %894 = vmatprep.mubr.bf16.mxu0 %v4699_v21  ;;  %1167 = vmatprep.mubr.bf16.mxu1 %v4699_v21 }
 0x478   : > { %v764_v6 = vpop.trf.xlu0  ;;  %v1038_v7 = vpop.trf.xlu1 }
 0x47c   : > { %v765_v2 = vpop.trf.xlu0  ;;  %v1039_v4 = vpop.trf.xlu1 }
 0x47d   : > { %2619 = vmatmul.mubr.msk.bf16.gmra.mrb[20].mxu0 %vm783_vm2, %v762_v60  ;;  %2635 = vmatmul.mubr.msk.bf16.gmra.mrb[32].mxu1 %vm783_vm2, %v1036_v62 }
 0x47e   : > { %904 = vmatprep.mubr.bf16.mxu0 %v4699_v21  ;;  %1177 = vmatprep.mubr.bf16.mxu1 %v4699_v21 }
 0x480   : > { %v766_v11 = vpop.trf.xlu0  ;;  %v1040_v12 = vpop.trf.xlu1 }
 0x484   : > { %v775_v13 = vpop.trf.xlu0  ;;  %v1049_v16 = vpop.trf.xlu1 }
 0x485   : > { %2620 = vmatmul.mubr.msk.bf16.gmra.mrb[24].mxu0 %vm783_vm2, %v763_v9  ;;  %2636 = vmatmul.mubr.msk.bf16.gmra.mrb[36].mxu1 %vm783_vm2, %v1037_v10 }
 0x486   : > { %914 = vmatprep.mubr.bf16.mxu0 %v4699_v21  ;;  %1187 = vmatprep.mubr.bf16.mxu1 %v4699_v21 }
 0x488   : > { %v776_v17 = vpop.trf.xlu0  ;;  %v1050_v18 = vpop.trf.xlu1 }
 0x48c   : > { %v777_v19 = vpop.trf.xlu0  ;;  %v1051_v20 = vpop.trf.xlu1 }
 0x48d   : > { %2621 = vmatmul.mubr.msk.bf16.gmra.mrb[28].mxu0 %vm783_vm2, %v764_v6  ;;  %2637 = vmatmul.mubr.msk.bf16.gmra.mrb[40].mxu1 %vm783_vm2, %v1038_v7 }
 0x48e   : > { %924 = vmatprep.mubr.bf16.mxu0 %v4699_v21  ;;  %1197 = vmatprep.mubr.bf16.mxu1 %v4699_v21 }
 0x490   : > { %v778_v0 = vpop.trf.xlu0  ;;  %v1052_v1 = vpop.trf.xlu1 }
 0x494   : > { %v779_v14 = vpop.trf.xlu0  ;;  %v1053_v15 = vpop.trf.xlu1 }
 0x495   : > { %2622 = vmatmul.mubr.msk.bf16.gmra.mrb[32].mxu0 %vm783_vm2, %v765_v2  ;;  %2638 = vmatmul.mubr.msk.bf16.gmra.mrb[44].mxu1 %vm783_vm2, %v1039_v4 }
 0x496   : > { %934 = vmatprep.mubr.bf16.mxu0 %v4699_v21  ;;  %1207 = vmatprep.mubr.bf16.mxu1 %v4699_v21 }
 0x498   : > { %v780_v22 = vpop.trf.xlu0  ;;  %v1054_v23 = vpop.trf.xlu1 }
 0x49c   : > { %v781_v24 = vpop.trf.xlu0  ;;  %v1055_v25 = vpop.trf.xlu1 }
 0x49d   : > { %2623 = vmatmul.mubr.msk.bf16.gmra.mrb[36].mxu0 %vm783_vm2, %v766_v11  ;;  %2639 = vmatmul.mubr.msk.bf16.gmra.mrb[48].mxu1 %vm783_vm2, %v1040_v12 }
 0x49e   : > { %944 = vmatprep.mubr.bf16.mxu0 %v4699_v21  ;;  %1217 = vmatprep.mubr.bf16.mxu1 %v4699_v21 }
 0x4a0   : > { %v782_v26 = vpop.trf.xlu0  ;;  %v1056_v27 = vpop.trf.xlu1 }
 0x4a5   : > { %2624 = vmatmul.mubr.msk.bf16.gmra.mrb[40].mxu0 %vm783_vm2, %v775_v13  ;;  %2640 = vmatmul.mubr.msk.bf16.gmra.mrb[52].mxu1 %vm783_vm2, %v1049_v16 }
 0x4a6   : > { %954 = vmatprep.mubr.bf16.mxu0 %v4699_v21  ;;  %1227 = vmatprep.mubr.bf16.mxu1 %v4699_v21 }
 0x4ad   : > { %2625 = vmatmul.mubr.msk.bf16.gmra.mrb[44].mxu0 %vm783_vm2, %v776_v17  ;;  %2641 = vmatmul.mubr.msk.bf16.gmra.mrb[56].mxu1 %vm783_vm2, %v1050_v18 }
 0x4ae   : > { %964 = vmatprep.mubr.bf16.mxu0 %v4699_v21  ;;  %1237 = vmatprep.mubr.bf16.mxu1 %v4699_v21 }
 0x4b5   : > { %2626 = vmatmul.mubr.msk.bf16.gmra.mrb[48].mxu0 %vm783_vm2, %v777_v19  ;;  %2642 = vmatmul.mubr.msk.bf16.gmra.mrb[60].mxu1 %vm783_vm2, %v1051_v20 }
 0x4b6   : > { %974 = vmatprep.mubr.bf16.mxu0 %v4699_v21  ;;  %1247 = vmatprep.mubr.bf16.mxu1 %v4699_v21 }
 0x4bd   : > { %2627 = vmatmul.mubr.msk.bf16.gmra.mrb[52].mxu0 %vm783_vm2, %v778_v0  ;;  %2643 = vmatmul.mubr.msk.bf16.gmra.mrb[64].mxu1 %vm783_vm2, %v1052_v1 }
 0x4be   : > { %984 = vmatprep.mubr.bf16.mxu0 %v4699_v21  ;;  %1257 = vmatprep.mubr.bf16.mxu1 %v4699_v21 }
 0x4c5   : > { %2628 = vmatmul.mubr.msk.bf16.gmra.mrb[56].mxu0 %vm783_vm2, %v779_v14  ;;  %2644 = vmatmul.mubr.msk.bf16.gmra.mrb[68].mxu1 %vm783_vm2, %v1053_v15 }
 0x4c6   : > { %994 = vmatprep.mubr.bf16.mxu0 %v4699_v21  ;;  %1267 = vmatprep.mubr.bf16.mxu1 %v4699_v21 }
 0x4cd   : > { %2629 = vmatmul.mubr.msk.bf16.gmra.mrb[60].mxu0 %vm783_vm2, %v780_v22  ;;  %2645 = vmatmul.mubr.msk.bf16.gmra.mrb[72].mxu1 %vm783_vm2, %v1054_v23 }
 0x4ce   : > { %1004 = vmatprep.mubr.bf16.mxu0 %v4699_v21  ;;  %1277 = vmatprep.mubr.bf16.mxu1 %v4699_v21 }
 0x4d5   : > { %2630 = vmatmul.mubr.msk.bf16.gmra.mrb[64].mxu0 %vm783_vm2, %v781_v24  ;;  %2646 = vmatmul.mubr.msk.bf16.gmra.mrb[76].mxu1 %vm783_vm2, %v1055_v25 }
 0x4d6   : > { %1014 = vmatprep.mubr.bf16.mxu0 %v4699_v21  ;;  %1287 = vmatprep.mubr.bf16.mxu1 %v4699_v21 }
 0x4dd   : > { %2631 = vmatmul.mubr.msk.bf16.gmra.mrb[68].mxu0 %vm783_vm2, %v782_v26  ;;  %2647 = vmatmul.mubr.msk.bf16.gmra.mrb[80].mxu1 %vm783_vm2, %v1056_v27 }
 0x4de   : > { %2354 = vmatprep.mubr.bf16.mxu0 %v748_v59  ;;  %2397 = vmatprep.mubr.bf16.mxu1 %v750_v8 }
 0x538   : > { %v3566_v28 = vpop.f32.mrb[8].mxu0  ;;  %v3568_v29 = vpop.f32.mrb[20].mxu1 }
 0x539   : > { %v3570_v30 = vpop.f32.mrb[9].mxu0  ;;  %v3572_v31 = vpop.f32.mrb[21].mxu1 }
 0x53a   : > { %v3574_v32 = vpop.f32.mrb[10].mxu0  ;;  %v3576_v33 = vpop.f32.mrb[22].mxu1  ;;  %v1298_v34 = vmax.f32 %v3566_v28, %v3570_v30  ;;  %v1394_v35 = vmax.f32 %v3568_v29, %v3572_v31 }
 0x53b   : > { %v3582_v36 = vpop.f32.mrb[11].mxu0  ;;  %v3584_v37 = vpop.f32.mrb[23].mxu1 }
 0x53c   : > { %1299 = vmax.xlane.f32.xlu0 %v1298_v34  ;;  %v1301_v38 = vmax.f32 %v3574_v32, %v3582_v36  ;;  %v1397_v39 = vmax.f32 %v3576_v33, %v3584_v37 }
 0x53e   : > { %1302 = vmax.xlane.f32.xlu1 %v1301_v38 }
 0x540   : > { %v3590_v40 = vpop.f32.mrb[12].mxu0  ;;  %1395 = vmax.xlane.f32.xlu0 %v1394_v35  ;;  %v3592_v41 = vpop.f32.mrb[24].mxu1 }
 0x541   : > { %v3594_v42 = vpop.f32.mrb[13].mxu0  ;;  %v3596_v43 = vpop.f32.mrb[25].mxu1 }
 0x542   : > { %v3598_v44 = vpop.f32.mrb[14].mxu0  ;;  %v3600_v45 = vpop.f32.mrb[26].mxu1  ;;  %v1304_v46 = vmax.f32 %v3590_v40, %v3594_v42  ;;  %v1400_v47 = vmax.f32 %v3592_v41, %v3596_v43 }
 0x543   : > { %v3606_v48 = vpop.f32.mrb[15].mxu0  ;;  %v3608_v49 = vpop.f32.mrb[27].mxu1 }
 0x544   : > { %1398 = vmax.xlane.f32.xlu0 %v1397_v39  ;;  %v1307_v50 = vmax.f32 %v3598_v44, %v3606_v48  ;;  %v1403_v51 = vmax.f32 %v3600_v45, %v3608_v49 }
 0x546   : > { %1308 = vmax.xlane.f32.xlu1 %v1307_v50 }
 0x548   : > { %v3614_v53 = vpop.f32.mrb[16].mxu0  ;;  %1305 = vmax.xlane.f32.xlu0 %v1304_v46  ;;  %v3616_v56 = vpop.f32.mrb[28].mxu1 }
 0x549   : > { %v3618_v55 = vpop.f32.mrb[17].mxu0  ;;  %v3620_v59 = vpop.f32.mrb[29].mxu1 }
 0x54a   : > { %1404 = vmax.xlane.f32.xlu1 %v1403_v51  ;;  %v3622_v60 = vpop.f32.mrb[18].mxu0  ;;  %v3624_v62 = vpop.f32.mrb[30].mxu1  ;;  %v1310_v63 = vmax.f32 %v3614_v53, %v3618_v55  ;;  %v1406_v5 = vmax.f32 %v3616_v56, %v3620_v59 }
 0x54b   : > { %v3630_v8 = vpop.f32.mrb[19].mxu0  ;;  %v3632_v9 = vpop.f32.mrb[31].mxu1 }
 0x54c   : > { %1401 = vmax.xlane.f32.xlu0 %v1400_v47  ;;  %v1313_v10 = vmax.f32 %v3622_v60, %v3630_v8  ;;  %v1409_v6 = vmax.f32 %v3624_v62, %v3632_v9 }
 0x54e   : > { %1314 = vmax.xlane.f32.xlu1 %v1313_v10 }
 0x550   : > { %v3638_v7 = vpop.f32.mrb[20].mxu0  ;;  %1311 = vmax.xlane.f32.xlu0 %v1310_v63  ;;  %v3640_v2 = vpop.f32.mrb[32].mxu1 }
 0x551   : > { %v3642_v4 = vpop.f32.mrb[21].mxu0  ;;  %v3644_v11 = vpop.f32.mrb[33].mxu1 }
 0x552   : > { %1410 = vmax.xlane.f32.xlu1 %v1409_v6  ;;  %v3646_v12 = vpop.f32.mrb[22].mxu0  ;;  %v3648_v13 = vpop.f32.mrb[34].mxu1  ;;  %v1316_v16 = vmax.f32 %v3638_v7, %v3642_v4  ;;  %v1412_v17 = vmax.f32 %v3640_v2, %v3644_v11 }
 0x553   : > { %v3654_v18 = vpop.f32.mrb[23].mxu0  ;;  %v3656_v19 = vpop.f32.mrb[35].mxu1 }
 0x554   : > { %1407 = vmax.xlane.f32.xlu0 %v1406_v5  ;;  %v1319_v20 = vmax.f32 %v3646_v12, %v3654_v18  ;;  %v1415_v0 = vmax.f32 %v3648_v13, %v3656_v19 }
 0x556   : > { %1320 = vmax.xlane.f32.xlu1 %v1319_v20 }
 0x558   : > { %v3662_v1 = vpop.f32.mrb[24].mxu0  ;;  %1317 = vmax.xlane.f32.xlu0 %v1316_v16  ;;  %v3664_v14 = vpop.f32.mrb[36].mxu1 }
 0x559   : > { %v3666_v15 = vpop.f32.mrb[25].mxu0  ;;  %v3668_v22 = vpop.f32.mrb[37].mxu1 }
 0x55a   : > { %1416 = vmax.xlane.f32.xlu1 %v1415_v0  ;;  %v3670_v23 = vpop.f32.mrb[26].mxu0  ;;  %v3672_v24 = vpop.f32.mrb[38].mxu1  ;;  %v1322_v25 = vmax.f32 %v3662_v1, %v3666_v15  ;;  %v1418_v26 = vmax.f32 %v3664_v14, %v3668_v22 }
 0x55b   : > { %v3678_v27 = vpop.f32.mrb[27].mxu0  ;;  %v3680_v34 = vpop.f32.mrb[39].mxu1 }
 0x55c   : > { %1413 = vmax.xlane.f32.xlu0 %v1412_v17  ;;  %v1325_v35 = vmax.f32 %v3670_v23, %v3678_v27  ;;  %v1421_v38 = vmax.f32 %v3672_v24, %v3680_v34 }
 0x55e   : > { %1326 = vmax.xlane.f32.xlu1 %v1325_v35 }
 0x560   : > { %v3686_v39 = vpop.f32.mrb[28].mxu0  ;;  %1323 = vmax.xlane.f32.xlu0 %v1322_v25  ;;  %v3688_v46 = vpop.f32.mrb[40].mxu1 }
 0x561   : > { %v3690_v47 = vpop.f32.mrb[29].mxu0  ;;  %v3692_v50 = vpop.f32.mrb[41].mxu1 }
 0x562   : > { %1422 = vmax.xlane.f32.xlu1 %v1421_v38  ;;  %v3694_v51 = vpop.f32.mrb[30].mxu0  ;;  %v3696_v63 = vpop.f32.mrb[42].mxu1  ;;  %v1328_v5 = vmax.f32 %v3686_v39, %v3690_v47  ;;  %v1424_v10 = vmax.f32 %v3688_v46, %v3692_v50 }
 0x563   : > { %v3702_v6 = vpop.f32.mrb[31].mxu0  ;;  %v3704_v16 = vpop.f32.mrb[43].mxu1 }
 0x564   : > { %1419 = vmax.xlane.f32.xlu0 %v1418_v26  ;;  %v1331_v17 = vmax.f32 %v3694_v51, %v3702_v6  ;;  %v1427_v20 = vmax.f32 %v3696_v63, %v3704_v16 }
 0x566   : > { %1332 = vmax.xlane.f32.xlu1 %v1331_v17 }
 0x568   : > { %v3710_v0 = vpop.f32.mrb[32].mxu0  ;;  %1329 = vmax.xlane.f32.xlu0 %v1328_v5  ;;  %v3712_v25 = vpop.f32.mrb[44].mxu1 }
 0x569   : > { %4869 = vst [vmem:[#allocation9_spill] sm:$0xff] %v3710_v0  ;;  %4870 = vst [vmem:[#allocation10_spill] sm:$0xff] %v3712_v25  ;;  %v3714_v35 = vpop.f32.mrb[33].mxu0  ;;  %v3716_v38 = vpop.f32.mrb[45].mxu1 }
 0x56a   : > { %4871 = vst [vmem:[#allocation11_spill] sm:$0xff] %v3714_v35  ;;  %4872 = vst [vmem:[#allocation12_spill] sm:$0xff] %v3716_v38  ;;  %1428 = vmax.xlane.f32.xlu1 %v1427_v20  ;;  %v3718_v54 = vpop.f32.mrb[34].mxu0  ;;  %v3720_v26 = vpop.f32.mrb[46].mxu1  ;;  %v1334_v21 = vmax.f32 %v3710_v0, %v3714_v35  ;;  %v1430_v17 = vmax.f32 %v3712_v25, %v3716_v38 }
 0x56b   : > { %4873 = vst [vmem:[#allocation13_spill] sm:$0xff] %v3718_v54  ;;  %4874 = vst [vmem:[#allocation14_spill] sm:$0xff] %v3720_v26  ;;  %v3726_v58 = vpop.f32.mrb[35].mxu0  ;;  %v3728_v5 = vpop.f32.mrb[47].mxu1 }
 0x56c   : > { %4875 = vst [vmem:[#allocation15_spill] sm:$0xff] %v3726_v58  ;;  %4876 = vst [vmem:[#allocation16_spill] sm:$0xff] %v3728_v5  ;;  %1425 = vmax.xlane.f32.xlu0 %v1424_v10  ;;  %v1337_v61 = vmax.f32 %v3718_v54, %v3726_v58  ;;  %v1433_v20 = vmax.f32 %v3720_v26, %v3728_v5 }
 0x56e   : > { %1338 = vmax.xlane.f32.xlu1 %v1337_v61 }
 0x570   : > { %v3734_v3 = vpop.f32.mrb[36].mxu0  ;;  %1335 = vmax.xlane.f32.xlu0 %v1334_v21  ;;  %v3736_v52 = vpop.f32.mrb[48].mxu1 }
 0x571   : > { %4877 = vst [vmem:[#allocation17_spill] sm:$0xff] %v3734_v3  ;;  %4878 = vst [vmem:[#allocation18_spill] sm:$0xff] %v3736_v52  ;;  %v3738_v57 = vpop.f32.mrb[37].mxu0  ;;  %v3740_v38 = vpop.f32.mrb[49].mxu1 }
 0x572   : > { %4879 = vst [vmem:[#allocation19_spill] sm:$0xff] %v3738_v57  ;;  %4880 = vst [vmem:[#allocation20_spill] sm:$0xff] %v3740_v38  ;;  %1434 = vmax.xlane.f32.xlu1 %v1433_v20  ;;  %v3742_v25 = vpop.f32.mrb[38].mxu0  ;;  %v3744_v10 = vpop.f32.mrb[50].mxu1  ;;  %v1340_v35 = vmax.f32 %v3734_v3, %v3738_v57  ;;  %v1436_v61 = vmax.f32 %v3736_v52, %v3740_v38 }
 0x573   : > { %4881 = vst [vmem:[#allocation21_spill] sm:$0xff] %v3742_v25  ;;  %4882 = vst [vmem:[#allocation22_spill] sm:$0xff] %v3744_v10  ;;  %v3750_v5 = vpop.f32.mrb[39].mxu0  ;;  %v3752_v21 = vpop.f32.mrb[51].mxu1 }
 0x574   : > { %4883 = vst [vmem:[#allocation23_spill] sm:$0xff] %v3750_v5  ;;  %4884 = vst [vmem:[#allocation24_spill] sm:$0xff] %v3752_v21  ;;  %1431 = vmax.xlane.f32.xlu0 %v1430_v17  ;;  %v1343_v26 = vmax.f32 %v3742_v25, %v3750_v5  ;;  %v1439_v20 = vmax.f32 %v3744_v10, %v3752_v21 }
 0x576   : > { %1344 = vmax.xlane.f32.xlu1 %v1343_v26 }
 0x578   : > { %1341 = vmax.xlane.f32.xlu0 %v1340_v35  ;;  %v3758_v0 = vpop.f32.mrb[40].mxu0  ;;  %v3760_v58 = vpop.f32.mrb[52].mxu1 }
 0x579   : > { %4885 = vst [vmem:[#allocation25_spill] sm:$0xff] %v3758_v0  ;;  %4886 = vst [vmem:[#allocation26_spill] sm:$0xff] %v3760_v58  ;;  %v3762_v57 = vpop.f32.mrb[41].mxu0  ;;  %v3764_v38 = vpop.f32.mrb[53].mxu1 }
 0x57a   : > { %4887 = vst [vmem:[#allocation27_spill] sm:$0xff] %v3762_v57  ;;  %4888 = vst [vmem:[#allocation28_spill] sm:$0xff] %v3764_v38  ;;  %1440 = vmax.xlane.f32.xlu1 %v1439_v20  ;;  %v3766_v52 = vpop.f32.mrb[42].mxu0  ;;  %v3768_v17 = vpop.f32.mrb[54].mxu1  ;;  %v1346_v3 = vmax.f32 %v3758_v0, %v3762_v57  ;;  %v1442_v26 = vmax.f32 %v3760_v58, %v3764_v38 }
 0x57b   : > { %4889 = vst [vmem:[#allocation29_spill] sm:$0xff] %v3766_v52  ;;  %4890 = vst [vmem:[#allocation30_spill] sm:$0xff] %v3768_v17  ;;  %v3774_v35 = vpop.f32.mrb[43].mxu0  ;;  %v3776_v21 = vpop.f32.mrb[55].mxu1 }
 0x57c   : > { %4891 = vst [vmem:[#allocation31_spill] sm:$0xff] %v3774_v35  ;;  %4892 = vst [vmem:[#allocation32_spill] sm:$0xff] %v3776_v21  ;;  %1437 = vmax.xlane.f32.xlu0 %v1436_v61  ;;  %v1349_v10 = vmax.f32 %v3766_v52, %v3774_v35  ;;  %v1445_v20 = vmax.f32 %v3768_v17, %v3776_v21 }
 0x57e   : > { %1350 = vmax.xlane.f32.xlu1 %v1349_v10 }
 0x580   : > { %1347 = vmax.xlane.f32.xlu0 %v1346_v3  ;;  %v3782_v5 = vpop.f32.mrb[44].mxu0  ;;  %v3784_v25 = vpop.f32.mrb[56].mxu1 }
 0x581   : > { %4893 = vst [vmem:[#allocation33_spill] sm:$0xff] %v3782_v5  ;;  %4894 = vst [vmem:[#allocation34_spill] sm:$0xff] %v3784_v25  ;;  %v3786_v57 = vpop.f32.mrb[45].mxu0  ;;  %v3788_v38 = vpop.f32.mrb[57].mxu1 }
 0x582   : > { %4895 = vst [vmem:[#allocation35_spill] sm:$0xff] %v3786_v57  ;;  %4896 = vst [vmem:[#allocation36_spill] sm:$0xff] %v3788_v38  ;;  %1446 = vmax.xlane.f32.xlu1 %v1445_v20  ;;  %v3790_v58 = vpop.f32.mrb[46].mxu0  ;;  %v3792_v61 = vpop.f32.mrb[58].mxu1  ;;  %v1352_v0 = vmax.f32 %v3782_v5, %v3786_v57  ;;  %v1448_v10 = vmax.f32 %v3784_v25, %v3788_v38 }
 0x583   : > { %4897 = vst [vmem:[#allocation37_spill] sm:$0xff] %v3790_v58  ;;  %4898 = vst [vmem:[#allocation38_spill] sm:$0xff] %v3792_v61  ;;  %v3798_v3 = vpop.f32.mrb[47].mxu0  ;;  %v3800_v21 = vpop.f32.mrb[59].mxu1 }
 0x584   : > { %4899 = vst [vmem:[#allocation39_spill] sm:$0xff] %v3798_v3  ;;  %4900 = vst [vmem:[#allocation40_spill] sm:$0xff] %v3800_v21  ;;  %v1355_v17 = vmax.f32 %v3790_v58, %v3798_v3  ;;  %1443 = vmax.xlane.f32.xlu0 %v1442_v26  ;;  %v1451_v20 = vmax.f32 %v3792_v61, %v3800_v21 }
 0x586   : > { %1356 = vmax.xlane.f32.xlu1 %v1355_v17 }
 0x588   : > { %1353 = vmax.xlane.f32.xlu0 %v1352_v0  ;;  %v3806_v35 = vpop.f32.mrb[48].mxu0  ;;  %v3808_v52 = vpop.f32.mrb[60].mxu1 }
 0x589   : > { %4901 = vst [vmem:[#allocation41_spill] sm:$0xff] %v3806_v35  ;;  %4902 = vst [vmem:[#allocation42_spill] sm:$0xff] %v3808_v52  ;;  %v3810_v57 = vpop.f32.mrb[49].mxu0  ;;  %v3812_v38 = vpop.f32.mrb[61].mxu1 }
 0x58a   : > { %4903 = vst [vmem:[#allocation43_spill] sm:$0xff] %v3810_v57  ;;  %4904 = vst [vmem:[#allocation44_spill] sm:$0xff] %v3812_v38  ;;  %v1358_v25 = vmax.f32 %v3806_v35, %v3810_v57  ;;  %1452 = vmax.xlane.f32.xlu1 %v1451_v20  ;;  %v3816_v5 = vpop.f32.mrb[50].mxu0  ;;  %v1454_v26 = vmax.f32 %v3808_v52, %v3812_v38  ;;  %v3820_v21 = vpop.f32.mrb[62].mxu1 }
 0x58b   : > { %4905 = vst [vmem:[#allocation45_spill] sm:$0xff] %v3816_v5  ;;  %4906 = vst [vmem:[#allocation46_spill] sm:$0xff] %v3820_v21  ;;  %v3822_v0 = vpop.f32.mrb[51].mxu0  ;;  %v3824_v17 = vpop.f32.mrb[63].mxu1 }
 0x58c   : > { %4907 = vst [vmem:[#allocation47_spill] sm:$0xff] %v3822_v0  ;;  %4908 = vst [vmem:[#allocation48_spill] sm:$0xff] %v3824_v17  ;;  %v1361_v61 = vmax.f32 %v3816_v5, %v3822_v0  ;;  %1449 = vmax.xlane.f32.xlu0 %v1448_v10  ;;  %v1457_v3 = vmax.f32 %v3820_v21, %v3824_v17 }
 0x58e   : > { %1362 = vmax.xlane.f32.xlu1 %v1361_v61 }
 0x590   : > { %1359 = vmax.xlane.f32.xlu0 %v1358_v25  ;;  %v3830_v20 = vpop.f32.mrb[52].mxu0  ;;  %v3832_v57 = vpop.f32.mrb[64].mxu1 }
 0x591   : > { %4909 = vst [vmem:[#allocation49_spill] sm:$0xff] %v3830_v20  ;;  %4910 = vst [vmem:[#allocation50_spill] sm:$0xff] %v3832_v57  ;;  %v3834_v38 = vpop.f32.mrb[53].mxu0  ;;  %v3836_v52 = vpop.f32.mrb[65].mxu1 }
 0x592   : > { %4911 = vst [vmem:[#allocation51_spill] sm:$0xff] %v3834_v38  ;;  %4912 = vst [vmem:[#allocation52_spill] sm:$0xff] %v3836_v52  ;;  %v1364_v35 = vmax.f32 %v3830_v20, %v3834_v38  ;;  %1458 = vmax.xlane.f32.xlu1 %v1457_v3  ;;  %v3840_v58 = vpop.f32.mrb[54].mxu0  ;;  %v1460_v10 = vmax.f32 %v3832_v57, %v3836_v52  ;;  %v3844_v17 = vpop.f32.mrb[66].mxu1 }
 0x593   : > { %4913 = vst [vmem:[#allocation53_spill] sm:$0xff] %v3840_v58  ;;  %4914 = vst [vmem:[#allocation54_spill] sm:$0xff] %v3844_v17  ;;  %v3846_v25 = vpop.f32.mrb[55].mxu0  ;;  %v3848_v61 = vpop.f32.mrb[67].mxu1 }
 0x594   : > { %4915 = vst [vmem:[#allocation55_spill] sm:$0xff] %v3846_v25  ;;  %4916 = vst [vmem:[#allocation56_spill] sm:$0xff] %v3848_v61  ;;  %v1367_v21 = vmax.f32 %v3840_v58, %v3846_v25  ;;  %1455 = vmax.xlane.f32.xlu0 %v1454_v26  ;;  %v1463_v0 = vmax.f32 %v3844_v17, %v3848_v61 }
 0x596   : > { %1368 = vmax.xlane.f32.xlu1 %v1367_v21 }
 0x598   : > { %1365 = vmax.xlane.f32.xlu0 %v1364_v35  ;;  %v3854_v3 = vpop.f32.mrb[56].mxu0  ;;  %v3856_v38 = vpop.f32.mrb[68].mxu1 }
 0x599   : > { %4917 = vst [vmem:[#allocation57_spill] sm:$0xff] %v3854_v3  ;;  %4918 = vst [vmem:[#allocation58_spill] sm:$0xff] %v3856_v38  ;;  %v3858_v52 = vpop.f32.mrb[57].mxu0  ;;  %v3860_v57 = vpop.f32.mrb[69].mxu1 }
 0x59a   : > { %4919 = vst [vmem:[#allocation59_spill] sm:$0xff] %v3858_v52  ;;  %4920 = vst [vmem:[#allocation60_spill] sm:$0xff] %v3860_v57  ;;  %v1370_v20 = vmax.f32 %v3854_v3, %v3858_v52  ;;  %1464 = vmax.xlane.f32.xlu1 %v1463_v0  ;;  %v3864_v5 = vpop.f32.mrb[58].mxu0  ;;  %v1466_v26 = vmax.f32 %v3856_v38, %v3860_v57  ;;  %v3868_v61 = vpop.f32.mrb[70].mxu1 }
 0x59b   : > { %4921 = vst [vmem:[#allocation61_spill] sm:$0xff] %v3864_v5  ;;  %4922 = vst [vmem:[#allocation62_spill] sm:$0xff] %v3868_v61  ;;  %v3870_v21 = vpop.f32.mrb[59].mxu0  ;;  %v3872_v35 = vpop.f32.mrb[71].mxu1 }
 0x59c   : > { %4923 = vst [vmem:[#allocation63_spill] sm:$0xff] %v3870_v21  ;;  %4924 = vst [vmem:[#allocation64_spill] sm:$0xff] %v3872_v35  ;;  %v1373_v17 = vmax.f32 %v3864_v5, %v3870_v21  ;;  %1461 = vmax.xlane.f32.xlu0 %v1460_v10  ;;  %v1469_v25 = vmax.f32 %v3868_v61, %v3872_v35 }
 0x59e   : > { %1374 = vmax.xlane.f32.xlu1 %v1373_v17 }
 0x5a0   : > { %1371 = vmax.xlane.f32.xlu0 %v1370_v20  ;;  %v3878_v0 = vpop.f32.mrb[60].mxu0  ;;  %v3880_v52 = vpop.f32.mrb[72].mxu1 }
 0x5a1   : > { %4925 = vst [vmem:[#allocation65_spill] sm:$0xff] %v3878_v0  ;;  %4926 = vst [vmem:[#allocation66_spill] sm:$0xff] %v3880_v52  ;;  %v3882_v57 = vpop.f32.mrb[61].mxu0  ;;  %v3884_v38 = vpop.f32.mrb[73].mxu1 }
 0x5a2   : > { %4927 = vst [vmem:[#allocation67_spill] sm:$0xff] %v3882_v57  ;;  %4928 = vst [vmem:[#allocation68_spill] sm:$0xff] %v3884_v38  ;;  %v1376_v3 = vmax.f32 %v3878_v0, %v3882_v57  ;;  %1470 = vmax.xlane.f32.xlu1 %v1469_v25  ;;  %v3888_v58 = vpop.f32.mrb[62].mxu0  ;;  %v1472_v10 = vmax.f32 %v3880_v52, %v3884_v38  ;;  %v3892_v35 = vpop.f32.mrb[74].mxu1 }
 0x5a3   : > { %4929 = vst [vmem:[#allocation69_spill] sm:$0xff] %v3888_v58  ;;  %4930 = vst [vmem:[#allocation70_spill] sm:$0xff] %v3892_v35  ;;  %v3894_v17 = vpop.f32.mrb[63].mxu0  ;;  %v3896_v20 = vpop.f32.mrb[75].mxu1 }
 0x5a4   : > { %4931 = vst [vmem:[#allocation71_spill] sm:$0xff] %v3894_v17  ;;  %4932 = vst [vmem:[#allocation72_spill] sm:$0xff] %v3896_v20  ;;  %v1379_v61 = vmax.f32 %v3888_v58, %v3894_v17  ;;  %1467 = vmax.xlane.f32.xlu0 %v1466_v26  ;;  %v1475_v21 = vmax.f32 %v3892_v35, %v3896_v20 }
 0x5a6   : > { %1380 = vmax.xlane.f32.xlu1 %v1379_v61 }
 0x5a8   : > { %1377 = vmax.xlane.f32.xlu0 %v1376_v3  ;;  %v3902_v25 = vpop.f32.mrb[64].mxu0  ;;  %v3904_v57 = vpop.f32.mrb[76].mxu1 }
 0x5a9   : > { %4933 = vst [vmem:[#allocation73_spill] sm:$0xff] %v3902_v25  ;;  %4934 = vst [vmem:[#allocation74_spill] sm:$0xff] %v3904_v57  ;;  %v3906_v38 = vpop.f32.mrb[65].mxu0  ;;  %v3908_v52 = vpop.f32.mrb[77].mxu1 }
 0x5aa   : > { %4935 = vst [vmem:[#allocation75_spill] sm:$0xff] %v3906_v38  ;;  %4936 = vst [vmem:[#allocation76_spill] sm:$0xff] %v3908_v52  ;;  %v1382_v0 = vmax.f32 %v3902_v25, %v3906_v38  ;;  %1476 = vmax.xlane.f32.xlu1 %v1475_v21  ;;  %v3912_v5 = vpop.f32.mrb[66].mxu0  ;;  %v1478_v26 = vmax.f32 %v3904_v57, %v3908_v52  ;;  %v3916_v20 = vpop.f32.mrb[78].mxu1 }
 0x5ab   : > { %4937 = vst [vmem:[#allocation77_spill] sm:$0xff] %v3912_v5  ;;  %4938 = vst [vmem:[#allocation78_spill] sm:$0xff] %v3916_v20  ;;  %v3918_v61 = vpop.f32.mrb[67].mxu0  ;;  %v3920_v3 = vpop.f32.mrb[79].mxu1 }
 0x5ac   : > { %4939 = vst [vmem:[#allocation79_spill] sm:$0xff] %v3918_v61  ;;  %4940 = vst [vmem:[#allocation80_spill] sm:$0xff] %v3920_v3  ;;  %v1385_v35 = vmax.f32 %v3912_v5, %v3918_v61  ;;  %1473 = vmax.xlane.f32.xlu0 %v1472_v10  ;;  %v1481_v17 = vmax.f32 %v3916_v20, %v3920_v3 }
 0x5ae   : > { %1386 = vmax.xlane.f32.xlu1 %v1385_v35 }
 0x5b0   : > { %1383 = vmax.xlane.f32.xlu0 %v1382_v0  ;;  %v3926_v21 = vpop.f32.mrb[68].mxu0  ;;  %v3928_v38 = vpop.f32.mrb[80].mxu1 }
 0x5b1   : > { %4941 = vst [vmem:[#allocation81_spill] sm:$0xff] %v3926_v21  ;;  %4942 = vst [vmem:[#allocation82_spill] sm:$0xff] %v3928_v38  ;;  %v3930_v52 = vpop.f32.mrb[69].mxu0  ;;  %v3932_v57 = vpop.f32.mrb[81].mxu1 }
 0x5b2   : > { %4943 = vst [vmem:[#allocation83_spill] sm:$0xff] %v3930_v52  ;;  %4944 = vst [vmem:[#allocation84_spill] sm:$0xff] %v3932_v57  ;;  %v1388_v25 = vmax.f32 %v3926_v21, %v3930_v52  ;;  %1482 = vmax.xlane.f32.xlu1 %v1481_v17  ;;  %v3936_v58 = vpop.f32.mrb[70].mxu0  ;;  %v1484_v10 = vmax.f32 %v3928_v38, %v3932_v57  ;;  %v3940_v3 = vpop.f32.mrb[82].mxu1 }
 0x5b3   : > { %4945 = vst [vmem:[#allocation85_spill] sm:$0xff] %v3936_v58  ;;  %v3942_v35 = vpop.f32.mrb[71].mxu0  ;;  %v3944_v0 = vpop.f32.mrb[83].mxu1 }
 0x5b4   : > { %4946 = vst [vmem:[#allocation86_spill] sm:$0xff] %v3942_v35  ;;  %4947 = vst [vmem:[#allocation87_spill] sm:$0xff] %v3944_v0  ;;  %v1391_v20 = vmax.f32 %v3936_v58, %v3942_v35  ;;  %1479 = vmax.xlane.f32.xlu0 %v1478_v26  ;;  %v1487_v61 = vmax.f32 %v3940_v3, %v3944_v0 }
 0x5b6   : > { %1392 = vmax.xlane.f32.xlu1 %v1391_v20 }
 0x5b8   : > { %1389 = vmax.xlane.f32.xlu0 %v1388_v25 }
 0x5ba   : > { %1488 = vmax.xlane.f32.xlu1 %v1487_v61 }
 0x5bc   : > { %1485 = vmax.xlane.f32.xlu0 %v1484_v10 }
 0x5c9   : > { %v1300_v17 = vpop.xlane.xlu0 %1299 }
 0x5ca   : > { %v1490_v57 = vsub.f32 %v3566_v28, %v1300_v17  ;;  %v1491_v38 = vsub.f32 %v3570_v30, %v1300_v17 }
 0x5cb   : > { %v1303_v52 = vpop.xlane.xlu1 %1302 }
 0x5cc   : > { %v1618_v21 = vmul.f32 1.442695, %v1490_v57  ;;  %v1620_v5 = vmul.f32 1.442695, %v1491_v38  ;;  %v1492_v54 = vsub.f32 %v3574_v32, %v1303_v52  ;;  %v1493_v35 = vsub.f32 %v3582_v36, %v1303_v52 }
 0x5cd   : > { %v1396_v26 = vpop.xlane.xlu0 %1395 }
 0x5ce   : > { %2758 = vpow2.f32 %v1618_v21  ;;  %v1622_v58 = vmul.f32 1.442695, %v1492_v54  ;;  %v1624_v0 = vmul.f32 1.442695, %v1493_v35  ;;  %v1554_v20 = vsub.f32 %v3568_v29, %v1396_v26 }
 0x5cf   : > { %2760 = vpow2.f32 %v1620_v5  ;;  %v1555_v25 = vsub.f32 %v3572_v31, %v1396_v26 }
 0x5d0   : > { %2762 = vpow2.f32 %v1622_v58  ;;  %v1746_v28 = vmul.f32 1.442695, %v1554_v20 }
 0x5d1   : > { %2764 = vpow2.f32 %v1624_v0  ;;  %v1748_v30 = vmul.f32 1.442695, %v1555_v25  ;;  %v1399_v61 = vpop.xlane.xlu0 %1398 }
 0x5d2   : > { %2766 = vpow2.f32 %v1746_v28  ;;  %v1556_v57 = vsub.f32 %v3576_v33, %v1399_v61  ;;  %v1557_v32 = vsub.f32 %v3584_v37, %v1399_v61 }
 0x5d3   : > { %2768 = vpow2.f32 %v1748_v30  ;;  %v1309_v52 = vpop.xlane.xlu1 %1308 }
 0x5d4   : > { %v1750_v36 = vmul.f32 1.442695, %v1556_v57  ;;  %v1752_v54 = vmul.f32 1.442695, %v1557_v32  ;;  %v1496_v38 = vsub.f32 %v3598_v44, %v1309_v52  ;;  %v1497_v29 = vsub.f32 %v3606_v48, %v1309_v52 }
 0x5d5   : > { %v1306_v5 = vpop.xlane.xlu0 %1305 }
 0x5d6   : > { %2770 = vpow2.f32 %v1750_v36  ;;  %v1630_v58 = vmul.f32 1.442695, %v1496_v38  ;;  %v1632_v31 = vmul.f32 1.442695, %v1497_v29  ;;  %v1494_v21 = vsub.f32 %v3590_v40, %v1306_v5 }
 0x5d7   : > { %2772 = vpow2.f32 %v1752_v54  ;;  %v1495_v10 = vsub.f32 %v3594_v42, %v1306_v5  ;;  %v1405_v33 = vpop.xlane.xlu1 %1404 }
 0x5d8   : > { %v3962_v35 = vpop.eup %2758  ;;  %2774 = vpow2.f32 %v1630_v58  ;;  %v1626_v37 = vmul.f32 1.442695, %v1494_v21  ;;  %v1560_v0 = vsub.f32 %v3600_v45, %v1405_v33  ;;  %v1561_v44 = vsub.f32 %v3608_v49, %v1405_v33 }
 0x5d9   : > { %v3966_v17 = vpop.eup %2760  ;;  %2776 = vpow2.f32 %v1632_v31  ;;  %v1628_v48 = vmul.f32 1.442695, %v1495_v10  ;;  %v1402_v26 = vpop.xlane.xlu0 %1401 }
 0x5da   : > { %v3968_v20 = vpop.eup %2762  ;;  %2778 = vpow2.f32 %v1626_v37  ;;  %v1758_v40 = vmul.f32 1.442695, %v1560_v0  ;;  %v1760_v25 = vmul.f32 1.442695, %v1561_v44  ;;  %v1558_v42 = vsub.f32 %v3592_v41, %v1402_v26 }
 0x5db   : > { %v3971_v28 = vpop.eup %2764  ;;  %2780 = vpow2.f32 %v1628_v48  ;;  %v1559_v30 = vsub.f32 %v3596_v43, %v1402_v26  ;;  %v1315_v45 = vpop.xlane.xlu1 %1314  ;;  %v1874_v49 = vadd.f32 %v3966_v17, %v3962_v35 }
 0x5dc   : > { %v3976_v61 = vpop.eup %2766  ;;  %2782 = vpow2.f32 %v1758_v40  ;;  %v1754_v57 = vmul.f32 1.442695, %v1558_v42  ;;  %v1500_v32 = vsub.f32 %v3622_v60, %v1315_v45  ;;  %v1501_v52 = vsub.f32 %v3630_v8, %v1315_v45 }
 0x5dd   : > { %v3980_v36 = vpop.eup %2768  ;;  %2784 = vpow2.f32 %v1760_v25  ;;  %v1756_v41 = vmul.f32 1.442695, %v1559_v30  ;;  %1875 = vadd.xlane.f32.xlu0 %v1874_v49  ;;  %v1877_v43 = vadd.f32 %v3971_v28, %v3968_v20  ;;  %v1312_v54 = vpop.xlane.xlu0 %1311 }
 0x5de   : > { %2786 = vpow2.f32 %v1754_v57  ;;  %v1638_v38 = vmul.f32 1.442695, %v1500_v32  ;;  %v1640_v29 = vmul.f32 1.442695, %v1501_v52  ;;  %v1498_v5 = vsub.f32 %v3614_v53, %v1312_v54 }
 0x5df   : > { %2788 = vpow2.f32 %v1756_v41  ;;  %1878 = vadd.xlane.f32.xlu1 %v1877_v43  ;;  %v1499_v60 = vsub.f32 %v3618_v55, %v1312_v54  ;;  %v1411_v58 = vpop.xlane.xlu1 %1410  ;;  %v1970_v8 = vadd.f32 %v3980_v36, %v3976_v61 }
 0x5e0   : > { %v3988_v31 = vpop.eup %2770  ;;  %2790 = vpow2.f32 %v1638_v38  ;;  %v1634_v21 = vmul.f32 1.442695, %v1498_v5  ;;  %v1564_v10 = vsub.f32 %v3624_v62, %v1411_v58  ;;  %v1565_v33 = vsub.f32 %v3632_v9, %v1411_v58 }
 0x5e1   : > { %v3992_v37 = vpop.eup %2772  ;;  %2792 = vpow2.f32 %v1640_v29  ;;  %v1636_v53 = vmul.f32 1.442695, %v1499_v60  ;;  %1971 = vadd.xlane.f32.xlu0 %v1970_v8  ;;  %v1408_v0 = vpop.xlane.xlu0 %1407 }
 0x5e2   : > { %v3994_v44 = vpop.eup %2774  ;;  %2794 = vpow2.f32 %v1634_v21  ;;  %v1766_v55 = vmul.f32 1.442695, %v1564_v10  ;;  %v1768_v48 = vmul.f32 1.442695, %v1565_v33  ;;  %v1562_v26 = vsub.f32 %v3616_v56, %v1408_v0 }
 0x5e3   : > { %v3997_v40 = vpop.eup %2776  ;;  %2796 = vpow2.f32 %v1636_v53  ;;  %v1563_v62 = vsub.f32 %v3620_v59, %v1408_v0  ;;  %v1321_v25 = vpop.xlane.xlu1 %1320  ;;  %v1973_v9 = vadd.f32 %v3992_v37, %v3988_v31 }
 0x5e4   : > { %v4002_v42 = vpop.eup %2778  ;;  %2798 = vpow2.f32 %v1766_v55  ;;  %v1762_v30 = vmul.f32 1.442695, %v1562_v26  ;;  %v1504_v45 = vsub.f32 %v3646_v12, %v1321_v25  ;;  %v1505_v49 = vsub.f32 %v3654_v18, %v1321_v25 }
 0x5e5   : > { %v4006_v57 = vpop.eup %2780  ;;  %2800 = vpow2.f32 %v1768_v48  ;;  %v1764_v56 = vmul.f32 1.442695, %v1563_v62  ;;  %1974 = vadd.xlane.f32.xlu1 %v1973_v9  ;;  %v1318_v32 = vpop.xlane.xlu0 %1317  ;;  %v1883_v18 = vadd.f32 %v3997_v40, %v3994_v44 }
 0x5e6   : > { %v4008_v52 = vpop.eup %2782  ;;  %2802 = vpow2.f32 %v1762_v30  ;;  %v1646_v59 = vmul.f32 1.442695, %v1504_v45  ;;  %v1648_v41 = vmul.f32 1.442695, %v1505_v49  ;;  %v1502_v43 = vsub.f32 %v3638_v7, %v1318_v32 }
 0x5e7   : > { %v4011_v54 = vpop.eup %2784  ;;  %2804 = vpow2.f32 %v1764_v56  ;;  %v1503_v12 = vsub.f32 %v3642_v4, %v1318_v32  ;;  %v1417_v38 = vpop.xlane.xlu1 %1416  ;;  %v1880_v29 = vadd.f32 %v4006_v57, %v4002_v42 }
 0x5e8   : > { %v4018_v5 = vpop.eup %2786  ;;  %2806 = vpow2.f32 %v1646_v59  ;;  %v1642_v60 = vmul.f32 1.442695, %v1502_v43  ;;  %v1568_v58 = vsub.f32 %v3648_v13, %v1417_v38  ;;  %v1569_v7 = vsub.f32 %v3656_v19, %v1417_v38 }
 0x5e9   : > { %v4022_v8 = vpop.eup %2788  ;;  %2808 = vpow2.f32 %v1648_v41  ;;  %v1644_v21 = vmul.f32 1.442695, %v1503_v12  ;;  %1884 = vadd.xlane.f32.xlu1 %v1883_v18  ;;  %1881 = vadd.xlane.f32.xlu0 %v1880_v29  ;;  %v1414_v4 = vpop.xlane.xlu0 %1413  ;;  %v1979_v48 = vadd.f32 %v4011_v54, %v4008_v52 }
 0x5ea   : > { %v4024_v10 = vpop.eup %2790  ;;  %2810 = vpow2.f32 %v1642_v60  ;;  %v1774_v33 = vmul.f32 1.442695, %v1568_v58  ;;  %v1776_v53 = vmul.f32 1.442695, %v1569_v7  ;;  %v1566_v0 = vsub.f32 %v3640_v2, %v1414_v4 }
 0x5eb   : > { %v4027_v55 = vpop.eup %2792  ;;  %2812 = vpow2.f32 %v1644_v21  ;;  %v1567_v13 = vsub.f32 %v3644_v11, %v1414_v4  ;;  %v1327_v19 = vpop.xlane.xlu1 %1326  ;;  %v1976_v26 = vadd.f32 %v4022_v8, %v4018_v5 }
 0x5ec   : > { %v4034_v62 = vpop.eup %2794  ;;  %2814 = vpow2.f32 %v1774_v33  ;;  %v1770_v25 = vmul.f32 1.442695, %v1566_v0  ;;  %v1508_v9 = vsub.f32 %v3670_v23, %v1327_v19  ;;  %v1509_v2 = vsub.f32 %v3678_v27, %v1327_v19 }
 0x5ed   : > { %v4038_v30 = vpop.eup %2796  ;;  %2816 = vpow2.f32 %v1776_v53  ;;  %v1772_v45 = vmul.f32 1.442695, %v1567_v13  ;;  %1980 = vadd.xlane.f32.xlu1 %v1979_v48  ;;  %1977 = vadd.xlane.f32.xlu0 %v1976_v26  ;;  %v1324_v11 = vpop.xlane.xlu0 %1323  ;;  %v1889_v43 = vadd.f32 %v4027_v55, %v4024_v10 }
 0x5ee   : > { %v4040_v49 = vpop.eup %2798  ;;  %2818 = vpow2.f32 %v1770_v25  ;;  %v1654_v56 = vmul.f32 1.442695, %v1508_v9  ;;  %v1656_v32 = vmul.f32 1.442695, %v1509_v2  ;;  %v1506_v59 = vsub.f32 %v3662_v1, %v1324_v11 }
 0x5ef   : > { %v4043_v41 = vpop.eup %2800  ;;  %2820 = vpow2.f32 %v1772_v45  ;;  %v1507_v23 = vsub.f32 %v3666_v15, %v1324_v11  ;;  %v1423_v27 = vpop.xlane.xlu1 %1422  ;;  %v1886_v12 = vadd.f32 %v4038_v30, %v4034_v62 }
 0x5f0   : > { %v4050_v38 = vpop.eup %2802  ;;  %2822 = vpow2.f32 %v1654_v56  ;;  %v1650_v18 = vmul.f32 1.442695, %v1506_v59  ;;  %v1572_v29 = vsub.f32 %v3672_v24, %v1423_v27  ;;  %v1573_v1 = vsub.f32 %v3680_v34, %v1423_v27 }
 0x5f1   : > { %v4054_v60 = vpop.eup %2804  ;;  %2824 = vpow2.f32 %v1656_v32  ;;  %v1652_v58 = vmul.f32 1.442695, %v1507_v23  ;;  %1890 = vadd.xlane.f32.xlu1 %v1889_v43  ;;  %1887 = vadd.xlane.f32.xlu0 %v1886_v12  ;;  %v1420_v15 = vpop.xlane.xlu0 %1419  ;;  %v1985_v0 = vadd.f32 %v4043_v41, %v4040_v49 }
 0x5f2   : > { %v4056_v7 = vpop.eup %2806  ;;  %2826 = vpow2.f32 %v1650_v18  ;;  %v1782_v21 = vmul.f32 1.442695, %v1572_v29  ;;  %v1784_v4 = vmul.f32 1.442695, %v1573_v1  ;;  %v1570_v33 = vsub.f32 %v3664_v14, %v1420_v15 }
 0x5f3   : > { %v4059_v53 = vpop.eup %2808  ;;  %2828 = vpow2.f32 %v1652_v58  ;;  %v1571_v24 = vsub.f32 %v3668_v22, %v1420_v15  ;;  %v1333_v34 = vpop.xlane.xlu1 %1332  ;;  %v1982_v13 = vadd.f32 %v4054_v60, %v4050_v38 }
 0x5f4   : > { %v4066_v19 = vpop.eup %2810  ;;  %2830 = vpow2.f32 %v1782_v21  ;;  %v1778_v48 = vmul.f32 1.442695, %v1570_v33  ;;  %v1512_v26 = vsub.f32 %v3694_v51, %v1333_v34  ;;  %v1513_v14 = vsub.f32 %v3702_v6, %v1333_v34 }
 0x5f5   : > { %v4070_v25 = vpop.eup %2812  ;;  %2832 = vpow2.f32 %v1784_v4  ;;  %v1780_v9 = vmul.f32 1.442695, %v1571_v24  ;;  %1986 = vadd.xlane.f32.xlu1 %v1985_v0  ;;  %1983 = vadd.xlane.f32.xlu0 %v1982_v13  ;;  %v1330_v22 = vpop.xlane.xlu0 %1329  ;;  %v1895_v59 = vadd.f32 %v4059_v53, %v4056_v7  ;;  %v4948_v13 = vld [vmem:[#allocation13_spill] sm:$0xff] }
 0x5f6   : > { %v4072_v2 = vpop.eup %2814  ;;  %2834 = vpow2.f32 %v1778_v48  ;;  %v1662_v45 = vmul.f32 1.442695, %v1512_v26  ;;  %v1664_v11 = vmul.f32 1.442695, %v1513_v14  ;;  %v1510_v56 = vsub.f32 %v3686_v39, %v1330_v22  ;;  %v4949_v26 = vld [vmem:[#allocation15_spill] sm:$0xff] }
 0x5f7   : > { %v4075_v32 = vpop.eup %2816  ;;  %2836 = vpow2.f32 %v1780_v9  ;;  %v1511_v51 = vsub.f32 %v3690_v47, %v1330_v22  ;;  %v1429_v6 = vpop.xlane.xlu1 %1428  ;;  %v1892_v23 = vadd.f32 %v4070_v25, %v4066_v19 }
 0x5f8   : > { %v4082_v27 = vpop.eup %2818  ;;  %2838 = vpow2.f32 %v1662_v45  ;;  %v1658_v43 = vmul.f32 1.442695, %v1510_v56  ;;  %v1576_v12 = vsub.f32 %v3696_v63, %v1429_v6  ;;  %v1577_v39 = vsub.f32 %v3704_v16, %v1429_v6  ;;  %v4950_v56 = vld [vmem:[#allocation9_spill] sm:$0xff] }
 0x5f9   : > { %v4086_v18 = vpop.eup %2820  ;;  %2840 = vpow2.f32 %v1664_v11  ;;  %v1660_v29 = vmul.f32 1.442695, %v1511_v51  ;;  %1896 = vadd.xlane.f32.xlu1 %v1895_v59  ;;  %1893 = vadd.xlane.f32.xlu0 %v1892_v23  ;;  %v1426_v47 = vpop.xlane.xlu0 %1425  ;;  %v1991_v33 = vadd.f32 %v4075_v32, %v4072_v2  ;;  %v4951_v59 = vld [vmem:[#allocation11_spill] sm:$0xff] }
 0x5fa   : > { %v4088_v1 = vpop.eup %2822  ;;  %2842 = vpow2.f32 %v1658_v43  ;;  %v1790_v58 = vmul.f32 1.442695, %v1576_v12  ;;  %v1792_v15 = vmul.f32 1.442695, %v1577_v39  ;;  %v1574_v21 = vsub.f32 %v3688_v46, %v1426_v47 }
 0x5fb   : > { %v4091_v4 = vpop.eup %2824  ;;  %2844 = vpow2.f32 %v1660_v29  ;;  %v1575_v63 = vsub.f32 %v3692_v50, %v1426_v47  ;;  %v1339_v16 = vpop.xlane.xlu1 %1338  ;;  %v1988_v24 = vadd.f32 %v4086_v18, %v4082_v27 }
 0x5fc   : > { %v4098_v34 = vpop.eup %2826  ;;  %2846 = vpow2.f32 %v1790_v58  ;;  %v1786_v0 = vmul.f32 1.442695, %v1574_v21  ;;  %v1516_v48 = vsub.f32 %v4948_v13, %v1339_v16  ;;  %v1517_v46 = vsub.f32 %v4949_v26, %v1339_v16  ;;  %v4952_v58 = vld [vmem:[#allocation14_spill] sm:$0xff]  ;;  %v4953_v21 = vld [vmem:[#allocation16_spill] sm:$0xff] }
 0x5fd   : > { %v4102_v14 = vpop.eup %2828  ;;  %2848 = vpow2.f32 %v1792_v15  ;;  %v1788_v9 = vmul.f32 1.442695, %v1575_v63  ;;  %1992 = vadd.xlane.f32.xlu1 %v1991_v33  ;;  %1989 = vadd.xlane.f32.xlu0 %v1988_v24  ;;  %v1336_v50 = vpop.xlane.xlu0 %1335  ;;  %v1901_v12 = vadd.f32 %v4091_v4, %v4088_v1  ;;  %v4955_v26 = vld [vmem:[#allocation10_spill] sm:$0xff] }
 0x5fe   : > { %v4104_v22 = vpop.eup %2830  ;;  %2850 = vpow2.f32 %v1786_v0  ;;  %v1670_v45 = vmul.f32 1.442695, %v1516_v48  ;;  %v1672_v11 = vmul.f32 1.442695, %v1517_v46  ;;  %v1514_v51 = vsub.f32 %v4950_v56, %v1336_v50 }
 0x5ff   : > { %v4107_v6 = vpop.eup %2832  ;;  %2852 = vpow2.f32 %v1788_v9  ;;  %v1515_v23 = vsub.f32 %v4951_v59, %v1336_v50  ;;  %v1435_v43 = vpop.xlane.xlu1 %1434  ;;  %v1898_v39 = vadd.f32 %v4102_v14, %v4098_v34  ;;  %v4957_v50 = vld [vmem:[#allocation12_spill] sm:$0xff] }
 0x600   : > { %v4114_v29 = vpop.eup %2834  ;;  %2854 = vpow2.f32 %v1670_v45  ;;  %v1666_v47 = vmul.f32 1.442695, %v1514_v51  ;;  %v1580_v15 = vsub.f32 %v4952_v58, %v1435_v43  ;;  %v1581_v63 = vsub.f32 %v4953_v21, %v1435_v43  ;;  %v4959_v43 = vld [vmem:[#allocation21_spill] sm:$0xff] }
 0x601   : > { %v4118_v16 = vpop.eup %2836  ;;  %2856 = vpow2.f32 %v1672_v11  ;;  %v1668_v33 = vmul.f32 1.442695, %v1515_v23  ;;  %1902 = vadd.xlane.f32.xlu1 %v1901_v12  ;;  %1899 = vadd.xlane.f32.xlu0 %v1898_v39  ;;  %v1432_v24 = vpop.xlane.xlu0 %1431  ;;  %v1997_v11 = vadd.f32 %v4107_v6, %v4104_v22  ;;  %v4960_v39 = vld [vmem:[#allocation23_spill] sm:$0xff] }
 0x602   : > { %v4120_v0 = vpop.eup %2838  ;;  %2858 = vpow2.f32 %v1666_v47  ;;  %v1798_v13 = vmul.f32 1.442695, %v1580_v15  ;;  %v1800_v48 = vmul.f32 1.442695, %v1581_v63  ;;  %v1578_v46 = vsub.f32 %v4955_v26, %v1432_v24  ;;  %v4963_v26 = vld [vmem:[#allocation17_spill] sm:$0xff] }
 0x603   : > { %4954 = vst [vmem:[#allocation13_spill] sm:$0xff] %v4120_v0  ;;  %v4123_v9 = vpop.eup %2840  ;;  %2860 = vpow2.f32 %v1668_v33  ;;  %v1579_v45 = vsub.f32 %v4957_v50, %v1432_v24  ;;  %v1345_v56 = vpop.xlane.xlu1 %1344  ;;  %v1994_v51 = vadd.f32 %v4118_v16, %v4114_v29 }
 0x604   : > { %4956 = vst [vmem:[#allocation15_spill] sm:$0xff] %v4123_v9  ;;  %v4130_v59 = vpop.eup %2842  ;;  %2862 = vpow2.f32 %v1798_v13  ;;  %v1794_v23 = vmul.f32 1.442695, %v1578_v46  ;;  %v1520_v12 = vsub.f32 %v4959_v43, %v1345_v56  ;;  %v1521_v47 = vsub.f32 %v4960_v39, %v1345_v56  ;;  %v4965_v46 = vld [vmem:[#allocation19_spill] sm:$0xff]  ;;  %v4968_v39 = vld [vmem:[#allocation24_spill] sm:$0xff] }
 0x605   : > { %4958 = vst [vmem:[#allocation9_spill] sm:$0xff] %v4130_v59  ;;  %v4134_v58 = vpop.eup %2844  ;;  %2864 = vpow2.f32 %v1800_v48  ;;  %v1796_v15 = vmul.f32 1.442695, %v1579_v45  ;;  %1998 = vadd.xlane.f32.xlu1 %v1997_v11  ;;  %1995 = vadd.xlane.f32.xlu0 %v1994_v51  ;;  %v1342_v21 = vpop.xlane.xlu0 %1341  ;;  %v1907_v48 = vadd.f32 %v4123_v9, %v4120_v0 }
 0x606   : > { %4961 = vst [vmem:[#allocation11_spill] sm:$0xff] %v4134_v58  ;;  %v4136_v63 = vpop.eup %2846  ;;  %2866 = vpow2.f32 %v1794_v23  ;;  %v1678_v33 = vmul.f32 1.442695, %v1520_v12  ;;  %v1680_v24 = vmul.f32 1.442695, %v1521_v47  ;;  %v1518_v50 = vsub.f32 %v4963_v26, %v1342_v21  ;;  %v4967_v23 = vld [vmem:[#allocation22_spill] sm:$0xff] }
 0x607   : > { %4962 = vst [vmem:[#allocation14_spill] sm:$0xff] %v4136_v63  ;;  %v4139_v13 = vpop.eup %2848  ;;  %2868 = vpow2.f32 %v1796_v15  ;;  %v1519_v43 = vsub.f32 %v4965_v46, %v1342_v21  ;;  %v1441_v56 = vpop.xlane.xlu1 %1440  ;;  %v1904_v45 = vadd.f32 %v4134_v58, %v4130_v59  ;;  %v4971_v58 = vld [vmem:[#allocation18_spill] sm:$0xff] }
 0x608   : > { %4964 = vst [vmem:[#allocation16_spill] sm:$0xff] %v4139_v13  ;;  %v4146_v11 = vpop.eup %2850  ;;  %2870 = vpow2.f32 %v1678_v33  ;;  %v1674_v51 = vmul.f32 1.442695, %v1518_v50  ;;  %v1584_v12 = vsub.f32 %v4967_v23, %v1441_v56  ;;  %v1585_v47 = vsub.f32 %v4968_v39, %v1441_v56  ;;  %v4973_v50 = vld [vmem:[#allocation20_spill] sm:$0xff]  ;;  %v4976_v39 = vld [vmem:[#allocation31_spill] sm:$0xff] }
 0x609   : > { %4966 = vst [vmem:[#allocation10_spill] sm:$0xff] %v4146_v11  ;;  %v4150_v26 = vpop.eup %2852  ;;  %2872 = vpow2.f32 %v1680_v24  ;;  %v1676_v15 = vmul.f32 1.442695, %v1519_v43  ;;  %1908 = vadd.xlane.f32.xlu1 %v1907_v48  ;;  %1905 = vadd.xlane.f32.xlu0 %v1904_v45  ;;  %v1438_v21 = vpop.xlane.xlu0 %1437  ;;  %v2003_v24 = vadd.f32 %v4139_v13, %v4136_v63 }
 0x60a   : > { %4969 = vst [vmem:[#allocation12_spill] sm:$0xff] %v4150_v26  ;;  %v4152_v46 = vpop.eup %2854  ;;  %2874 = vpow2.f32 %v1674_v51  ;;  %v1806_v0 = vmul.f32 1.442695, %v1584_v12  ;;  %v1808_v59 = vmul.f32 1.442695, %v1585_v47  ;;  %v1582_v9 = vsub.f32 %v4971_v58, %v1438_v21  ;;  %v4975_v51 = vld [vmem:[#allocation29_spill] sm:$0xff] }
 0x60b   : > { %4970 = vst [vmem:[#allocation21_spill] sm:$0xff] %v4152_v46  ;;  %v4155_v33 = vpop.eup %2856  ;;  %2876 = vpow2.f32 %v1676_v15  ;;  %v1583_v23 = vsub.f32 %v4973_v50, %v1438_v21  ;;  %v1351_v56 = vpop.xlane.xlu1 %1350  ;;  %v2000_v43 = vadd.f32 %v4150_v26, %v4146_v11  ;;  %v4979_v26 = vld [vmem:[#allocation25_spill] sm:$0xff] }
 0x60c   : > { %4972 = vst [vmem:[#allocation23_spill] sm:$0xff] %v4155_v33  ;;  %v4162_v48 = vpop.eup %2858  ;;  %2878 = vpow2.f32 %v1806_v0  ;;  %v1802_v45 = vmul.f32 1.442695, %v1582_v9  ;;  %v1524_v12 = vsub.f32 %v4975_v51, %v1351_v56  ;;  %v1525_v58 = vsub.f32 %v4976_v39, %v1351_v56  ;;  %v4981_v9 = vld [vmem:[#allocation27_spill] sm:$0xff]  ;;  %v4984_v39 = vld [vmem:[#allocation32_spill] sm:$0xff] }
 0x60d   : > { %4974 = vst [vmem:[#allocation17_spill] sm:$0xff] %v4162_v48  ;;  %v4166_v47 = vpop.eup %2860  ;;  %2880 = vpow2.f32 %v1808_v59  ;;  %v1804_v15 = vmul.f32 1.442695, %v1583_v23  ;;  %2004 = vadd.xlane.f32.xlu1 %v2003_v24  ;;  %2001 = vadd.xlane.f32.xlu0 %v2000_v43  ;;  %v1348_v21 = vpop.xlane.xlu0 %1347  ;;  %v1913_v59 = vadd.f32 %v4155_v33, %v4152_v46 }
 0x60e   : > { %4977 = vst [vmem:[#allocation19_spill] sm:$0xff] %v4166_v47  ;;  %v4168_v50 = vpop.eup %2862  ;;  %2882 = vpow2.f32 %v1802_v45  ;;  %v1686_v63 = vmul.f32 1.442695, %v1524_v12  ;;  %v1688_v11 = vmul.f32 1.442695, %v1525_v58  ;;  %v1522_v13 = vsub.f32 %v4979_v26, %v1348_v21  ;;  %v4983_v45 = vld [vmem:[#allocation30_spill] sm:$0xff] }
 0x60f   : > { %4978 = vst [vmem:[#allocation22_spill] sm:$0xff] %v4168_v50  ;;  %v4171_v0 = vpop.eup %2864  ;;  %2884 = vpow2.f32 %v1804_v15  ;;  %v1523_v51 = vsub.f32 %v4981_v9, %v1348_v21  ;;  %v1447_v56 = vpop.xlane.xlu1 %1446  ;;  %v1910_v23 = vadd.f32 %v4166_v47, %v4162_v48  ;;  %v4987_v47 = vld [vmem:[#allocation26_spill] sm:$0xff] }
 0x610   : > { %4980 = vst [vmem:[#allocation24_spill] sm:$0xff] %v4171_v0  ;;  %v4178_v24 = vpop.eup %2866  ;;  %2886 = vpow2.f32 %v1686_v63  ;;  %v1682_v43 = vmul.f32 1.442695, %v1522_v13  ;;  %v1588_v12 = vsub.f32 %v4983_v45, %v1447_v56  ;;  %v1589_v26 = vsub.f32 %v4984_v39, %v1447_v56  ;;  %v4989_v13 = vld [vmem:[#allocation28_spill] sm:$0xff]  ;;  %v4992_v39 = vld [vmem:[#allocation39_spill] sm:$0xff] }
 0x611   : > { %4982 = vst [vmem:[#allocation18_spill] sm:$0xff] %v4178_v24  ;;  %v4182_v58 = vpop.eup %2868  ;;  %2888 = vpow2.f32 %v1688_v11  ;;  %v1684_v15 = vmul.f32 1.442695, %v1523_v51  ;;  %1914 = vadd.xlane.f32.xlu1 %v1913_v59  ;;  %1911 = vadd.xlane.f32.xlu0 %v1910_v23  ;;  %v1444_v21 = vpop.xlane.xlu0 %1443  ;;  %v2009_v11 = vadd.f32 %v4171_v0, %v4168_v50 }
 0x612   : > { %4985 = vst [vmem:[#allocation20_spill] sm:$0xff] %v4182_v58  ;;  %v4184_v9 = vpop.eup %2870  ;;  %2890 = vpow2.f32 %v1682_v43  ;;  %v1814_v46 = vmul.f32 1.442695, %v1588_v12  ;;  %v1816_v48 = vmul.f32 1.442695, %v1589_v26  ;;  %v1586_v33 = vsub.f32 %v4987_v47, %v1444_v21  ;;  %v4991_v43 = vld [vmem:[#allocation37_spill] sm:$0xff] }
 0x613   : > { %4986 = vst [vmem:[#allocation29_spill] sm:$0xff] %v4184_v9  ;;  %v4187_v63 = vpop.eup %2872  ;;  %2892 = vpow2.f32 %v1684_v15  ;;  %v1587_v45 = vsub.f32 %v4989_v13, %v1444_v21  ;;  %v1357_v56 = vpop.xlane.xlu1 %1356  ;;  %v2006_v51 = vadd.f32 %v4182_v58, %v4178_v24  ;;  %v4995_v58 = vld [vmem:[#allocation33_spill] sm:$0xff] }
 0x614   : > { %4988 = vst [vmem:[#allocation31_spill] sm:$0xff] %v4187_v63  ;;  %v4194_v59 = vpop.eup %2874  ;;  %2894 = vpow2.f32 %v1814_v46  ;;  %v1810_v23 = vmul.f32 1.442695, %v1586_v33  ;;  %v1528_v12 = vsub.f32 %v4991_v43, %v1357_v56  ;;  %v1529_v47 = vsub.f32 %v4992_v39, %v1357_v56  ;;  %v4997_v33 = vld [vmem:[#allocation35_spill] sm:$0xff]  ;;  %v5000_v39 = vld [vmem:[#allocation40_spill] sm:$0xff] }
 0x615   : > { %4990 = vst [vmem:[#allocation25_spill] sm:$0xff] %v4194_v59  ;;  %v4198_v26 = vpop.eup %2876  ;;  %2896 = vpow2.f32 %v1816_v48  ;;  %v1812_v15 = vmul.f32 1.442695, %v1587_v45  ;;  %2010 = vadd.xlane.f32.xlu1 %v2009_v11  ;;  %2007 = vadd.xlane.f32.xlu0 %v2006_v51  ;;  %v1354_v21 = vpop.xlane.xlu0 %1353  ;;  %v1919_v48 = vadd.f32 %v4187_v63, %v4184_v9 }
 0x616   : > { %4993 = vst [vmem:[#allocation27_spill] sm:$0xff] %v4198_v26  ;;  %v4200_v13 = vpop.eup %2878  ;;  %2898 = vpow2.f32 %v1810_v23  ;;  %v1694_v50 = vmul.f32 1.442695, %v1528_v12  ;;  %v1696_v24 = vmul.f32 1.442695, %v1529_v47  ;;  %v1526_v0 = vsub.f32 %v4995_v58, %v1354_v21  ;;  %v4999_v23 = vld [vmem:[#allocation38_spill] sm:$0xff] }
 0x617   : > { %4994 = vst [vmem:[#allocation30_spill] sm:$0xff] %v4200_v13  ;;  %v4203_v46 = vpop.eup %2880  ;;  %2900 = vpow2.f32 %v1812_v15  ;;  %v1527_v43 = vsub.f32 %v4997_v33, %v1354_v21  ;;  %v1453_v56 = vpop.xlane.xlu1 %1452  ;;  %v1916_v45 = vadd.f32 %v4198_v26, %v4194_v59  ;;  %v5003_v26 = vld [vmem:[#allocation34_spill] sm:$0xff] }
 0x618   : > { %4996 = vst [vmem:[#allocation32_spill] sm:$0xff] %v4203_v46  ;;  %v4210_v11 = vpop.eup %2882  ;;  %2902 = vpow2.f32 %v1694_v50  ;;  %v1690_v51 = vmul.f32 1.442695, %v1526_v0  ;;  %v1592_v12 = vsub.f32 %v4999_v23, %v1453_v56  ;;  %v1593_v58 = vsub.f32 %v5000_v39, %v1453_v56  ;;  %v5005_v0 = vld [vmem:[#allocation36_spill] sm:$0xff]  ;;  %v5008_v39 = vld [vmem:[#allocation47_spill] sm:$0xff] }
 0x619   : > { %4998 = vst [vmem:[#allocation26_spill] sm:$0xff] %v4210_v11  ;;  %v4214_v47 = vpop.eup %2884  ;;  %2904 = vpow2.f32 %v1696_v24  ;;  %v1692_v15 = vmul.f32 1.442695, %v1527_v43  ;;  %1920 = vadd.xlane.f32.xlu1 %v1919_v48  ;;  %1917 = vadd.xlane.f32.xlu0 %v1916_v45  ;;  %v1450_v21 = vpop.xlane.xlu0 %1449  ;;  %v2015_v24 = vadd.f32 %v4203_v46, %v4200_v13 }
 0x61a   : > { %5001 = vst [vmem:[#allocation28_spill] sm:$0xff] %v4214_v47  ;;  %v4216_v33 = vpop.eup %2886  ;;  %2906 = vpow2.f32 %v1690_v51  ;;  %v1822_v9 = vmul.f32 1.442695, %v1592_v12  ;;  %v1824_v59 = vmul.f32 1.442695, %v1593_v58  ;;  %v1590_v63 = vsub.f32 %v5003_v26, %v1450_v21  ;;  %v5007_v51 = vld [vmem:[#allocation45_spill] sm:$0xff] }
 0x61b   : > { %5002 = vst [vmem:[#allocation37_spill] sm:$0xff] %v4216_v33  ;;  %v4219_v50 = vpop.eup %2888  ;;  %2908 = vpow2.f32 %v1692_v15  ;;  %v1591_v23 = vsub.f32 %v5005_v0, %v1450_v21  ;;  %v1363_v56 = vpop.xlane.xlu1 %1362  ;;  %v2012_v43 = vadd.f32 %v4214_v47, %v4210_v11  ;;  %v5011_v47 = vld [vmem:[#allocation41_spill] sm:$0xff] }
 0x61c   : > { %5004 = vst [vmem:[#allocation39_spill] sm:$0xff] %v4219_v50  ;;  %v4226_v48 = vpop.eup %2890  ;;  %2910 = vpow2.f32 %v1822_v9  ;;  %v1818_v45 = vmul.f32 1.442695, %v1590_v63  ;;  %v1532_v12 = vsub.f32 %v5007_v51, %v1363_v56  ;;  %v1533_v26 = vsub.f32 %v5008_v39, %v1363_v56  ;;  %v5013_v63 = vld [vmem:[#allocation43_spill] sm:$0xff]  ;;  %v5016_v39 = vld [vmem:[#allocation48_spill] sm:$0xff] }
 0x61d   : > { %5006 = vst [vmem:[#allocation33_spill] sm:$0xff] %v4226_v48  ;;  %v4230_v58 = vpop.eup %2892  ;;  %2912 = vpow2.f32 %v1824_v59  ;;  %v1820_v15 = vmul.f32 1.442695, %v1591_v23  ;;  %2016 = vadd.xlane.f32.xlu1 %v2015_v24  ;;  %2013 = vadd.xlane.f32.xlu0 %v2012_v43  ;;  %v1360_v21 = vpop.xlane.xlu0 %1359  ;;  %v1925_v59 = vadd.f32 %v4219_v50, %v4216_v33 }
 0x61e   : > { %5009 = vst [vmem:[#allocation35_spill] sm:$0xff] %v4230_v58  ;;  %v4232_v0 = vpop.eup %2894  ;;  %2914 = vpow2.f32 %v1818_v45  ;;  %v1702_v13 = vmul.f32 1.442695, %v1532_v12  ;;  %v1704_v11 = vmul.f32 1.442695, %v1533_v26  ;;  %v1530_v46 = vsub.f32 %v5011_v47, %v1360_v21  ;;  %v5015_v45 = vld [vmem:[#allocation46_spill] sm:$0xff] }
 0x61f   : > { %5010 = vst [vmem:[#allocation38_spill] sm:$0xff] %v4232_v0  ;;  %v4235_v9 = vpop.eup %2896  ;;  %2916 = vpow2.f32 %v1820_v15  ;;  %v1531_v51 = vsub.f32 %v5013_v63, %v1360_v21  ;;  %v1459_v56 = vpop.xlane.xlu1 %1458  ;;  %v1922_v23 = vadd.f32 %v4230_v58, %v4226_v48  ;;  %v5019_v58 = vld [vmem:[#allocation42_spill] sm:$0xff] }
 0x620   : > { %5012 = vst [vmem:[#allocation40_spill] sm:$0xff] %v4235_v9  ;;  %v4242_v24 = vpop.eup %2898  ;;  %2918 = vpow2.f32 %v1702_v13  ;;  %v1698_v43 = vmul.f32 1.442695, %v1530_v46  ;;  %v1596_v12 = vsub.f32 %v5015_v45, %v1459_v56  ;;  %v1597_v47 = vsub.f32 %v5016_v39, %v1459_v56  ;;  %v5021_v46 = vld [vmem:[#allocation44_spill] sm:$0xff]  ;;  %v5024_v39 = vld [vmem:[#allocation55_spill] sm:$0xff] }
 0x621   : > { %5014 = vst [vmem:[#allocation34_spill] sm:$0xff] %v4242_v24  ;;  %v4246_v26 = vpop.eup %2900  ;;  %2920 = vpow2.f32 %v1704_v11  ;;  %v1700_v15 = vmul.f32 1.442695, %v1531_v51  ;;  %1926 = vadd.xlane.f32.xlu1 %v1925_v59  ;;  %1923 = vadd.xlane.f32.xlu0 %v1922_v23  ;;  %v1456_v21 = vpop.xlane.xlu0 %1455  ;;  %v2021_v11 = vadd.f32 %v4235_v9, %v4232_v0 }
 0x622   : > { %5017 = vst [vmem:[#allocation36_spill] sm:$0xff] %v4246_v26  ;;  %v4248_v63 = vpop.eup %2902  ;;  %2922 = vpow2.f32 %v1698_v43  ;;  %v1830_v33 = vmul.f32 1.442695, %v1596_v12  ;;  %v1832_v48 = vmul.f32 1.442695, %v1597_v47  ;;  %v1594_v50 = vsub.f32 %v5019_v58, %v1456_v21  ;;  %v5023_v43 = vld [vmem:[#allocation53_spill] sm:$0xff] }
 0x623   : > { %5018 = vst [vmem:[#allocation45_spill] sm:$0xff] %v4248_v63  ;;  %v4251_v13 = vpop.eup %2904  ;;  %2924 = vpow2.f32 %v1700_v15  ;;  %v1595_v45 = vsub.f32 %v5021_v46, %v1456_v21  ;;  %v1369_v56 = vpop.xlane.xlu1 %1368  ;;  %v2018_v51 = vadd.f32 %v4246_v26, %v4242_v24  ;;  %v5027_v26 = vld [vmem:[#allocation49_spill] sm:$0xff] }
 0x624   : > { %5020 = vst [vmem:[#allocation47_spill] sm:$0xff] %v4251_v13  ;;  %v4258_v59 = vpop.eup %2906  ;;  %2926 = vpow2.f32 %v1830_v33  ;;  %v1826_v23 = vmul.f32 1.442695, %v1594_v50  ;;  %v1536_v12 = vsub.f32 %v5023_v43, %v1369_v56  ;;  %v1537_v58 = vsub.f32 %v5024_v39, %v1369_v56  ;;  %v5029_v50 = vld [vmem:[#allocation51_spill] sm:$0xff]  ;;  %v5032_v39 = vld [vmem:[#allocation56_spill] sm:$0xff] }
 0x625   : > { %5022 = vst [vmem:[#allocation41_spill] sm:$0xff] %v4258_v59  ;;  %v4262_v47 = vpop.eup %2908  ;;  %2928 = vpow2.f32 %v1832_v48  ;;  %v1828_v15 = vmul.f32 1.442695, %v1595_v45  ;;  %2022 = vadd.xlane.f32.xlu1 %v2021_v11  ;;  %2019 = vadd.xlane.f32.xlu0 %v2018_v51  ;;  %v1366_v21 = vpop.xlane.xlu0 %1365  ;;  %v1931_v48 = vadd.f32 %v4251_v13, %v4248_v63 }
 0x626   : > { %5025 = vst [vmem:[#allocation43_spill] sm:$0xff] %v4262_v47  ;;  %v4264_v46 = vpop.eup %2910  ;;  %2930 = vpow2.f32 %v1826_v23  ;;  %v1710_v0 = vmul.f32 1.442695, %v1536_v12  ;;  %v1712_v24 = vmul.f32 1.442695, %v1537_v58  ;;  %v1534_v9 = vsub.f32 %v5027_v26, %v1366_v21  ;;  %v5031_v23 = vld [vmem:[#allocation54_spill] sm:$0xff] }
 0x627   : > { %5026 = vst [vmem:[#allocation46_spill] sm:$0xff] %v4264_v46  ;;  %v4267_v33 = vpop.eup %2912  ;;  %2932 = vpow2.f32 %v1828_v15  ;;  %v1535_v43 = vsub.f32 %v5029_v50, %v1366_v21  ;;  %v1465_v56 = vpop.xlane.xlu1 %1464  ;;  %v1928_v45 = vadd.f32 %v4262_v47, %v4258_v59  ;;  %v5035_v47 = vld [vmem:[#allocation50_spill] sm:$0xff] }
 0x628   : > { %5028 = vst [vmem:[#allocation48_spill] sm:$0xff] %v4267_v33  ;;  %v4274_v11 = vpop.eup %2914  ;;  %2934 = vpow2.f32 %v1710_v0  ;;  %v1706_v51 = vmul.f32 1.442695, %v1534_v9  ;;  %v1600_v12 = vsub.f32 %v5031_v23, %v1465_v56  ;;  %v1601_v26 = vsub.f32 %v5032_v39, %v1465_v56  ;;  %v5037_v9 = vld [vmem:[#allocation52_spill] sm:$0xff]  ;;  %v5040_v39 = vld [vmem:[#allocation63_spill] sm:$0xff] }
 0x629   : > { %5030 = vst [vmem:[#allocation42_spill] sm:$0xff] %v4274_v11  ;;  %v4278_v58 = vpop.eup %2916  ;;  %2936 = vpow2.f32 %v1712_v24  ;;  %v1708_v15 = vmul.f32 1.442695, %v1535_v43  ;;  %1932 = vadd.xlane.f32.xlu1 %v1931_v48  ;;  %1929 = vadd.xlane.f32.xlu0 %v1928_v45  ;;  %v1462_v21 = vpop.xlane.xlu0 %1461  ;;  %v2027_v24 = vadd.f32 %v4267_v33, %v4264_v46 }
 0x62a   : > { %5033 = vst [vmem:[#allocation44_spill] sm:$0xff] %v4278_v58  ;;  %v4280_v50 = vpop.eup %2918  ;;  %2938 = vpow2.f32 %v1706_v51  ;;  %v1838_v63 = vmul.f32 1.442695, %v1600_v12  ;;  %v1840_v59 = vmul.f32 1.442695, %v1601_v26  ;;  %v1598_v13 = vsub.f32 %v5035_v47, %v1462_v21  ;;  %v5039_v51 = vld [vmem:[#allocation61_spill] sm:$0xff] }
 0x62b   : > { %5034 = vst [vmem:[#allocation53_spill] sm:$0xff] %v4280_v50  ;;  %v4283_v0 = vpop.eup %2920  ;;  %2940 = vpow2.f32 %v1708_v15  ;;  %v1599_v23 = vsub.f32 %v5037_v9, %v1462_v21  ;;  %v1375_v56 = vpop.xlane.xlu1 %1374  ;;  %v2024_v43 = vadd.f32 %v4278_v58, %v4274_v11  ;;  %v5043_v58 = vld [vmem:[#allocation57_spill] sm:$0xff] }
 0x62c   : > { %5036 = vst [vmem:[#allocation55_spill] sm:$0xff] %v4283_v0  ;;  %v4290_v48 = vpop.eup %2922  ;;  %2942 = vpow2.f32 %v1838_v63  ;;  %v1834_v45 = vmul.f32 1.442695, %v1598_v13  ;;  %v1540_v12 = vsub.f32 %v5039_v51, %v1375_v56  ;;  %v1541_v47 = vsub.f32 %v5040_v39, %v1375_v56  ;;  %v5045_v13 = vld [vmem:[#allocation59_spill] sm:$0xff]  ;;  %v5048_v39 = vld [vmem:[#allocation64_spill] sm:$0xff] }
 0x62d   : > { %5038 = vst [vmem:[#allocation49_spill] sm:$0xff] %v4290_v48  ;;  %v4294_v26 = vpop.eup %2924  ;;  %2944 = vpow2.f32 %v1840_v59  ;;  %v1836_v15 = vmul.f32 1.442695, %v1599_v23  ;;  %2028 = vadd.xlane.f32.xlu1 %v2027_v24  ;;  %2025 = vadd.xlane.f32.xlu0 %v2024_v43  ;;  %v1372_v21 = vpop.xlane.xlu0 %1371  ;;  %v1937_v59 = vadd.f32 %v4283_v0, %v4280_v50 }
 0x62e   : > { %5041 = vst [vmem:[#allocation51_spill] sm:$0xff] %v4294_v26  ;;  %v4296_v9 = vpop.eup %2926  ;;  %2946 = vpow2.f32 %v1834_v45  ;;  %v1718_v46 = vmul.f32 1.442695, %v1540_v12  ;;  %v1720_v11 = vmul.f32 1.442695, %v1541_v47  ;;  %v1538_v33 = vsub.f32 %v5043_v58, %v1372_v21  ;;  %v5047_v45 = vld [vmem:[#allocation62_spill] sm:$0xff] }
 0x62f   : > { %5042 = vst [vmem:[#allocation54_spill] sm:$0xff] %v4296_v9  ;;  %v4299_v63 = vpop.eup %2928  ;;  %2948 = vpow2.f32 %v1836_v15  ;;  %v1539_v51 = vsub.f32 %v5045_v13, %v1372_v21  ;;  %v1471_v56 = vpop.xlane.xlu1 %1470  ;;  %v1934_v23 = vadd.f32 %v4294_v26, %v4290_v48  ;;  %v5051_v26 = vld [vmem:[#allocation58_spill] sm:$0xff] }
 0x630   : > { %5044 = vst [vmem:[#allocation56_spill] sm:$0xff] %v4299_v63  ;;  %v4306_v24 = vpop.eup %2930  ;;  %2950 = vpow2.f32 %v1718_v46  ;;  %v1714_v43 = vmul.f32 1.442695, %v1538_v33  ;;  %v1604_v12 = vsub.f32 %v5047_v45, %v1471_v56  ;;  %v1605_v58 = vsub.f32 %v5048_v39, %v1471_v56  ;;  %v5053_v33 = vld [vmem:[#allocation60_spill] sm:$0xff]  ;;  %v5056_v39 = vld [vmem:[#allocation71_spill] sm:$0xff] }
 0x631   : > { %5046 = vst [vmem:[#allocation50_spill] sm:$0xff] %v4306_v24  ;;  %v4310_v47 = vpop.eup %2932  ;;  %2952 = vpow2.f32 %v1720_v11  ;;  %v1716_v15 = vmul.f32 1.442695, %v1539_v51  ;;  %1938 = vadd.xlane.f32.xlu1 %v1937_v59  ;;  %1935 = vadd.xlane.f32.xlu0 %v1934_v23  ;;  %v1468_v21 = vpop.xlane.xlu0 %1467  ;;  %v2033_v11 = vadd.f32 %v4299_v63, %v4296_v9 }
 0x632   : > { %5049 = vst [vmem:[#allocation52_spill] sm:$0xff] %v4310_v47  ;;  %v4312_v13 = vpop.eup %2934  ;;  %2954 = vpow2.f32 %v1714_v43  ;;  %v1846_v50 = vmul.f32 1.442695, %v1604_v12  ;;  %v1848_v48 = vmul.f32 1.442695, %v1605_v58  ;;  %v1602_v0 = vsub.f32 %v5051_v26, %v1468_v21  ;;  %v5055_v43 = vld [vmem:[#allocation69_spill] sm:$0xff] }
 0x633   : > { %5050 = vst [vmem:[#allocation61_spill] sm:$0xff] %v4312_v13  ;;  %v4315_v46 = vpop.eup %2936  ;;  %2956 = vpow2.f32 %v1716_v15  ;;  %v1603_v45 = vsub.f32 %v5053_v33, %v1468_v21  ;;  %v1381_v56 = vpop.xlane.xlu1 %1380  ;;  %v2030_v51 = vadd.f32 %v4310_v47, %v4306_v24  ;;  %v5059_v47 = vld [vmem:[#allocation65_spill] sm:$0xff] }
 0x634   : > { %5052 = vst [vmem:[#allocation63_spill] sm:$0xff] %v4315_v46  ;;  %v4322_v59 = vpop.eup %2938  ;;  %2958 = vpow2.f32 %v1846_v50  ;;  %v1842_v23 = vmul.f32 1.442695, %v1602_v0  ;;  %v1544_v12 = vsub.f32 %v5055_v43, %v1381_v56  ;;  %v1545_v26 = vsub.f32 %v5056_v39, %v1381_v56  ;;  %v5061_v0 = vld [vmem:[#allocation67_spill] sm:$0xff]  ;;  %v5064_v39 = vld [vmem:[#allocation72_spill] sm:$0xff] }
 0x635   : > { %5054 = vst [vmem:[#allocation57_spill] sm:$0xff] %v4322_v59  ;;  %v4326_v58 = vpop.eup %2940  ;;  %2960 = vpow2.f32 %v1848_v48  ;;  %v1844_v15 = vmul.f32 1.442695, %v1603_v45  ;;  %2034 = vadd.xlane.f32.xlu1 %v2033_v11  ;;  %2031 = vadd.xlane.f32.xlu0 %v2030_v51  ;;  %v1378_v21 = vpop.xlane.xlu0 %1377  ;;  %v1943_v48 = vadd.f32 %v4315_v46, %v4312_v13 }
 0x636   : > { %5057 = vst [vmem:[#allocation59_spill] sm:$0xff] %v4326_v58  ;;  %v4328_v33 = vpop.eup %2942  ;;  %2962 = vpow2.f32 %v1842_v23  ;;  %v1726_v9 = vmul.f32 1.442695, %v1544_v12  ;;  %v1728_v24 = vmul.f32 1.442695, %v1545_v26  ;;  %v1542_v63 = vsub.f32 %v5059_v47, %v1378_v21  ;;  %v5063_v23 = vld [vmem:[#allocation70_spill] sm:$0xff] }
 0x637   : > { %5058 = vst [vmem:[#allocation62_spill] sm:$0xff] %v4328_v33  ;;  %v4331_v50 = vpop.eup %2944  ;;  %2964 = vpow2.f32 %v1844_v15  ;;  %v1543_v43 = vsub.f32 %v5061_v0, %v1378_v21  ;;  %v1477_v56 = vpop.xlane.xlu1 %1476  ;;  %v1940_v45 = vadd.f32 %v4326_v58, %v4322_v59  ;;  %v5067_v58 = vld [vmem:[#allocation66_spill] sm:$0xff] }
 0x638   : > { %5060 = vst [vmem:[#allocation64_spill] sm:$0xff] %v4331_v50  ;;  %v4338_v11 = vpop.eup %2946  ;;  %2966 = vpow2.f32 %v1726_v9  ;;  %v1722_v51 = vmul.f32 1.442695, %v1542_v63  ;;  %v1608_v12 = vsub.f32 %v5063_v23, %v1477_v56  ;;  %v1609_v47 = vsub.f32 %v5064_v39, %v1477_v56  ;;  %v5069_v63 = vld [vmem:[#allocation68_spill] sm:$0xff]  ;;  %v5072_v39 = vld [vmem:[#allocation79_spill] sm:$0xff] }
 0x639   : > { %5062 = vst [vmem:[#allocation58_spill] sm:$0xff] %v4338_v11  ;;  %v4342_v26 = vpop.eup %2948  ;;  %2968 = vpow2.f32 %v1728_v24  ;;  %v1724_v15 = vmul.f32 1.442695, %v1543_v43  ;;  %1944 = vadd.xlane.f32.xlu1 %v1943_v48  ;;  %1941 = vadd.xlane.f32.xlu0 %v1940_v45  ;;  %v1474_v21 = vpop.xlane.xlu0 %1473  ;;  %v2039_v24 = vadd.f32 %v4331_v50, %v4328_v33 }
 0x63a   : > { %5065 = vst [vmem:[#allocation60_spill] sm:$0xff] %v4342_v26  ;;  %v4344_v0 = vpop.eup %2950  ;;  %2970 = vpow2.f32 %v1722_v51  ;;  %v1854_v13 = vmul.f32 1.442695, %v1608_v12  ;;  %v1856_v59 = vmul.f32 1.442695, %v1609_v47  ;;  %v1606_v46 = vsub.f32 %v5067_v58, %v1474_v21  ;;  %v5071_v51 = vld [vmem:[#allocation77_spill] sm:$0xff] }
 0x63b   : > { %5066 = vst [vmem:[#allocation69_spill] sm:$0xff] %v4344_v0  ;;  %v4347_v9 = vpop.eup %2952  ;;  %2972 = vpow2.f32 %v1724_v15  ;;  %v1607_v23 = vsub.f32 %v5069_v63, %v1474_v21  ;;  %v1387_v56 = vpop.xlane.xlu1 %1386  ;;  %v2036_v43 = vadd.f32 %v4342_v26, %v4338_v11  ;;  %v5075_v26 = vld [vmem:[#allocation73_spill] sm:$0xff] }
 0x63c   : > { %5068 = vst [vmem:[#allocation71_spill] sm:$0xff] %v4347_v9  ;;  %v4354_v48 = vpop.eup %2954  ;;  %2974 = vpow2.f32 %v1854_v13  ;;  %v1850_v45 = vmul.f32 1.442695, %v1606_v46  ;;  %v1548_v12 = vsub.f32 %v5071_v51, %v1387_v56  ;;  %v1549_v58 = vsub.f32 %v5072_v39, %v1387_v56  ;;  %v5077_v46 = vld [vmem:[#allocation75_spill] sm:$0xff]  ;;  %v5080_v39 = vld [vmem:[#allocation80_spill] sm:$0xff] }
 0x63d   : > { %5070 = vst [vmem:[#allocation65_spill] sm:$0xff] %v4354_v48  ;;  %v4358_v47 = vpop.eup %2956  ;;  %2976 = vpow2.f32 %v1856_v59  ;;  %v1852_v15 = vmul.f32 1.442695, %v1607_v23  ;;  %2040 = vadd.xlane.f32.xlu1 %v2039_v24  ;;  %2037 = vadd.xlane.f32.xlu0 %v2036_v43  ;;  %v1384_v21 = vpop.xlane.xlu0 %1383  ;;  %v1949_v59 = vadd.f32 %v4347_v9, %v4344_v0 }
 0x63e   : > { %5073 = vst [vmem:[#allocation67_spill] sm:$0xff] %v4358_v47  ;;  %v4360_v63 = vpop.eup %2958  ;;  %2978 = vpow2.f32 %v1850_v45  ;;  %v1734_v33 = vmul.f32 1.442695, %v1548_v12  ;;  %v1736_v11 = vmul.f32 1.442695, %v1549_v58  ;;  %v1546_v50 = vsub.f32 %v5075_v26, %v1384_v21  ;;  %v5079_v45 = vld [vmem:[#allocation78_spill] sm:$0xff] }
 0x63f   : > { %5074 = vst [vmem:[#allocation70_spill] sm:$0xff] %v4360_v63  ;;  %v4363_v13 = vpop.eup %2960  ;;  %2980 = vpow2.f32 %v1852_v15  ;;  %v1547_v51 = vsub.f32 %v5077_v46, %v1384_v21  ;;  %v1483_v56 = vpop.xlane.xlu1 %1482  ;;  %v1946_v23 = vadd.f32 %v4358_v47, %v4354_v48  ;;  %v5083_v47 = vld [vmem:[#allocation74_spill] sm:$0xff] }
 0x640   : > { %5076 = vst [vmem:[#allocation72_spill] sm:$0xff] %v4363_v13  ;;  %v4370_v24 = vpop.eup %2962  ;;  %2982 = vpow2.f32 %v1734_v33  ;;  %v1730_v43 = vmul.f32 1.442695, %v1546_v50  ;;  %v1612_v12 = vsub.f32 %v5079_v45, %v1483_v56  ;;  %v1613_v26 = vsub.f32 %v5080_v39, %v1483_v56  ;;  %v5084_v50 = vld [vmem:[#allocation76_spill] sm:$0xff]  ;;  %v5087_v39 = vld [vmem:[#allocation86_spill] sm:$0xff] }
 0x641   : > { %5078 = vst [vmem:[#allocation66_spill] sm:$0xff] %v4370_v24  ;;  %v4374_v58 = vpop.eup %2964  ;;  %2984 = vpow2.f32 %v1736_v11  ;;  %v1732_v15 = vmul.f32 1.442695, %v1547_v51  ;;  %1950 = vadd.xlane.f32.xlu1 %v1949_v59  ;;  %1947 = vadd.xlane.f32.xlu0 %v1946_v23  ;;  %v1480_v21 = vpop.xlane.xlu0 %1479  ;;  %v2045_v11 = vadd.f32 %v4363_v13, %v4360_v63 }
 0x642   : > { %5081 = vst [vmem:[#allocation68_spill] sm:$0xff] %v4374_v58  ;;  %v4376_v46 = vpop.eup %2966  ;;  %2986 = vpow2.f32 %v1730_v43  ;;  %v1862_v0 = vmul.f32 1.442695, %v1612_v12  ;;  %v1864_v48 = vmul.f32 1.442695, %v1613_v26  ;;  %v1610_v9 = vsub.f32 %v5083_v47, %v1480_v21  ;;  %v5086_v43 = vld [vmem:[#allocation85_spill] sm:$0xff] }
 0x643   : > { %5082 = vst [vmem:[#allocation77_spill] sm:$0xff] %v4376_v46  ;;  %v4379_v33 = vpop.eup %2968  ;;  %2988 = vpow2.f32 %v1732_v15  ;;  %v1611_v45 = vsub.f32 %v5084_v50, %v1480_v21  ;;  %v1393_v56 = vpop.xlane.xlu1 %1392  ;;  %v2042_v51 = vadd.f32 %v4374_v58, %v4370_v24  ;;  %v5089_v58 = vld [vmem:[#allocation81_spill] sm:$0xff] }
 0x644   : > { %v4386_v59 = vpop.eup %2970  ;;  %2990 = vpow2.f32 %v1862_v0  ;;  %v1858_v23 = vmul.f32 1.442695, %v1610_v9  ;;  %v1552_v12 = vsub.f32 %v5086_v43, %v1393_v56  ;;  %v1553_v47 = vsub.f32 %v5087_v39, %v1393_v56  ;;  %v5090_v9 = vld [vmem:[#allocation83_spill] sm:$0xff] }
 0x645   : > { %5085 = vst [vmem:[#allocation79_spill] sm:$0xff] %v4386_v59  ;;  %v4390_v26 = vpop.eup %2972  ;;  %2992 = vpow2.f32 %v1864_v48  ;;  %v1860_v15 = vmul.f32 1.442695, %v1611_v45  ;;  %2046 = vadd.xlane.f32.xlu1 %v2045_v11  ;;  %2043 = vadd.xlane.f32.xlu0 %v2042_v51  ;;  %v1390_v21 = vpop.xlane.xlu0 %1389  ;;  %v1955_v48 = vadd.f32 %v4379_v33, %v4376_v46 }
 0x646   : > { %5088 = vst [vmem:[#allocation73_spill] sm:$0xff] %v4390_v26  ;;  %v4392_v50 = vpop.eup %2974  ;;  %2994 = vpow2.f32 %v1858_v23  ;;  %v1742_v63 = vmul.f32 1.442695, %v1552_v12  ;;  %v1744_v24 = vmul.f32 1.442695, %v1553_v47  ;;  %v1550_v13 = vsub.f32 %v5089_v58, %v1390_v21  ;;  %v5091_v12 = vld [vmem:[#allocation87_spill] sm:$0xff] }
 0x647   : > { %v4395_v0 = vpop.eup %2976  ;;  %2996 = vpow2.f32 %v1860_v15  ;;  %v1551_v43 = vsub.f32 %v5090_v9, %v1390_v21  ;;  %v1489_v56 = vpop.xlane.xlu1 %1488  ;;  %v1952_v45 = vadd.f32 %v4390_v26, %v4386_v59  ;;  %v5092_v26 = vld [vmem:[#allocation82_spill] sm:$0xff] }
 0x648   : > { %v4402_v11 = vpop.eup %2978  ;;  %2998 = vpow2.f32 %v1742_v63  ;;  %v1738_v51 = vmul.f32 1.442695, %v1550_v13  ;;  %v1616_v23 = vsub.f32 %v3940_v3, %v1489_v56  ;;  %v1617_v58 = vsub.f32 %v5091_v12, %v1489_v56  ;;  %v5093_v3 = vld [vmem:[#allocation84_spill] sm:$0xff] }
 0x649   : > { %v4406_v39 = vpop.eup %2980  ;;  %3000 = vpow2.f32 %v1744_v24  ;;  %v1740_v47 = vmul.f32 1.442695, %v1551_v43  ;;  %1956 = vadd.xlane.f32.xlu1 %v1955_v48  ;;  %1953 = vadd.xlane.f32.xlu0 %v1952_v45  ;;  %v1486_v15 = vpop.xlane.xlu0 %1485  ;;  %v2051_v56 = vadd.f32 %v4395_v0, %v4392_v50 }
 0x64a   : > { %v4408_v21 = vpop.eup %2982  ;;  %3002 = vpow2.f32 %v1738_v51  ;;  %v1870_v9 = vmul.f32 1.442695, %v1616_v23  ;;  %v1872_v59 = vmul.f32 1.442695, %v1617_v58  ;;  %v1614_v46 = vsub.f32 %v5092_v26, %v1486_v15 }
 0x64b   : > { %v4411_v63 = vpop.eup %2984  ;;  %3004 = vpow2.f32 %v1740_v47  ;;  %v1615_v13 = vsub.f32 %v5093_v3, %v1486_v15  ;;  %v2048_v24 = vadd.f32 %v4406_v39, %v4402_v11 }
 0x64c   : > { %v4418_v43 = vpop.eup %2986  ;;  %3006 = vpow2.f32 %v1870_v9  ;;  %v1866_v48 = vmul.f32 1.442695, %v1614_v46  ;;  %v1961_v58 = vadd.f32 %v4411_v63, %v4408_v21 }
 0x64d   : > { %v4420_v45 = vpop.eup %2988  ;;  %3008 = vpow2.f32 %v1872_v59  ;;  %v1868_v51 = vmul.f32 1.442695, %v1615_v13  ;;  %2052 = vadd.xlane.f32.xlu1 %v2051_v56  ;;  %2049 = vadd.xlane.f32.xlu0 %v2048_v24 }
 0x64e   : > { %v4422_v26 = vpop.eup %2990  ;;  %3010 = vpow2.f32 %v1866_v48  ;;  %v1958_v23 = vadd.f32 %v4420_v45, %v4418_v43 }
 0x64f   : > { %5094 = vst [vmem:[#allocation75_spill] sm:$0xff] %v4422_v26  ;;  %v4426_v12 = vpop.eup %2992  ;;  %3012 = vpow2.f32 %v1868_v51 }
 0x650   : > { %5095 = vst [vmem:[#allocation78_spill] sm:$0xff] %v4426_v12  ;;  %v4430_v47 = vpop.eup %2994  ;;  %v2057_v3 = vadd.f32 %v4426_v12, %v4422_v26 }
 0x651   : > { %5096 = vst [vmem:[#allocation80_spill] sm:$0xff] %v4430_v47  ;;  %v4432_v46 = vpop.eup %2996  ;;  %1962 = vadd.xlane.f32.xlu1 %v1961_v58  ;;  %1959 = vadd.xlane.f32.xlu0 %v1958_v23 }
 0x652   : > { %5097 = vst [vmem:[#allocation74_spill] sm:$0xff] %v4432_v46  ;;  %v4434_v59 = vpop.eup %2998  ;;  %v2054_v15 = vadd.f32 %v4432_v46, %v4430_v47 }
 0x653   : > { %5098 = vst [vmem:[#allocation76_spill] sm:$0xff] %v4434_v59  ;;  %v4438_v9 = vpop.eup %3000 }
 0x654   : > { %5099 = vst [vmem:[#allocation85_spill] sm:$0xff] %v4438_v9  ;;  %v4442_v13 = vpop.eup %3002  ;;  %v1967_v23 = vadd.f32 %v4438_v9, %v4434_v59 }
 0x655   : > { %5100 = vst [vmem:[#allocation86_spill] sm:$0xff] %v4442_v13  ;;  %v4444_v56 = vpop.eup %3004  ;;  %2058 = vadd.xlane.f32.xlu1 %v2057_v3  ;;  %2055 = vadd.xlane.f32.xlu0 %v2054_v15 }
 0x656   : > { %5101 = vst [vmem:[#allocation81_spill] sm:$0xff] %v4444_v56  ;;  %v4446_v24 = vpop.eup %3006  ;;  %v1964_v48 = vadd.f32 %v4444_v56, %v4442_v13  ;;  %v303_v56 = vld [vmem:[%s4697_s6 + $0x8] sm:$0xff] }
 0x657   : > { %5102 = vst [vmem:[#allocation83_spill] sm:$0xff] %v4446_v24  ;;  %v4450_v51 = vpop.eup %3008 }
 0x658   : > { %5103 = vst [vmem:[#allocation87_spill] sm:$0xff] %v4450_v51  ;;  %v4454_v58 = vpop.eup %3010  ;;  %v2063_v15 = vadd.f32 %v4450_v51, %v4446_v24 }
 0x659   : > { %5104 = vst [vmem:[#allocation82_spill] sm:$0xff] %v4454_v58  ;;  %v4456_v47 = vpop.eup %3012  ;;  %1968 = vadd.xlane.f32.xlu1 %v1967_v23  ;;  %1965 = vadd.xlane.f32.xlu0 %v1964_v48  ;;  %v304_v48 = vld [vmem:[%s4697_s6 + $0x10] sm:$0xff]  ;;  %v302_v23 = vld [vmem:[%s4697_s6] sm:$0xff] }
 0x65a   : > { %5105 = vst [vmem:[#allocation84_spill] sm:$0xff] %v4456_v47  ;;  %v2060_v3 = vadd.f32 %v4456_v47, %v4454_v58 }
 0x65d   : > { %2064 = vadd.xlane.f32.xlu1 %v2063_v15  ;;  %2061 = vadd.xlane.f32.xlu0 %v2060_v3 }
 0x66a   : > { %v1876_v13 = vpop.xlane.xlu0 %1875 }
 0x66b   : > { %3014 = vrcp.f32 %v1876_v13  ;;  %v305_v13 = vld [vmem:[%s4697_s6 + $0x18] sm:$0xff] }
 0x66c   : > { %v1879_v59 = vpop.xlane.xlu1 %1878 }
 0x66d   : > { %3016 = vrcp.f32 %v1879_v59 }
 0x66e   : > { %2419 = vperm.xlu1 %2741, %v303_v56   ;;  %v1972_v9 = vpop.xlane.xlu0 %1971 }
 0x66f   : > { %3018 = vrcp.f32 %v1972_v9 }
 0x672   : > { %2424 = vperm.xlu1 %2741, %v304_v48   ;;  %v1975_v3 = vpop.xlane.xlu1 %1974 }
 0x673   : > { %3020 = vrcp.f32 %v1975_v3  ;;  %2414 = vperm.xlu0 %2740, %v302_v23  }
 0x675   : > { %v3015_v59 = vpop.eup %3014 }
 0x676   : > { %2429 = vperm.xlu1 %2741, %v305_v13   ;;  %v1885_v56 = vpop.xlane.xlu1 %1884  ;;  %v1882_v15 = vpop.xlane.xlu0 %1881  ;;  %v2131_v47 = vmul.f32 %v3015_v59, %v3966_v17  ;;  %v2130_v9 = vmul.f32 %v3015_v59, %v3962_v35 }
 0x677   : > { %v3017_v58 = vpop.eup %3016  ;;  %3022 = vrcp.f32 %v1885_v56 }
 0x678   : > { %3024 = vrcp.f32 %v1882_v15  ;;  %v2133_v24 = vmul.f32 %v3017_v58, %v3971_v28  ;;  %v2132_v48 = vmul.f32 %v3017_v58, %v3968_v20 }
 0x679   : > { %v3019_v26 = vpop.eup %3018 }
 0x67a   : > { %v1981_v23 = vpop.xlane.xlu1 %1980  ;;  %v1978_v3 = vpop.xlane.xlu0 %1977  ;;  %v2259_v51 = vpack.c.bf16 %v2133_v24, %v2131_v47  ;;  %v2258_v46 = vpack.c.bf16 %v2132_v48, %v2130_v9  ;;  %v2195_v17 = vmul.f32 %v3019_v26, %v3980_v36  ;;  %v2194_v35 = vmul.f32 %v3019_v26, %v3976_v61 }
 0x67b   : > { %3026 = vrcp.f32 %v1981_v23 }
 0x67c   : > { %3028 = vrcp.f32 %v1978_v3  ;;  %2322 = vmatprep.subr.bf16.mxu0 %v2259_v51 }
 0x67d   : > { %v3021_v13 = vpop.eup %3020  ;;  %2323 = vmatpush1.bf16.xpose.msra.mxu0 %v2258_v46 }
 0x67e   : > { %v1891_v56 = vpop.xlane.xlu1 %1890  ;;  %v1888_v12 = vpop.xlane.xlu0 %1887  ;;  %v2197_v28 = vmul.f32 %v3021_v13, %v3992_v37  ;;  %v2196_v20 = vmul.f32 %v3021_v13, %v3988_v31 }
 0x67f   : > { %3030 = vrcp.f32 %v1891_v56 }
 0x680   : > { %3032 = vrcp.f32 %v1888_v12  ;;  %v2291_v47 = vpack.c.bf16 %v2197_v28, %v2195_v17  ;;  %v2290_v24 = vpack.c.bf16 %v2196_v20, %v2194_v35 }
 0x681   : > { %v3023_v58 = vpop.eup %3022 }
 0x682   : > { %v3025_v59 = vpop.eup %3024  ;;  %v1987_v15 = vpop.xlane.xlu1 %1986  ;;  %2365 = vmatprep.subr.bf16.mxu1 %v2291_v47  ;;  %v2137_v46 = vmul.f32 %v3023_v58, %v3997_v40  ;;  %v2136_v9 = vmul.f32 %v3023_v58, %v3994_v44 }
 0x683   : > { %v1984_v51 = vpop.xlane.xlu0 %1983  ;;  %3034 = vrcp.f32 %v1987_v15  ;;  %2366 = vmatpush1.bf16.xpose.msra.mxu1 %v2290_v24  ;;  %v2135_v36 = vmul.f32 %v3025_v59, %v4006_v57  ;;  %v2134_v61 = vmul.f32 %v3025_v59, %v4002_v42 }
 0x684   : > { %3036 = vrcp.f32 %v1984_v51 }
 0x685   : > { %v3027_v31 = vpop.eup %3026  ;;  %v2261_v37 = vpack.c.bf16 %v2137_v46, %v2135_v36  ;;  %v2260_v26 = vpack.c.bf16 %v2136_v9, %v2134_v61 }
 0x686   : > { %v3029_v12 = vpop.eup %3028  ;;  %v1897_v48 = vpop.xlane.xlu1 %1896  ;;  %v2201_v3 = vmul.f32 %v3027_v31, %v4011_v54  ;;  %v2200_v13 = vmul.f32 %v3027_v31, %v4008_v52 }
 0x687   : > { %v1894_v23 = vpop.xlane.xlu0 %1893  ;;  %3038 = vrcp.f32 %v1897_v48  ;;  %2324 = vmatprep.subr.bf16.mxu0 %v2261_v37  ;;  %v2199_v44 = vmul.f32 %v3029_v12, %v4022_v8  ;;  %v2198_v40 = vmul.f32 %v3029_v12, %v4018_v5 }
 0x688   : > { %3040 = vrcp.f32 %v1894_v23  ;;  %2325 = vmatpush1.bf16.xpose.msra.mxu0 %v2260_v26 }
 0x689   : > { %v3031_v42 = vpop.eup %3030  ;;  %v2293_v57 = vpack.c.bf16 %v2201_v3, %v2199_v44  ;;  %v2292_v56 = vpack.c.bf16 %v2200_v13, %v2198_v40 }
 0x68a   : > { %v3033_v17 = vpop.eup %3032  ;;  %v1993_v28 = vpop.xlane.xlu1 %1992  ;;  %v2141_v20 = vmul.f32 %v3031_v42, %v4027_v55  ;;  %v2140_v54 = vmul.f32 %v3031_v42, %v4024_v10 }
 0x68b   : > { %v1990_v35 = vpop.xlane.xlu0 %1989  ;;  %3042 = vrcp.f32 %v1993_v28  ;;  %2367 = vmatprep.subr.bf16.mxu1 %v2293_v57  ;;  %v2139_v52 = vmul.f32 %v3033_v17, %v4038_v30  ;;  %v2138_v8 = vmul.f32 %v3033_v17, %v4034_v62 }
 0x68c   : > { %3044 = vrcp.f32 %v1990_v35  ;;  %2368 = vmatpush1.bf16.xpose.msra.mxu1 %v2292_v56 }
 0x68d   : > { %v3035_v5 = vpop.eup %3034  ;;  %v2263_v47 = vpack.c.bf16 %v2141_v20, %v2139_v52  ;;  %v2262_v24 = vpack.c.bf16 %v2140_v54, %v2138_v8 }
 0x68e   : > { %v3037_v58 = vpop.eup %3036  ;;  %v1903_v59 = vpop.xlane.xlu1 %1902  ;;  %v2205_v51 = vmul.f32 %v3035_v5, %v4043_v41  ;;  %v2204_v55 = vmul.f32 %v3035_v5, %v4040_v49 }
 0x68f   : > { %v1900_v15 = vpop.xlane.xlu0 %1899  ;;  %3046 = vrcp.f32 %v1903_v59  ;;  %2326 = vmatprep.subr.bf16.mxu0 %v2263_v47  ;;  %v2203_v10 = vmul.f32 %v3037_v58, %v4054_v60  ;;  %v2202_v30 = vmul.f32 %v3037_v58, %v4050_v38 }
 0x690   : > { %3048 = vrcp.f32 %v1900_v15  ;;  %2327 = vmatpush1.bf16.xpose.msra.mxu0 %v2262_v24  ;;  %v5106_v15 = vld [vmem:[#allocation15_spill] sm:$0xff] }
 0x691   : > { %v3039_v62 = vpop.eup %3038  ;;  %v2295_v46 = vpack.c.bf16 %v2205_v51, %v2203_v10  ;;  %v2294_v9 = vpack.c.bf16 %v2204_v55, %v2202_v30  ;;  %v5107_v55 = vld [vmem:[#allocation13_spill] sm:$0xff] }
 0x692   : > { %v3041_v36 = vpop.eup %3040  ;;  %v1999_v61 = vpop.xlane.xlu1 %1998  ;;  %v2145_v37 = vmul.f32 %v3039_v62, %v4059_v53  ;;  %v2144_v41 = vmul.f32 %v3039_v62, %v4056_v7  ;;  %v5109_v30 = vld [vmem:[#allocation9_spill] sm:$0xff] }
 0x693   : > { %v1996_v31 = vpop.xlane.xlu0 %1995  ;;  %3050 = vrcp.f32 %v1999_v61  ;;  %2369 = vmatprep.subr.bf16.mxu1 %v2295_v46  ;;  %v2143_v49 = vmul.f32 %v3041_v36, %v4070_v25  ;;  %v2142_v60 = vmul.f32 %v3041_v36, %v4066_v19 }
 0x694   : > { %3052 = vrcp.f32 %v1996_v31  ;;  %2370 = vmatpush1.bf16.xpose.msra.mxu1 %v2294_v9  ;;  %v5110_v31 = vld [vmem:[#allocation16_spill] sm:$0xff] }
 0x695   : > { %v3043_v38 = vpop.eup %3042  ;;  %v2265_v26 = vpack.c.bf16 %v2145_v37, %v2143_v49  ;;  %v2264_v12 = vpack.c.bf16 %v2144_v41, %v2142_v60  ;;  %v5111_v41 = vld [vmem:[#allocation14_spill] sm:$0xff]  ;;  %v5112_v60 = vld [vmem:[#allocation12_spill] sm:$0xff] }
 0x696   : > { %v3045_v48 = vpop.eup %3044  ;;  %v1909_v23 = vpop.xlane.xlu1 %1908  ;;  %v2209_v13 = vmul.f32 %v3043_v38, %v4075_v32  ;;  %v2208_v53 = vmul.f32 %v3043_v38, %v4072_v2 }
 0x697   : > { %v1906_v3 = vpop.xlane.xlu0 %1905  ;;  %3054 = vrcp.f32 %v1909_v23  ;;  %2328 = vmatprep.subr.bf16.mxu0 %v2265_v26  ;;  %v2207_v7 = vmul.f32 %v3045_v48, %v4086_v18  ;;  %v2206_v25 = vmul.f32 %v3045_v48, %v4082_v27  ;;  %v5113_v26 = vld [vmem:[#allocation10_spill] sm:$0xff] }
 0x698   : > { %3056 = vrcp.f32 %v1906_v3  ;;  %2329 = vmatpush1.bf16.xpose.msra.mxu0 %v2264_v12 }
 0x699   : > { %v3047_v19 = vpop.eup %3046  ;;  %v2297_v44 = vpack.c.bf16 %v2209_v13, %v2207_v7  ;;  %v2296_v40 = vpack.c.bf16 %v2208_v53, %v2206_v25  ;;  %v5114_v25 = vld [vmem:[#allocation23_spill] sm:$0xff] }
 0x69a   : > { %v3049_v42 = vpop.eup %3048  ;;  %v2005_v57 = vpop.xlane.xlu1 %2004  ;;  %v2149_v17 = vmul.f32 %v3047_v19, %v4091_v4  ;;  %v2148_v32 = vmul.f32 %v3047_v19, %v4088_v1 }
 0x69b   : > { %v2002_v56 = vpop.xlane.xlu0 %2001  ;;  %3058 = vrcp.f32 %v2005_v57  ;;  %2371 = vmatprep.subr.bf16.mxu1 %v2297_v44  ;;  %v2147_v2 = vmul.f32 %v3049_v42, %v4102_v14  ;;  %v2146_v18 = vmul.f32 %v3049_v42, %v4098_v34  ;;  %v5115_v44 = vld [vmem:[#allocation21_spill] sm:$0xff]  ;;  %v5116_v42 = vld [vmem:[#allocation19_spill] sm:$0xff] }
 0x69c   : > { %3060 = vrcp.f32 %v2002_v56  ;;  %2372 = vmatpush1.bf16.xpose.msra.mxu1 %v2296_v40  ;;  %v5117_v56 = vld [vmem:[#allocation17_spill] sm:$0xff] }
 0x69d   : > { %v3051_v27 = vpop.eup %3050  ;;  %v2267_v28 = vpack.c.bf16 %v2149_v17, %v2147_v2  ;;  %v2266_v35 = vpack.c.bf16 %v2148_v32, %v2146_v18 }
 0x69e   : > { %v3053_v20 = vpop.eup %3052  ;;  %v1915_v54 = vpop.xlane.xlu1 %1914  ;;  %v2213_v8 = vmul.f32 %v3051_v27, %v4107_v6  ;;  %v2212_v4 = vmul.f32 %v3051_v27, %v4104_v22  ;;  %v5108_v22 = vld [vmem:[#allocation11_spill] sm:$0xff] }
 0x69f   : > { %v1912_v52 = vpop.xlane.xlu0 %1911  ;;  %3062 = vrcp.f32 %v1915_v54  ;;  %2330 = vmatprep.subr.bf16.mxu0 %v2267_v28  ;;  %v2211_v1 = vmul.f32 %v3053_v20, %v4118_v16  ;;  %v2210_v14 = vmul.f32 %v3053_v20, %v4114_v29  ;;  %v5118_v20 = vld [vmem:[#allocation24_spill] sm:$0xff] }
 0x6a0   : > { %3064 = vrcp.f32 %v1912_v52  ;;  %2331 = vmatpush1.bf16.xpose.msra.mxu0 %v2266_v35  ;;  %v5119_v52 = vld [vmem:[#allocation22_spill] sm:$0xff] }
 0x6a1   : > { %v3055_v34 = vpop.eup %3054  ;;  %v2299_v5 = vpack.c.bf16 %v2213_v8, %v2211_v1  ;;  %v2298_v47 = vpack.c.bf16 %v2212_v4, %v2210_v14  ;;  %v5120_v4 = vld [vmem:[#allocation20_spill] sm:$0xff]  ;;  %v5121_v14 = vld [vmem:[#allocation18_spill] sm:$0xff] }
 0x6a2   : > { %v3057_v24 = vpop.eup %3056  ;;  %v2011_v58 = vpop.xlane.xlu1 %2010  ;;  %v2153_v51 = vmul.f32 %v3055_v34, %v5106_v15  ;;  %v2152_v6 = vmul.f32 %v3055_v34, %v5107_v55 }
 0x6a3   : > { %v2008_v59 = vpop.xlane.xlu0 %2007  ;;  %3066 = vrcp.f32 %v2011_v58  ;;  %2373 = vmatprep.subr.bf16.mxu1 %v2299_v5  ;;  %v2151_v10 = vmul.f32 %v3057_v24, %v5108_v22  ;;  %v2150_v16 = vmul.f32 %v3057_v24, %v5109_v30 }
 0x6a4   : > { %3068 = vrcp.f32 %v2008_v59  ;;  %2374 = vmatpush1.bf16.xpose.msra.mxu1 %v2298_v47 }
 0x6a5   : > { %v3059_v29 = vpop.eup %3058  ;;  %v2269_v62 = vpack.c.bf16 %v2153_v51, %v2151_v10  ;;  %v2268_v46 = vpack.c.bf16 %v2152_v6, %v2150_v16  ;;  %v5122_v51 = vld [vmem:[#allocation31_spill] sm:$0xff]  ;;  %v5123_v6 = vld [vmem:[#allocation29_spill] sm:$0xff] }
 0x6a6   : > { %v3061_v9 = vpop.eup %3060  ;;  %v1921_v36 = vpop.xlane.xlu1 %1920  ;;  %v2217_v37 = vmul.f32 %v3059_v29, %v5110_v31  ;;  %v2216_v49 = vmul.f32 %v3059_v29, %v5111_v41  ;;  %v5124_v10 = vld [vmem:[#allocation27_spill] sm:$0xff]  ;;  %v5125_v16 = vld [vmem:[#allocation25_spill] sm:$0xff] }
 0x6a7   : > { %v1918_v61 = vpop.xlane.xlu0 %1917  ;;  %3070 = vrcp.f32 %v1921_v36  ;;  %2332 = vmatprep.subr.bf16.mxu0 %v2269_v62  ;;  %v2215_v38 = vmul.f32 %v3061_v9, %v5112_v60  ;;  %v2214_v12 = vmul.f32 %v3061_v9, %v5113_v26 }
 0x6a8   : > { %3072 = vrcp.f32 %v1918_v61  ;;  %2333 = vmatpush1.bf16.xpose.msra.mxu0 %v2268_v46 }
 0x6a9   : > { %v3063_v48 = vpop.eup %3062  ;;  %v2301_v23 = vpack.c.bf16 %v2217_v37, %v2215_v38  ;;  %v2300_v3 = vpack.c.bf16 %v2216_v49, %v2214_v12  ;;  %v5126_v37 = vld [vmem:[#allocation32_spill] sm:$0xff]  ;;  %v5127_v49 = vld [vmem:[#allocation30_spill] sm:$0xff] }
 0x6aa   : > { %v3065_v13 = vpop.eup %3064  ;;  %v2017_v53 = vpop.xlane.xlu1 %2016  ;;  %v2157_v19 = vmul.f32 %v3063_v48, %v5114_v25  ;;  %v2156_v40 = vmul.f32 %v3063_v48, %v5115_v44  ;;  %v5128_v38 = vld [vmem:[#allocation28_spill] sm:$0xff]  ;;  %v5129_v12 = vld [vmem:[#allocation26_spill] sm:$0xff] }
 0x6ab   : > { %v2014_v7 = vpop.xlane.xlu0 %2013  ;;  %3074 = vrcp.f32 %v2017_v53  ;;  %2375 = vmatprep.subr.bf16.mxu1 %v2301_v23  ;;  %v2155_v57 = vmul.f32 %v3065_v13, %v5116_v42  ;;  %v2154_v17 = vmul.f32 %v3065_v13, %v5117_v56 }
 0x6ac   : > { %3076 = vrcp.f32 %v2014_v7  ;;  %2376 = vmatpush1.bf16.xpose.msra.mxu1 %v2300_v3 }
 0x6ad   : > { %v3067_v32 = vpop.eup %3066  ;;  %v2271_v2 = vpack.c.bf16 %v2157_v19, %v2155_v57  ;;  %v2270_v18 = vpack.c.bf16 %v2156_v40, %v2154_v17  ;;  %v5130_v19 = vld [vmem:[#allocation39_spill] sm:$0xff]  ;;  %v5131_v40 = vld [vmem:[#allocation37_spill] sm:$0xff] }
 0x6ae   : > { %v3069_v27 = vpop.eup %3068  ;;  %v1927_v28 = vpop.xlane.xlu1 %1926  ;;  %v2221_v54 = vmul.f32 %v3067_v32, %v5118_v20  ;;  %v2220_v8 = vmul.f32 %v3067_v32, %v5119_v52  ;;  %v5132_v57 = vld [vmem:[#allocation35_spill] sm:$0xff]  ;;  %v5133_v17 = vld [vmem:[#allocation33_spill] sm:$0xff] }
 0x6af   : > { %v1924_v35 = vpop.xlane.xlu0 %1923  ;;  %3078 = vrcp.f32 %v1927_v28  ;;  %2334 = vmatprep.subr.bf16.mxu0 %v2271_v2  ;;  %v2219_v1 = vmul.f32 %v3069_v27, %v5120_v4  ;;  %v2218_v34 = vmul.f32 %v3069_v27, %v5121_v14 }
 0x6b0   : > { %3080 = vrcp.f32 %v1924_v35  ;;  %2335 = vmatpush1.bf16.xpose.msra.mxu0 %v2270_v18 }
 0x6b1   : > { %v3071_v5 = vpop.eup %3070  ;;  %v2303_v47 = vpack.c.bf16 %v2221_v54, %v2219_v1  ;;  %v2302_v24 = vpack.c.bf16 %v2220_v8, %v2218_v34  ;;  %v5134_v54 = vld [vmem:[#allocation40_spill] sm:$0xff]  ;;  %v5135_v8 = vld [vmem:[#allocation38_spill] sm:$0xff] }
 0x6b2   : > { %v3073_v58 = vpop.eup %3072  ;;  %v2023_v59 = vpop.xlane.xlu1 %2022  ;;  %v2161_v55 = vmul.f32 %v3071_v5, %v5122_v51  ;;  %v2160_v22 = vmul.f32 %v3071_v5, %v5123_v6  ;;  %v5136_v1 = vld [vmem:[#allocation36_spill] sm:$0xff]  ;;  %v5137_v34 = vld [vmem:[#allocation34_spill] sm:$0xff] }
 0x6b3   : > { %v2020_v15 = vpop.xlane.xlu0 %2019  ;;  %3082 = vrcp.f32 %v2023_v59  ;;  %2377 = vmatprep.subr.bf16.mxu1 %v2303_v47  ;;  %v2159_v30 = vmul.f32 %v3073_v58, %v5124_v10  ;;  %v2158_v29 = vmul.f32 %v3073_v58, %v5125_v16 }
 0x6b4   : > { %3084 = vrcp.f32 %v2020_v15  ;;  %2378 = vmatpush1.bf16.xpose.msra.mxu1 %v2302_v24 }
 0x6b5   : > { %v3075_v62 = vpop.eup %3074  ;;  %v2273_v46 = vpack.c.bf16 %v2161_v55, %v2159_v30  ;;  %v2272_v9 = vpack.c.bf16 %v2160_v22, %v2158_v29  ;;  %v5138_v55 = vld [vmem:[#allocation47_spill] sm:$0xff]  ;;  %v5139_v22 = vld [vmem:[#allocation45_spill] sm:$0xff] }
 0x6b6   : > { %v3077_v36 = vpop.eup %3076  ;;  %v1933_v61 = vpop.xlane.xlu1 %1932  ;;  %v2225_v41 = vmul.f32 %v3075_v62, %v5126_v37  ;;  %v2224_v60 = vmul.f32 %v3075_v62, %v5127_v49  ;;  %v5140_v30 = vld [vmem:[#allocation43_spill] sm:$0xff]  ;;  %v5141_v29 = vld [vmem:[#allocation41_spill] sm:$0xff] }
 0x6b7   : > { %v1930_v31 = vpop.xlane.xlu0 %1929  ;;  %3086 = vrcp.f32 %v1933_v61  ;;  %2336 = vmatprep.subr.bf16.mxu0 %v2273_v46  ;;  %v2223_v26 = vmul.f32 %v3077_v36, %v5128_v38  ;;  %v2222_v48 = vmul.f32 %v3077_v36, %v5129_v12 }
 0x6b8   : > { %3088 = vrcp.f32 %v1930_v31  ;;  %2337 = vmatpush1.bf16.xpose.msra.mxu0 %v2272_v9 }
 0x6b9   : > { %v3079_v23 = vpop.eup %3078  ;;  %v2305_v3 = vpack.c.bf16 %v2225_v41, %v2223_v26  ;;  %v2304_v13 = vpack.c.bf16 %v2224_v60, %v2222_v48  ;;  %v5142_v41 = vld [vmem:[#allocation48_spill] sm:$0xff]  ;;  %v5143_v60 = vld [vmem:[#allocation46_spill] sm:$0xff] }
 0x6ba   : > { %v3081_v53 = vpop.eup %3080  ;;  %v2029_v7 = vpop.xlane.xlu1 %2028  ;;  %v2165_v44 = vmul.f32 %v3079_v23, %v5130_v19  ;;  %v2164_v42 = vmul.f32 %v3079_v23, %v5131_v40  ;;  %v5144_v26 = vld [vmem:[#allocation44_spill] sm:$0xff]  ;;  %v5145_v48 = vld [vmem:[#allocation42_spill] sm:$0xff] }
 0x6bb   : > { %v2026_v25 = vpop.xlane.xlu0 %2025  ;;  %3090 = vrcp.f32 %v2029_v7  ;;  %2379 = vmatprep.subr.bf16.mxu1 %v2305_v3  ;;  %v2163_v56 = vmul.f32 %v3081_v53, %v5132_v57  ;;  %v2162_v32 = vmul.f32 %v3081_v53, %v5133_v17 }
 0x6bc   : > { %3092 = vrcp.f32 %v2026_v25  ;;  %2380 = vmatpush1.bf16.xpose.msra.mxu1 %v2304_v13 }
 0x6bd   : > { %v3083_v2 = vpop.eup %3082  ;;  %v2275_v18 = vpack.c.bf16 %v2165_v44, %v2163_v56  ;;  %v2274_v27 = vpack.c.bf16 %v2164_v42, %v2162_v32  ;;  %v5146_v44 = vld [vmem:[#allocation55_spill] sm:$0xff]  ;;  %v5147_v42 = vld [vmem:[#allocation53_spill] sm:$0xff] }
 0x6be   : > { %v3085_v28 = vpop.eup %3084  ;;  %v1939_v35 = vpop.xlane.xlu1 %1938  ;;  %v2229_v52 = vmul.f32 %v3083_v2, %v5134_v54  ;;  %v2228_v4 = vmul.f32 %v3083_v2, %v5135_v8  ;;  %v5148_v56 = vld [vmem:[#allocation51_spill] sm:$0xff]  ;;  %v5149_v32 = vld [vmem:[#allocation49_spill] sm:$0xff] }
 0x6bf   : > { %v1936_v20 = vpop.xlane.xlu0 %1935  ;;  %3094 = vrcp.f32 %v1939_v35  ;;  %2338 = vmatprep.subr.bf16.mxu0 %v2275_v18  ;;  %v2227_v14 = vmul.f32 %v3085_v28, %v5136_v1  ;;  %v2226_v5 = vmul.f32 %v3085_v28, %v5137_v34 }
 0x6c0   : > { %3096 = vrcp.f32 %v1936_v20  ;;  %2339 = vmatpush1.bf16.xpose.msra.mxu0 %v2274_v27 }
 0x6c1   : > { %v3087_v47 = vpop.eup %3086  ;;  %v2307_v24 = vpack.c.bf16 %v2229_v52, %v2227_v14  ;;  %v2306_v58 = vpack.c.bf16 %v2228_v4, %v2226_v5  ;;  %v5150_v52 = vld [vmem:[#allocation56_spill] sm:$0xff]  ;;  %v5151_v4 = vld [vmem:[#allocation54_spill] sm:$0xff] }
 0x6c2   : > { %v3089_v59 = vpop.eup %3088  ;;  %v2035_v15 = vpop.xlane.xlu1 %2034  ;;  %v2169_v6 = vmul.f32 %v3087_v47, %v5138_v55  ;;  %v2168_v10 = vmul.f32 %v3087_v47, %v5139_v22  ;;  %v5152_v14 = vld [vmem:[#allocation52_spill] sm:$0xff]  ;;  %v5153_v5 = vld [vmem:[#allocation50_spill] sm:$0xff] }
 0x6c3   : > { %v2032_v51 = vpop.xlane.xlu0 %2031  ;;  %3098 = vrcp.f32 %v2035_v15  ;;  %2381 = vmatprep.subr.bf16.mxu1 %v2307_v24  ;;  %v2167_v16 = vmul.f32 %v3089_v59, %v5140_v30  ;;  %v2166_v62 = vmul.f32 %v3089_v59, %v5141_v29 }
 0x6c4   : > { %3100 = vrcp.f32 %v2032_v51  ;;  %2382 = vmatpush1.bf16.xpose.msra.mxu1 %v2306_v58 }
 0x6c5   : > { %v3091_v46 = vpop.eup %3090  ;;  %v2277_v9 = vpack.c.bf16 %v2169_v6, %v2167_v16  ;;  %v2276_v36 = vpack.c.bf16 %v2168_v10, %v2166_v62  ;;  %v5154_v6 = vld [vmem:[#allocation63_spill] sm:$0xff]  ;;  %v5155_v10 = vld [vmem:[#allocation61_spill] sm:$0xff] }
 0x6c6   : > { %v3093_v61 = vpop.eup %3092  ;;  %v1945_v31 = vpop.xlane.xlu1 %1944  ;;  %v2233_v49 = vmul.f32 %v3091_v46, %v5142_v41  ;;  %v2232_v38 = vmul.f32 %v3091_v46, %v5143_v60  ;;  %v5156_v16 = vld [vmem:[#allocation59_spill] sm:$0xff]  ;;  %v5157_v62 = vld [vmem:[#allocation57_spill] sm:$0xff] }
 0x6c7   : > { %v1942_v37 = vpop.xlane.xlu0 %1941  ;;  %3102 = vrcp.f32 %v1945_v31  ;;  %2340 = vmatprep.subr.bf16.mxu0 %v2277_v9  ;;  %v2231_v12 = vmul.f32 %v3093_v61, %v5144_v26  ;;  %v2230_v23 = vmul.f32 %v3093_v61, %v5145_v48 }
 0x6c8   : > { %3104 = vrcp.f32 %v1942_v37  ;;  %2341 = vmatpush1.bf16.xpose.msra.mxu0 %v2276_v36 }
 0x6c9   : > { %v3095_v3 = vpop.eup %3094  ;;  %v2309_v13 = vpack.c.bf16 %v2233_v49, %v2231_v12  ;;  %v2308_v53 = vpack.c.bf16 %v2232_v38, %v2230_v23  ;;  %v5158_v49 = vld [vmem:[#allocation64_spill] sm:$0xff]  ;;  %v5159_v38 = vld [vmem:[#allocation62_spill] sm:$0xff] }
 0x6ca   : > { %v3097_v7 = vpop.eup %3096  ;;  %v2041_v25 = vpop.xlane.xlu1 %2040  ;;  %v2173_v40 = vmul.f32 %v3095_v3, %v5146_v44  ;;  %v2172_v57 = vmul.f32 %v3095_v3, %v5147_v42  ;;  %v5160_v12 = vld [vmem:[#allocation60_spill] sm:$0xff]  ;;  %v5161_v23 = vld [vmem:[#allocation58_spill] sm:$0xff] }
 0x6cb   : > { %v2038_v19 = vpop.xlane.xlu0 %2037  ;;  %3106 = vrcp.f32 %v2041_v25  ;;  %2383 = vmatprep.subr.bf16.mxu1 %v2309_v13  ;;  %v2171_v17 = vmul.f32 %v3097_v7, %v5148_v56  ;;  %v2170_v2 = vmul.f32 %v3097_v7, %v5149_v32 }
 0x6cc   : > { %3108 = vrcp.f32 %v2038_v19  ;;  %2384 = vmatpush1.bf16.xpose.msra.mxu1 %v2308_v53 }
 0x6cd   : > { %v3099_v18 = vpop.eup %3098  ;;  %v2279_v27 = vpack.c.bf16 %v2173_v40, %v2171_v17  ;;  %v2278_v28 = vpack.c.bf16 %v2172_v57, %v2170_v2  ;;  %v5162_v40 = vld [vmem:[#allocation71_spill] sm:$0xff]  ;;  %v5163_v57 = vld [vmem:[#allocation69_spill] sm:$0xff] }
 0x6ce   : > { %v3101_v35 = vpop.eup %3100  ;;  %v1951_v20 = vpop.xlane.xlu1 %1950  ;;  %v2237_v8 = vmul.f32 %v3099_v18, %v5150_v52  ;;  %v2236_v1 = vmul.f32 %v3099_v18, %v5151_v4  ;;  %v5164_v17 = vld [vmem:[#allocation67_spill] sm:$0xff]  ;;  %v5165_v2 = vld [vmem:[#allocation65_spill] sm:$0xff] }
 0x6cf   : > { %v1948_v54 = vpop.xlane.xlu0 %1947  ;;  %3110 = vrcp.f32 %v1951_v20  ;;  %2342 = vmatprep.subr.bf16.mxu0 %v2279_v27  ;;  %v2235_v34 = vmul.f32 %v3101_v35, %v5152_v14  ;;  %v2234_v47 = vmul.f32 %v3101_v35, %v5153_v5 }
 0x6d0   : > { %3112 = vrcp.f32 %v1948_v54  ;;  %2343 = vmatpush1.bf16.xpose.msra.mxu0 %v2278_v28 }
 0x6d1   : > { %v3103_v24 = vpop.eup %3102  ;;  %v2311_v58 = vpack.c.bf16 %v2237_v8, %v2235_v34  ;;  %v2310_v59 = vpack.c.bf16 %v2236_v1, %v2234_v47  ;;  %v5166_v8 = vld [vmem:[#allocation72_spill] sm:$0xff]  ;;  %v5167_v1 = vld [vmem:[#allocation70_spill] sm:$0xff] }
 0x6d2   : > { %v3105_v15 = vpop.eup %3104  ;;  %v2047_v51 = vpop.xlane.xlu1 %2046  ;;  %v2177_v22 = vmul.f32 %v3103_v24, %v5154_v6  ;;  %v2176_v30 = vmul.f32 %v3103_v24, %v5155_v10  ;;  %v5168_v34 = vld [vmem:[#allocation68_spill] sm:$0xff]  ;;  %v5169_v47 = vld [vmem:[#allocation66_spill] sm:$0xff]  ;;  %v5170_v10 = vld [vmem:[#allocation77_spill] sm:$0xff] }
 0x6d3   : > { %v2044_v55 = vpop.xlane.xlu0 %2043  ;;  %3114 = vrcp.f32 %v2047_v51  ;;  %2385 = vmatprep.subr.bf16.mxu1 %v2311_v58  ;;  %v2175_v29 = vmul.f32 %v3105_v15, %v5156_v16  ;;  %v2174_v46 = vmul.f32 %v3105_v15, %v5157_v62  ;;  %v5171_v16 = vld [vmem:[#allocation73_spill] sm:$0xff]  ;;  %v5172_v62 = vld [vmem:[#allocation79_spill] sm:$0xff] }
 0x6d4   : > { %3116 = vrcp.f32 %v2044_v55  ;;  %2386 = vmatpush1.bf16.xpose.msra.mxu1 %v2310_v59 }
 0x6d5   : > { %v3107_v9 = vpop.eup %3106  ;;  %v2281_v36 = vpack.c.bf16 %v2177_v22, %v2175_v29  ;;  %v2280_v61 = vpack.c.bf16 %v2176_v30, %v2174_v46 }
 0x6d6   : > { %v3109_v31 = vpop.eup %3108  ;;  %v1957_v37 = vpop.xlane.xlu1 %1956  ;;  %v2241_v60 = vmul.f32 %v3107_v9, %v5158_v49  ;;  %v2240_v26 = vmul.f32 %v3107_v9, %v5159_v38 }
 0x6d7   : > { %v1954_v41 = vpop.xlane.xlu0 %1953  ;;  %3118 = vrcp.f32 %v1957_v37  ;;  %2344 = vmatprep.subr.bf16.mxu0 %v2281_v36  ;;  %v2239_v48 = vmul.f32 %v3109_v31, %v5160_v12  ;;  %v2238_v3 = vmul.f32 %v3109_v31, %v5161_v23 }
 0x6d8   : > { %3120 = vrcp.f32 %v1954_v41  ;;  %2345 = vmatpush1.bf16.xpose.msra.mxu0 %v2280_v61 }
 0x6d9   : > { %v3111_v13 = vpop.eup %3110  ;;  %v2313_v53 = vpack.c.bf16 %v2241_v60, %v2239_v48  ;;  %v2312_v7 = vpack.c.bf16 %v2240_v26, %v2238_v3 }
 0x6da   : > { %v3113_v25 = vpop.eup %3112  ;;  %v2053_v19 = vpop.xlane.xlu1 %2052  ;;  %v2181_v42 = vmul.f32 %v3111_v13, %v5162_v40  ;;  %v2180_v56 = vmul.f32 %v3111_v13, %v5163_v57 }
 0x6db   : > { %v2050_v44 = vpop.xlane.xlu0 %2049  ;;  %3122 = vrcp.f32 %v2053_v19  ;;  %2387 = vmatprep.subr.bf16.mxu1 %v2313_v53  ;;  %v2179_v32 = vmul.f32 %v3113_v25, %v5164_v17  ;;  %v2178_v18 = vmul.f32 %v3113_v25, %v5165_v2 }
 0x6dc   : > { %3124 = vrcp.f32 %v2050_v44  ;;  %2388 = vmatpush1.bf16.xpose.msra.mxu1 %v2312_v7  ;;  %v5173_v44 = vld [vmem:[#allocation78_spill] sm:$0xff] }
 0x6dd   : > { %v3115_v27 = vpop.eup %3114  ;;  %v2283_v28 = vpack.c.bf16 %v2181_v42, %v2179_v32  ;;  %v2282_v35 = vpack.c.bf16 %v2180_v56, %v2178_v18  ;;  %v5174_v42 = vld [vmem:[#allocation75_spill] sm:$0xff]  ;;  %v5177_v18 = vld [vmem:[#allocation85_spill] sm:$0xff] }
 0x6de   : > { %v3117_v20 = vpop.eup %3116  ;;  %v1963_v54 = vpop.xlane.xlu1 %1962  ;;  %v2245_v4 = vmul.f32 %v3115_v27, %v5166_v8  ;;  %v2244_v14 = vmul.f32 %v3115_v27, %v5167_v1 }
 0x6df   : > { %v1960_v52 = vpop.xlane.xlu0 %1959  ;;  %3126 = vrcp.f32 %v1963_v54  ;;  %2346 = vmatprep.subr.bf16.mxu0 %v2283_v28  ;;  %v2243_v5 = vmul.f32 %v3117_v20, %v5168_v34  ;;  %v2242_v24 = vmul.f32 %v3117_v20, %v5169_v47  ;;  %v5178_v28 = vld [vmem:[#allocation76_spill] sm:$0xff]  ;;  %v5179_v20 = vld [vmem:[#allocation81_spill] sm:$0xff] }
 0x6e0   : > { %3128 = vrcp.f32 %v1960_v52  ;;  %2347 = vmatpush1.bf16.xpose.msra.mxu0 %v2282_v35  ;;  %v5180_v52 = vld [vmem:[#allocation86_spill] sm:$0xff] }
 0x6e1   : > { %v3119_v58 = vpop.eup %3118  ;;  %v2315_v59 = vpack.c.bf16 %v2245_v4, %v2243_v5  ;;  %v2314_v15 = vpack.c.bf16 %v2244_v14, %v2242_v24  ;;  %v5181_v5 = vld [vmem:[#allocation87_spill] sm:$0xff] }
 0x6e2   : > { %v3121_v51 = vpop.eup %3120  ;;  %v2059_v55 = vpop.xlane.xlu1 %2058  ;;  %v2185_v22 = vmul.f32 %v3119_v58, %v4379_v33  ;;  %v2184_v30 = vmul.f32 %v3119_v58, %v5170_v10  ;;  %v5182_v24 = vld [vmem:[#allocation83_spill] sm:$0xff]  ;;  %v5185_v10 = vld [vmem:[#allocation6_spill] sm:$0xff] }
 0x6e3   : > { %v2056_v6 = vpop.xlane.xlu0 %2055  ;;  %3130 = vrcp.f32 %v2059_v55  ;;  %2389 = vmatprep.subr.bf16.mxu1 %v2315_v59  ;;  %v2183_v29 = vmul.f32 %v3121_v51, %v5171_v16  ;;  %v2182_v46 = vmul.f32 %v3121_v51, %v5172_v62  ;;  %v5183_v59 = vld [vmem:[#allocation84_spill] sm:$0xff]  ;;  %v5184_v51 = vld [vmem:[#allocation82_spill] sm:$0xff] }
 0x6e4   : > { %3132 = vrcp.f32 %v2056_v6  ;;  %2390 = vmatpush1.bf16.xpose.msra.mxu1 %v2314_v15  ;;  %v5189_v62 = vld [vmem:[#allocation8_spill] sm:$0xff] }
 0x6e5   : > { %v3123_v9 = vpop.eup %3122  ;;  %v2285_v36 = vpack.c.bf16 %v2185_v22, %v2183_v29  ;;  %v2284_v61 = vpack.c.bf16 %v2184_v30, %v2182_v46  ;;  %v5186_v30 = vld [vmem:[#allocation5_spill] sm:$0xff]  ;;  %v5188_v29 = vmov 0   ;;  %v5190_v46 = vld [vmem:[#allocation7_spill] sm:$0xff] }
 0x6e6   : > { %v3125_v31 = vpop.eup %3124  ;;  %v1969_v37 = vpop.xlane.xlu1 %1968  ;;  %v2249_v49 = vmul.f32 %v3123_v9, %v4395_v0  ;;  %v2248_v33 = vmul.f32 %v3123_v9, %v4392_v50  ;;  %v5187_v16 = vpack.c.bf16 %v5185_v10, %v5186_v30  ;;  %v5191_v9 = vpack.c.bf16 %v5189_v62, %v5190_v46 }
 0x6e7   : > { %v1966_v41 = vpop.xlane.xlu0 %1965  ;;  %3134 = vrcp.f32 %v1969_v37  ;;  %2348 = vmatprep.subr.bf16.mxu0 %v2285_v36  ;;  %v2247_v60 = vmul.f32 %v3125_v31, %v4406_v39  ;;  %v2246_v38 = vmul.f32 %v3125_v31, %v4402_v11 }
 0x6e8   : > { %3136 = vrcp.f32 %v1966_v41  ;;  %2349 = vmatpush1.bf16.xpose.msra.mxu0 %v2284_v61 }
 0x6e9   : > { %v3127_v26 = vpop.eup %3126  ;;  %v2317_v12 = vpack.c.bf16 %v2249_v49, %v2247_v60  ;;  %v2316_v48 = vpack.c.bf16 %v2248_v33, %v2246_v38 }
 0x6ea   : > { %v3129_v23 = vpop.eup %3128  ;;  %v2065_v3 = vpop.xlane.xlu1 %2064  ;;  %v2189_v53 = vmul.f32 %v3127_v26, %v4411_v63  ;;  %v2188_v0 = vmul.f32 %v3127_v26, %v4408_v21  ;;  %v5175_v63 = vld [vmem:[#allocation74_spill] sm:$0xff]  ;;  %v5176_v21 = vld [vmem:[#allocation80_spill] sm:$0xff] }
 0x6eb   : > { %v2062_v13 = vpop.xlane.xlu0 %2061  ;;  %3138 = vrcp.f32 %v2065_v3  ;;  %2391 = vmatprep.subr.bf16.mxu1 %v2317_v12  ;;  %v2187_v50 = vmul.f32 %v3129_v23, %v4420_v45  ;;  %v2186_v39 = vmul.f32 %v3129_v23, %v4418_v43  ;;  %v2748_v23 = vld [vmem:[%s4696_s5] sm:$0xff]   ;;  %v2749_v3 = vld [vmem:[%s4696_s5 + $0x8] sm:$0xff]  }
 0x6ec   : > { %3140 = vrcp.f32 %v2062_v13  ;;  %2392 = vmatpush1.bf16.xpose.msra.mxu1 %v2316_v48 }
 0x6ed   : > { %v3131_v11 = vpop.eup %3130  ;;  %v2287_v7 = vpack.c.bf16 %v2189_v53, %v2187_v50  ;;  %v2286_v25 = vpack.c.bf16 %v2188_v0, %v2186_v39 }
 0x6ee   : > { %v3133_v19 = vpop.eup %3132  ;;  %v2253_v40 = vmul.f32 %v3131_v11, %v5173_v44  ;;  %v2252_v57 = vmul.f32 %v3131_v11, %v5174_v42  ;;  %v2420_v13 = vpop.permute.xlu1 %2419 }
 0x6ef   : > { %2350 = vmatprep.subr.bf16.mxu0 %v2287_v7  ;;  %v2251_v56 = vmul.f32 %v3133_v19, %v5175_v63  ;;  %v2250_v17 = vmul.f32 %v3133_v19, %v5176_v21  ;;  %v3144_v21 = vld [vmem:[%s3314_s17 + $0x10] sm:$0xff] }
 0x6f0   : > { %2351 = vmatpush1.bf16.xpose.msra.mxu0 %v2286_v25  ;;  %v3142_v25 = vld [vmem:[%s3314_s17] sm:$0xff] }
 0x6f1   : > { %v3135_v32 = vpop.eup %3134  ;;  %v2319_v45 = vpack.c.bf16 %v2253_v40, %v2251_v56  ;;  %v2318_v2 = vpack.c.bf16 %v2252_v57, %v2250_v17  ;;  %v3143_v57 = vld [vmem:[%s3314_s17 + $0x8] sm:$0xff] }
 0x6f2   : > { %v3137_v43 = vpop.eup %3136  ;;  %v2193_v27 = vmul.f32 %v3135_v32, %v5177_v18  ;;  %v2192_v35 = vmul.f32 %v3135_v32, %v5178_v28  ;;  %v2415_v53 = vpop.permute.xlu0 %2414  ;;  %v3145_v32 = vld [vmem:[%s3314_s17 + $0x18] sm:$0xff] }
 0x6f3   : > { %2393 = vmatprep.subr.bf16.mxu1 %v2319_v45  ;;  %v2191_v54 = vmul.f32 %v3137_v43, %v5179_v20  ;;  %v2190_v8 = vmul.f32 %v3137_v43, %v5180_v52  ;;  %v2425_v42 = vpop.permute.xlu1 %2424  ;;  %v3146_v20 = vld [vmem:[%s3314_s17 + $0x20] sm:$0xff] }
 0x6f4   : > { %2394 = vmatpush1.bf16.xpose.msra.mxu1 %v2318_v2 }
 0x6f5   : > { %v3139_v4 = vpop.eup %3138  ;;  %v2289_v1 = vpack.c.bf16 %v2193_v27, %v2191_v54  ;;  %v2288_v14 = vpack.c.bf16 %v2192_v35, %v2190_v8 }
 0x6f6   : > { %v3141_v34 = vpop.eup %3140  ;;  %v2257_v47 = vmul.f32 %v3139_v4, %v5181_v5  ;;  %v2256_v58 = vmul.f32 %v3139_v4, %v5182_v24  ;;  %v3147_v4 = vld [vmem:[%s3314_s17 + $0x28] sm:$0xff] }
 0x6f7   : > { %2352 = vmatprep.subr.bf16.mxu0 %v2289_v1  ;;  %v2255_v15 = vmul.f32 %v3141_v34, %v5183_v59  ;;  %v2254_v55 = vmul.f32 %v3141_v34, %v5184_v51  ;;  %v2430_v27 = vpop.permute.xlu1 %2429  ;;  %v3148_v34 = vld [vmem:[%s3314_s17 + $0x30] sm:$0xff] }
 0x6f8   : > { %2353 = vmatpush1.bf16.xpose.msra.mxu0 %v2288_v14 }
 0x6f9   : > { %v2321_v6 = vpack.c.bf16 %v2257_v47, %v2255_v15  ;;  %v2320_v22 = vpack.c.bf16 %v2256_v58, %v2254_v55  ;;  %v3149_v47 = vld [vmem:[%s3314_s17 + $0x38] sm:$0xff] }
 0x6fb   : > { %2395 = vmatprep.subr.bf16.mxu1 %v2321_v6 }
 0x6fc   : > { %2396 = vmatpush1.bf16.xpose.msra.mxu1 %v2320_v22 }
 0x6ff   : > { %2355 = vmatmul.mubr.bf16.vlgmr.msra.gmra.mrb[72].mxu0 %v5187_v16 }
 0x700   : > { %2480 = vmatprep.mubr.bf16.mxu0 %v5188_v29 }
 0x703   : > { %2398 = vmatmul.mubr.bf16.vlgmr.msra.gmra.mrb[84].mxu1 %v5191_v9 }
 0x7d2   : > { %v2356_v36 = vpop.f32.mrb[72].mxu0 }
 0x7d3   : > { %v2358_v61 = vpop.f32.mrb[73].mxu0 }
 0x7d4   : > { %v2360_v31 = vpop.f32.mrb[74].mxu0 }
 0x7d5   : > { %v2408_v37 = vpack.c.bf16 %v2360_v31, %v2356_v36  ;;  %v2362_v41 = vpop.f32.mrb[75].mxu0 }
 0x7d6   : > { %v2409_v49 = vpack.c.bf16 %v2362_v41, %v2358_v61  ;;  %v2399_v33 = vpop.f32.mrb[84].mxu1 }
 0x7d7   : > { %v2401_v60 = vpop.f32.mrb[85].mxu1 }
 0x7d8   : > { %v2403_v38 = vpop.f32.mrb[86].mxu1  ;;  %2448 = vmatprep.subr.bf16.mxu0 %v2409_v49 }
 0x7d9   : > { %v2410_v26 = vpack.c.bf16 %v2403_v38, %v2399_v33  ;;  %v2405_v12 = vpop.f32.mrb[87].mxu1  ;;  %2449 = vmatpush1.bf16.msra.mxu0 %v2408_v37 }
 0x7da   : > { %v2411_v48 = vpack.c.bf16 %v2405_v12, %v2401_v60 }
 0x7dc   : > { %2450 = vmatprep.subr.bf16.mxu0 %v2411_v48 }
 0x7dd   : > { %2451 = vmatpush1.bf16.msra.mxu0 %v2410_v26 }
 0x7e0   : > { %2650 = vmatmul.mubr.msk.bf16.vlgmr.msra.gmra.mrb[76].mxu0 %vm364_vm0, %v2748_v23 }
 0x7e1   : > { %2490 = vmatprep.mubr.bf16.mxu0 %v5188_v29 }
 0x7e8   : > { %2651 = vmatmul.mubr.msk.bf16.gmra.mrb[80].mxu0 %vm364_vm0, %v2749_v3 }
 0x8b3   : > { %v2482_v0 = vpop.f32.mrb[76].mxu0 }
 0x8b4   : > { %v2483_v50 = vadd.f32 %v2482_v0, %v2415_v53  ;;  %v2484_v39 = vpop.f32.mrb[77].mxu0 }
 0x8b5   : > { %v2485_v11 = vadd.f32 %v2484_v39, %v2415_v53  ;;  %v2486_v7 = vpop.f32.mrb[78].mxu0 }
 0x8b6   : > { %v2501_v19 = vadd.f32 %v3142_v25, %v2483_v50  ;;  %v2487_v44 = vadd.f32 %v2486_v7, %v2420_v13  ;;  %v2488_v40 = vpop.f32.mrb[79].mxu0 }
 0x8b7   : > { %v2502_v63 = vadd.f32 %v3143_v57, %v2485_v11  ;;  %v2489_v56 = vadd.f32 %v2488_v40, %v2420_v13 }
 0x8b8   : > { %2509 = vst [vmem:[%s4623_s18] sm:$0xff] %v2501_v19  ;;  %v2503_v17 = vadd.f32 %v3144_v21, %v2487_v44 }
 0x8b9   : > { %2510 = vst [vmem:[%s4623_s18 + $0x8] sm:$0xff] %v2502_v63  ;;  %v2504_v45 = vadd.f32 %v3145_v32, %v2489_v56 }
 0x8ba   : > { %2511 = vst [vmem:[%s4623_s18 + $0x10] sm:$0xff] %v2503_v17 }
 0x8bb   : > { %2512 = vst [vmem:[%s4623_s18 + $0x18] sm:$0xff] %v2504_v45  ;;  %v2492_v2 = vpop.f32.mrb[80].mxu0 }
 0x8bc   : > { %v2493_v43 = vadd.f32 %v2492_v2, %v2425_v42  ;;  %v2494_v18 = vpop.f32.mrb[81].mxu0 }
 0x8bd   : > { %v2495_v28 = vadd.f32 %v2494_v18, %v2425_v42  ;;  %v2496_v35 = vpop.f32.mrb[82].mxu0 }
 0x8be   : > { %v2505_v54 = vadd.f32 %v3146_v20, %v2493_v43  ;;  %v2497_v52 = vadd.f32 %v2496_v35, %v2430_v27  ;;  %v2498_v8 = vpop.f32.mrb[83].mxu0 }
 0x8bf   : > { %v2506_v1 = vadd.f32 %v3147_v4, %v2495_v28  ;;  %v2499_v14 = vadd.f32 %v2498_v8, %v2430_v27 }
 0x8c0   : > { %2513 = vst [vmem:[%s4623_s18 + $0x20] sm:$0xff] %v2505_v54  ;;  %v2507_v5 = vadd.f32 %v3148_v34, %v2497_v52 }
 0x8c1   : > { %2514 = vst [vmem:[%s4623_s18 + $0x28] sm:$0xff] %v2506_v1  ;;  %v2508_v24 = vadd.f32 %v3149_v47, %v2499_v14 }
 0x8c2   : > { %2515 = vst [vmem:[%s4623_s18 + $0x30] sm:$0xff] %v2507_v5 }
 0x8c3   : > { %2516 = vst [vmem:[%s4623_s18 + $0x38] sm:$0xff] %v2508_v24 }
 0x8c4   : > { %3163 = shalt.err (!%p3160_p3)
}
 0x8c5   : > { %s3164_s17 = scalar_lea.hbm %s4640_s23, 1024  ;;  %s3168_s16 = scalar_lea.hbm %s4698_s7, 2048 }
 0x8c6   : > { %p3165_p4 = scmp.ne.s32.totalorder %s4640_s23, %s3164_s17  ;;  %p3169_p9 = scmp.lt.u32.totalorder %s4640_s23, %s4698_s7 }
 0x8c7   : > { %p3170_p10 = scmp.lt.u32.totalorder %s3168_s16, %s3164_s17  ;;  %p3172_p12 = scmp.lt.u32.totalorder %s3164_s17, %s4640_s23 }
 0x8c8   : > { %p3166_p7 = pnand %p3165_p4, %p3299_p5 }
 0x8c9   : > { %p3171_p11 = por %p3170_p10, %p3169_p9 }
 0x8ca   : > { %p3167_p8 = pneg %p3166_p7 }
 0x8cb   : > { %p3173_p13 = por %p3172_p12, %p3171_p11 }
 0x8cd   : > { %p3174_p0 = pnand %p3173_p13, %p3167_p8 }
 0x8cf   : > { %3177 = shalt.err (!%p3174_p0)
}
 0x8d0   : > { %s3219_s21 = smov 256   ;;  %s3220_s22 = smov 16  }
 0x8d1   : > { %2693 = dma.vmem_to_hbm [thread:$0]  (%p3299_p5), %s4642_s20, 1024, %s4640_s23, %s4650_s28, %s3219_s21, %s3219_s21, %s3220_s22  }
 0x8d2 PF: > { %p2699_p1 = scmp.ge.s32.totalorder %s3212_s27, 2  ;;  %s2546_s29 = sand.u32 1, %s3200_s24  }
 0x8d3   : > { %s2547_s8 = scalar_lea.sflag [#allocation3], %s2546_s29 }
 0x8d4   : > { %p2696_p2 = pnand %p2699_p1, %p3303_p6 }
 0x8d6   : > { %3195 = dma.done.wait (!%p2696_p2), %s2547_s8, 1024  }
 0x8d7   : > { %3197 = vsyncadd (!%p2696_p2), %s2547_s8, 4294966272  ;;  %p17_p3 = scmp.ge.s32.totalorder %s3286_s30, 4   ;;  %s5192_s24 = smov %s3204_s25 }
 0x8d8   : > { %s5193_s25 = smov %s3208_s26  ;;  %s5194_s26 = smov %s3297_s10 }
 0x8d9   : > { %s5195_s27 = smov %s3286_s30  ;;  %19 = sbr.rel (!%p17_p3) target bundleno = 3 (0x3), region = 83 }
 0x8e0   :  { %2552 = vsyncpa [#allocation3], 1 }
 0x8e1   :  { %2554 = vsyncpa [#allocation3 + $0x1], 1 }

</bundles_post_ra>
